<compile_context>
chip_gen: v5e
topology: v5e:2x2
jax: 0.10.0
libtpu: 0.0.40
codegen_flags: <defaults>
</compile_context>

<pallas_src>
import jax
import jax.numpy as jnp
from jax.experimental import pallas as pl
from jax.experimental.pallas import tpu as pltpu


# ----------------------------------------------------------------------------
# Fused kernel: BN affine -> 3x (graph conv -> 1x1 conv -> ReLU ->
# channel attention -> gate -> ReLU) -> global (T,V) mean pool -> fc.
# One grid step handles one batch element (all M person streams).
# ----------------------------------------------------------------------------
def _make_fused_kernel(T, V, M):
    TV = T * V

    def kernel(x_ref, bns_ref, bnt_ref, ablk_ref, *rest):
        # rest = [18 layer-weight refs] + [fc_Wt, fc_b] + [o_ref]
        n_layers = (len(rest) - 3) // 6
        layers = [rest[i * 6:(i + 1) * 6] for i in range(n_layers)]
        fcw_ref, fcb_ref, o_ref = rest[-3], rest[-2], rest[-1]

        A_blk = ablk_ref[...]                                   # (TV, TV) = kron(I_T, A^T)
        logits = fcb_ref[...].astype(jnp.float32)               # (1, num_class)

        for m in range(M):                                      # static unroll (M = 2)
            # Eval-mode BatchNorm folded to per-channel affine.
            h = x_ref[0, m] * bns_ref[...] + bnt_ref[...]       # (TV, Cin)

            for W_ref, b_ref, W1_ref, b1_ref, W2_ref, b2_ref in layers:
                cout = W_ref.shape[1]
                # GraphConvolution: einsum('nctv,vw->nctw') as one block-diag
                # matmul over the flattened (T*V) axis -> M = K = TV.
                g = jnp.dot(A_blk, h, preferred_element_type=jnp.float32)
                # 1x1 conv over channels with M = T*V rows, bias, ReLU.
                z = jnp.dot(g, W_ref[...], preferred_element_type=jnp.float32)
                z = jnp.maximum(z + b_ref[...], 0.0)            # (TV, cout)

                # ChannelAttention: mean+max over V per time step (PyTorch
                # dim=-1), FCs batched over the T rows.
                z3 = z.reshape(T, V, cout)
                s = jnp.mean(z3, axis=1) + jnp.max(z3, axis=1)  # (T, cout)
                a1 = jnp.maximum(
                    jnp.dot(s, W1_ref[...], preferred_element_type=jnp.float32)
                    + b1_ref[...], 0.0)                         # (T, cmid)
                att = jax.nn.sigmoid(
                    jnp.dot(a1, W2_ref[...], preferred_element_type=jnp.float32)
                    + b2_ref[...])                              # (T, cout)

                # Gate (broadcast over V) + final block ReLU.
                z3 = jnp.maximum(z3 * att[:, None, :], 0.0)
                h = z3.reshape(TV, cout)

            # Global average pool over (T, V) + this person's slice of the fc
            # (x.view(N, -1) concatenates the M person streams -> split fc W).
            pooled = jnp.mean(h, axis=0, keepdims=True)          # (1, c_final)
            logits = logits + jnp.dot(pooled, fcw_ref[m],
                                      preferred_element_type=jnp.float32)

        o_ref[0] = logits.astype(o_ref.dtype)

    return kernel


def two_stream_agcn_forward(params, x):
    """x: (N, C, T, V, M) — identical to the PyTorch input convention."""
    N, C, T, V, M = x.shape
    TV = T * V
    num_class = params["fc_W"].shape[0]
    c_final = params["layer3"]["W"].shape[0]
    assert M * c_final == params["fc_W"].shape[1], "fc expects M * C_final inputs"

    # (N, C, T, V, M) -> channels-last with persons split: (N, M, T*V, C)
    xk = jnp.transpose(x, (0, 4, 2, 3, 1)).reshape(N, M, TV, C)

    # Eval-mode BatchNorm as per-channel scale/shift (applied in-kernel).
    eps = 1e-5
    bn_s = (params["bn_gamma"] / jnp.sqrt(params["bn_var"] + eps)).reshape(1, C)
    bn_t = (params["bn_beta"] - params["bn_mean"] * bn_s[0]).reshape(1, C)

    # Graph conv as one block-diagonal matmul: g_flat = kron(I_T, A^T) @ h_flat.
    A_blk = jnp.kron(jnp.eye(T, dtype=xk.dtype), params["A"].T)      # (TV, TV)

    def const_spec(shape):
        nd = len(shape)
        return pl.BlockSpec(shape, lambda n: (0,) * nd)

    layer_args, layer_specs = [], []
    for name in ("layer1", "layer2", "layer3"):
        p = params[name]
        cout = p["W"].shape[0]
        cmid = p["W1"].shape[0]
        args = (p["W"].T, p["b"].reshape(1, cout),
                p["W1"].T, p["b1"].reshape(1, cmid),
                p["W2"].T, p["b2"].reshape(1, cout))
        layer_args.extend(args)
        layer_specs.extend(const_spec(a.shape) for a in args)

    # fc weight split per person stream: (M, c_final, num_class).
    fc_Wt = params["fc_W"].T.reshape(M, c_final, num_class)
    fc_b = params["fc_b"].reshape(1, num_class)

    kernel = _make_fused_kernel(T, V, M)

    out = pl.pallas_call(
        kernel,
        out_shape=jax.ShapeDtypeStruct((N, 1, num_class), jnp.float32),
        grid_spec=pltpu.PrefetchScalarGridSpec(
            num_scalar_prefetch=0,
            grid=(N,),
            in_specs=[
                pl.BlockSpec((1, M, TV, C), lambda n: (n, 0, 0, 0)),
                const_spec(bn_s.shape),
                const_spec(bn_t.shape),
                const_spec(A_blk.shape),
                *layer_specs,
                const_spec(fc_Wt.shape),
                const_spec(fc_b.shape),
            ],
            out_specs=pl.BlockSpec((1, 1, num_class), lambda n: (n, 0, 0)),
        ),
        compiler_params=pltpu.CompilerParams(
            dimension_semantics=("parallel",)),
    )(xk, bn_s, bn_t, A_blk, *layer_args, fc_Wt, fc_b)
    return out.reshape(N, num_class)


# ----------------------------------------------------------------------------
# Parameter init (deterministic, synthetic)
# ----------------------------------------------------------------------------
def init_two_stream_agcn(key, num_class, num_point, in_channels):
    keys = iter(jax.random.split(key, 32))

    def conv(cin, cout):
        w = jax.random.normal(next(keys), (cout, cin), jnp.float32) / jnp.sqrt(cin)
        b = 0.01 * jax.random.normal(next(keys), (cout,), jnp.float32)
        return w, b

    def block(cin, cout):
        W, b = conv(cin, cout)                  # GraphConvolution conv (1x1)
        W1, b1 = conv(cout, cout // 8)          # ChannelAttention fc1 (1x1)
        W2, b2 = conv(cout // 8, cout)          # ChannelAttention fc2 (1x1)
        return dict(W=W, b=b, W1=W1, b1=b1, W2=W2, b2=b2)

    A = jax.random.uniform(next(keys), (num_point, num_point), jnp.float32) / num_point
    W_fc = jax.random.normal(next(keys), (num_class, 512), jnp.float32) / jnp.sqrt(512.0)
    b_fc = 0.01 * jax.random.normal(next(keys), (num_class,), jnp.float32)
    return dict(
        A=A,
        bn_gamma=jnp.ones((in_channels,), jnp.float32),
        bn_beta=jnp.zeros((in_channels,), jnp.float32),
        bn_mean=jnp.zeros((in_channels,), jnp.float32),
        bn_var=jnp.ones((in_channels,), jnp.float32),
        layer1=block(in_channels, 64),
        layer2=block(64, 128),
        layer3=block(128, 256),
        fc_W=W_fc, fc_b=b_fc,
    )


# ----------------------------------------------------------------------------
# Plain-JAX reference (mirrors the PyTorch forward, eval mode) for self-check
# ----------------------------------------------------------------------------
def _reference_forward(params, x):
    N, C, T, V, M = x.shape
    xr = jnp.transpose(x, (0, 4, 1, 2, 3)).reshape(N * M, C, T, V)
    eps = 1e-5
    s = params["bn_gamma"] / jnp.sqrt(params["bn_var"] + eps)
    t = params["bn_beta"] - params["bn_mean"] * s
    xr = xr * s[None, :, None, None] + t[None, :, None, None]
    A = params["A"]
    for name in ("layer1", "layer2", "layer3"):
        p = params[name]
        y = jnp.einsum("nctv,vw->nctw", xr, A)
        y = jnp.einsum("nctv,oc->notv", y, p["W"]) + p["b"][None, :, None, None]
        y = jnp.maximum(y, 0.0)
        sa = jnp.mean(y, axis=-1, keepdims=True) + jnp.max(y, axis=-1, keepdims=True)
        a1 = jnp.maximum(
            jnp.einsum("nctv,oc->notv", sa, p["W1"]) + p["b1"][None, :, None, None], 0.0)
        att = jax.nn.sigmoid(
            jnp.einsum("nctv,oc->notv", a1, p["W2"]) + p["b2"][None, :, None, None])
        xr = jnp.maximum(y * att, 0.0)
    feat = jnp.mean(xr, axis=(2, 3)).reshape(N, -1)
    return feat @ params["fc_W"].T + params["fc_b"]


if __name__ == "__main__":
    N, C, T, V, M = 2, 3, 8, 16, 2      # num_person M must be 2 (fc expects 2*256=512)
    num_class = 10
    key = jax.random.PRNGKey(0)
    pkey, xkey = jax.random.split(key)
    params = init_two_stream_agcn(pkey, num_class, V, C)
    x = jax.random.normal(xkey, (N, C, T, V, M), jnp.float32)

    fwd = jax.jit(two_stream_agcn_forward)
    out = jax.block_until_ready(fwd(params, x))

    assert out.shape == (N, num_class), out.shape
    assert bool(jnp.all(jnp.isfinite(out)))

    ref = _reference_forward(params, x)
    assert bool(jnp.allclose(out, ref, rtol=1e-3, atol=1e-3)), \
        float(jnp.max(jnp.abs(out - ref)))
    print("KERNEL_OK")
</pallas_src>

<mosaic_0001>
module attributes {stable_mosaic.version = 11 : i64} {
  func.func @kernel(%arg0: i32, %arg1: memref<1x2x128x3xf32, #tpu.memory_space<vmem>>, %arg2: memref<1x3xf32, #tpu.memory_space<vmem>>, %arg3: memref<1x3xf32, #tpu.memory_space<vmem>>, %arg4: memref<128x128xf32, #tpu.memory_space<vmem>>, %arg5: memref<3x64xf32, #tpu.memory_space<vmem>>, %arg6: memref<1x64xf32, #tpu.memory_space<vmem>>, %arg7: memref<64x8xf32, #tpu.memory_space<vmem>>, %arg8: memref<1x8xf32, #tpu.memory_space<vmem>>, %arg9: memref<8x64xf32, #tpu.memory_space<vmem>>, %arg10: memref<1x64xf32, #tpu.memory_space<vmem>>, %arg11: memref<64x128xf32, #tpu.memory_space<vmem>>, %arg12: memref<1x128xf32, #tpu.memory_space<vmem>>, %arg13: memref<128x16xf32, #tpu.memory_space<vmem>>, %arg14: memref<1x16xf32, #tpu.memory_space<vmem>>, %arg15: memref<16x128xf32, #tpu.memory_space<vmem>>, %arg16: memref<1x128xf32, #tpu.memory_space<vmem>>, %arg17: memref<128x256xf32, #tpu.memory_space<vmem>>, %arg18: memref<1x256xf32, #tpu.memory_space<vmem>>, %arg19: memref<256x32xf32, #tpu.memory_space<vmem>>, %arg20: memref<1x32xf32, #tpu.memory_space<vmem>>, %arg21: memref<32x256xf32, #tpu.memory_space<vmem>>, %arg22: memref<1x256xf32, #tpu.memory_space<vmem>>, %arg23: memref<2x256x10xf32, #tpu.memory_space<vmem>>, %arg24: memref<1x10xf32, #tpu.memory_space<vmem>>, %arg25: memref<1x1x10xf32, #tpu.memory_space<vmem>>) attributes {dimension_semantics = [#tpu.dimension_semantics<parallel>], iteration_bounds = array<i64: 2>, scalar_prefetch = 0 : i64, scratch_operands = 0 : i64, tpu.core_type = #tpu.core_type<tc>, window_params = [{transform_indices = @transform_0, window_bounds = array<i64: 1, 2, 128, 3>}, {pipeline_mode = #tpu.pipeline_mode<synchronous>, transform_indices = @transform_1, window_bounds = array<i64: 1, 3>}, {pipeline_mode = #tpu.pipeline_mode<synchronous>, transform_indices = @transform_2, window_bounds = array<i64: 1, 3>}, {pipeline_mode = #tpu.pipeline_mode<synchronous>, transform_indices = @transform_3, window_bounds = array<i64: 128, 128>}, {pipeline_mode = #tpu.pipeline_mode<synchronous>, transform_indices = @transform_4, window_bounds = array<i64: 3, 64>}, {pipeline_mode = #tpu.pipeline_mode<synchronous>, transform_indices = @transform_5, window_bounds = array<i64: 1, 64>}, {pipeline_mode = #tpu.pipeline_mode<synchronous>, transform_indices = @transform_6, window_bounds = array<i64: 64, 8>}, {pipeline_mode = #tpu.pipeline_mode<synchronous>, transform_indices = @transform_7, window_bounds = array<i64: 1, 8>}, {pipeline_mode = #tpu.pipeline_mode<synchronous>, transform_indices = @transform_8, window_bounds = array<i64: 8, 64>}, {pipeline_mode = #tpu.pipeline_mode<synchronous>, transform_indices = @transform_9, window_bounds = array<i64: 1, 64>}, {pipeline_mode = #tpu.pipeline_mode<synchronous>, transform_indices = @transform_10, window_bounds = array<i64: 64, 128>}, {pipeline_mode = #tpu.pipeline_mode<synchronous>, transform_indices = @transform_11, window_bounds = array<i64: 1, 128>}, {pipeline_mode = #tpu.pipeline_mode<synchronous>, transform_indices = @transform_12, window_bounds = array<i64: 128, 16>}, {pipeline_mode = #tpu.pipeline_mode<synchronous>, transform_indices = @transform_13, window_bounds = array<i64: 1, 16>}, {pipeline_mode = #tpu.pipeline_mode<synchronous>, transform_indices = @transform_14, window_bounds = array<i64: 16, 128>}, {pipeline_mode = #tpu.pipeline_mode<synchronous>, transform_indices = @transform_15, window_bounds = array<i64: 1, 128>}, {pipeline_mode = #tpu.pipeline_mode<synchronous>, transform_indices = @transform_16, window_bounds = array<i64: 128, 256>}, {pipeline_mode = #tpu.pipeline_mode<synchronous>, transform_indices = @transform_17, window_bounds = array<i64: 1, 256>}, {pipeline_mode = #tpu.pipeline_mode<synchronous>, transform_indices = @transform_18, window_bounds = array<i64: 256, 32>}, {pipeline_mode = #tpu.pipeline_mode<synchronous>, transform_indices = @transform_19, window_bounds = array<i64: 1, 32>}, {pipeline_mode = #tpu.pipeline_mode<synchronous>, transform_indices = @transform_20, window_bounds = array<i64: 32, 256>}, {pipeline_mode = #tpu.pipeline_mode<synchronous>, transform_indices = @transform_21, window_bounds = array<i64: 1, 256>}, {pipeline_mode = #tpu.pipeline_mode<synchronous>, transform_indices = @transform_22, window_bounds = array<i64: 2, 256, 10>}, {pipeline_mode = #tpu.pipeline_mode<synchronous>, transform_indices = @transform_23, window_bounds = array<i64: 1, 10>}, {transform_indices = @transform_24, window_bounds = array<i64: 1, 1, 10>}]} {
    %c0 = arith.constant 0 : index
    %c0_0 = arith.constant 0 : index
    %0 = vector.load %arg4[%c0, %c0_0] : memref<128x128xf32, #tpu.memory_space<vmem>>, vector<128x128xf32>
    %c0_1 = arith.constant 0 : index
    %c0_2 = arith.constant 0 : index
    %1 = vector.load %arg24[%c0_1, %c0_2] : memref<1x10xf32, #tpu.memory_space<vmem>>, vector<1x10xf32>
    %c0_3 = arith.constant 0 : index
    %c0_4 = arith.constant 0 : index
    %c0_5 = arith.constant 0 : index
    %c0_6 = arith.constant 0 : index
    %2 = vector.load %arg1[%c0_3, %c0_4, %c0_5, %c0_6] : memref<1x2x128x3xf32, #tpu.memory_space<vmem>>, vector<1x1x128x3xf32>
    %3 = vector.shape_cast %2 : vector<1x1x128x3xf32> to vector<128x3xf32>
    %c0_7 = arith.constant 0 : index
    %c0_8 = arith.constant 0 : index
    %4 = vector.load %arg2[%c0_7, %c0_8] : memref<1x3xf32, #tpu.memory_space<vmem>>, vector<1x3xf32>
    %5 = vector.broadcast %4 : vector<1x3xf32> to vector<128x3xf32>
    %6 = arith.mulf %3, %5 : vector<128x3xf32>
    %c0_9 = arith.constant 0 : index
    %c0_10 = arith.constant 0 : index
    %7 = vector.load %arg3[%c0_9, %c0_10] : memref<1x3xf32, #tpu.memory_space<vmem>>, vector<1x3xf32>
    %8 = vector.broadcast %7 : vector<1x3xf32> to vector<128x3xf32>
    %9 = arith.addf %6, %8 : vector<128x3xf32>
    %cst = arith.constant dense<0.000000e+00> : vector<128x3xf32>
    %10 = tpu.matmul %0, %9, %cst {dimension_numbers = #tpu.dot_dimension_numbers<[1], [0], [0], [1], [0, 0, 1, 1], [], []>} : vector<128x128xf32>, vector<128x3xf32>, vector<128x3xf32> -> vector<128x3xf32>
    %c0_11 = arith.constant 0 : index
    %c0_12 = arith.constant 0 : index
    %11 = vector.load %arg5[%c0_11, %c0_12] : memref<3x64xf32, #tpu.memory_space<vmem>>, vector<3x64xf32>
    %cst_13 = arith.constant dense<0.000000e+00> : vector<128x64xf32>
    %12 = tpu.matmul %10, %11, %cst_13 {dimension_numbers = #tpu.dot_dimension_numbers<[1], [0], [0], [1], [0, 0, 1, 1], [], []>} : vector<128x3xf32>, vector<3x64xf32>, vector<128x64xf32> -> vector<128x64xf32>
    %c0_14 = arith.constant 0 : index
    %c0_15 = arith.constant 0 : index
    %13 = vector.load %arg6[%c0_14, %c0_15] : memref<1x64xf32, #tpu.memory_space<vmem>>, vector<1x64xf32>
    %14 = vector.broadcast %13 : vector<1x64xf32> to vector<128x64xf32>
    %15 = arith.addf %12, %14 : vector<128x64xf32>
    %cst_16 = arith.constant 0.000000e+00 : f32
    %16 = vector.broadcast %cst_16 : f32 to vector<128x64xf32>
    %17 = arith.maximumf %15, %16 : vector<128x64xf32>
    %18 = vector.shape_cast %17 : vector<128x64xf32> to vector<8x16x64xf32>
    %cst_17 = arith.constant dense<0.000000e+00> : vector<8x64xf32>
    %19 = vector.multi_reduction <add>, %18, %cst_17 [1] : vector<8x16x64xf32> to vector<8x64xf32>
    %cst_18 = arith.constant 1.600000e+01 : f32
    %20 = vector.broadcast %cst_18 : f32 to vector<8x64xf32>
    %21 = arith.divf %19, %20 : vector<8x64xf32>
    %cst_19 = arith.constant dense<0xFF800000> : vector<8x64xf32>
    %22 = vector.multi_reduction <maximumf>, %18, %cst_19 [1] : vector<8x16x64xf32> to vector<8x64xf32>
    %23 = arith.addf %21, %22 : vector<8x64xf32>
    %c0_20 = arith.constant 0 : index
    %c0_21 = arith.constant 0 : index
    %24 = vector.load %arg7[%c0_20, %c0_21] : memref<64x8xf32, #tpu.memory_space<vmem>>, vector<64x8xf32>
    %cst_22 = arith.constant dense<0.000000e+00> : vector<8x8xf32>
    %25 = tpu.matmul %23, %24, %cst_22 {dimension_numbers = #tpu.dot_dimension_numbers<[1], [0], [0], [1], [0, 0, 1, 1], [], []>} : vector<8x64xf32>, vector<64x8xf32>, vector<8x8xf32> -> vector<8x8xf32>
    %c0_23 = arith.constant 0 : index
    %c0_24 = arith.constant 0 : index
    %26 = vector.load %arg8[%c0_23, %c0_24] : memref<1x8xf32, #tpu.memory_space<vmem>>, vector<1x8xf32>
    %27 = vector.broadcast %26 : vector<1x8xf32> to vector<8x8xf32>
    %28 = arith.addf %25, %27 : vector<8x8xf32>
    %cst_25 = arith.constant 0.000000e+00 : f32
    %29 = vector.broadcast %cst_25 : f32 to vector<8x8xf32>
    %30 = arith.maximumf %28, %29 : vector<8x8xf32>
    %c0_26 = arith.constant 0 : index
    %c0_27 = arith.constant 0 : index
    %31 = vector.load %arg9[%c0_26, %c0_27] : memref<8x64xf32, #tpu.memory_space<vmem>>, vector<8x64xf32>
    %cst_28 = arith.constant dense<0.000000e+00> : vector<8x64xf32>
    %32 = tpu.matmul %30, %31, %cst_28 {dimension_numbers = #tpu.dot_dimension_numbers<[1], [0], [0], [1], [0, 0, 1, 1], [], []>} : vector<8x8xf32>, vector<8x64xf32>, vector<8x64xf32> -> vector<8x64xf32>
    %c0_29 = arith.constant 0 : index
    %c0_30 = arith.constant 0 : index
    %33 = vector.load %arg10[%c0_29, %c0_30] : memref<1x64xf32, #tpu.memory_space<vmem>>, vector<1x64xf32>
    %34 = vector.broadcast %33 : vector<1x64xf32> to vector<8x64xf32>
    %35 = arith.addf %32, %34 : vector<8x64xf32>
    %36 = arith.negf %35 : vector<8x64xf32>
    %37 = math.exp %36 : vector<8x64xf32>
    %cst_31 = arith.constant 1.000000e+00 : f32
    %38 = vector.broadcast %cst_31 : f32 to vector<8x64xf32>
    %39 = arith.addf %38, %37 : vector<8x64xf32>
    %40 = arith.divf %38, %39 : vector<8x64xf32>
    %41 = vector.shape_cast %40 : vector<8x64xf32> to vector<8x1x64xf32>
    %42 = vector.broadcast %41 : vector<8x1x64xf32> to vector<8x16x64xf32>
    %43 = arith.mulf %18, %42 : vector<8x16x64xf32>
    %cst_32 = arith.constant 0.000000e+00 : f32
    %44 = vector.broadcast %cst_32 : f32 to vector<8x16x64xf32>
    %45 = arith.maximumf %43, %44 : vector<8x16x64xf32>
    %46 = vector.shape_cast %45 : vector<8x16x64xf32> to vector<128x64xf32>
    %cst_33 = arith.constant dense<0.000000e+00> : vector<128x64xf32>
    %47 = tpu.matmul %0, %46, %cst_33 {dimension_numbers = #tpu.dot_dimension_numbers<[1], [0], [0], [1], [0, 0, 1, 1], [], []>} : vector<128x128xf32>, vector<128x64xf32>, vector<128x64xf32> -> vector<128x64xf32>
    %c0_34 = arith.constant 0 : index
    %c0_35 = arith.constant 0 : index
    %48 = vector.load %arg11[%c0_34, %c0_35] : memref<64x128xf32, #tpu.memory_space<vmem>>, vector<64x128xf32>
    %cst_36 = arith.constant dense<0.000000e+00> : vector<128x128xf32>
    %49 = tpu.matmul %47, %48, %cst_36 {dimension_numbers = #tpu.dot_dimension_numbers<[1], [0], [0], [1], [0, 0, 1, 1], [], []>} : vector<128x64xf32>, vector<64x128xf32>, vector<128x128xf32> -> vector<128x128xf32>
    %c0_37 = arith.constant 0 : index
    %c0_38 = arith.constant 0 : index
    %50 = vector.load %arg12[%c0_37, %c0_38] : memref<1x128xf32, #tpu.memory_space<vmem>>, vector<1x128xf32>
    %51 = vector.broadcast %50 : vector<1x128xf32> to vector<128x128xf32>
    %52 = arith.addf %49, %51 : vector<128x128xf32>
    %cst_39 = arith.constant 0.000000e+00 : f32
    %53 = vector.broadcast %cst_39 : f32 to vector<128x128xf32>
    %54 = arith.maximumf %52, %53 : vector<128x128xf32>
    %55 = vector.shape_cast %54 : vector<128x128xf32> to vector<8x16x128xf32>
    %cst_40 = arith.constant dense<0.000000e+00> : vector<8x128xf32>
    %56 = vector.multi_reduction <add>, %55, %cst_40 [1] : vector<8x16x128xf32> to vector<8x128xf32>
    %cst_41 = arith.constant 1.600000e+01 : f32
    %57 = vector.broadcast %cst_41 : f32 to vector<8x128xf32>
    %58 = arith.divf %56, %57 : vector<8x128xf32>
    %cst_42 = arith.constant dense<0xFF800000> : vector<8x128xf32>
    %59 = vector.multi_reduction <maximumf>, %55, %cst_42 [1] : vector<8x16x128xf32> to vector<8x128xf32>
    %60 = arith.addf %58, %59 : vector<8x128xf32>
    %c0_43 = arith.constant 0 : index
    %c0_44 = arith.constant 0 : index
    %61 = vector.load %arg13[%c0_43, %c0_44] : memref<128x16xf32, #tpu.memory_space<vmem>>, vector<128x16xf32>
    %cst_45 = arith.constant dense<0.000000e+00> : vector<8x16xf32>
    %62 = tpu.matmul %60, %61, %cst_45 {dimension_numbers = #tpu.dot_dimension_numbers<[1], [0], [0], [1], [0, 0, 1, 1], [], []>} : vector<8x128xf32>, vector<128x16xf32>, vector<8x16xf32> -> vector<8x16xf32>
    %c0_46 = arith.constant 0 : index
    %c0_47 = arith.constant 0 : index
    %63 = vector.load %arg14[%c0_46, %c0_47] : memref<1x16xf32, #tpu.memory_space<vmem>>, vector<1x16xf32>
    %64 = vector.broadcast %63 : vector<1x16xf32> to vector<8x16xf32>
    %65 = arith.addf %62, %64 : vector<8x16xf32>
    %cst_48 = arith.constant 0.000000e+00 : f32
    %66 = vector.broadcast %cst_48 : f32 to vector<8x16xf32>
    %67 = arith.maximumf %65, %66 : vector<8x16xf32>
    %c0_49 = arith.constant 0 : index
    %c0_50 = arith.constant 0 : index
    %68 = vector.load %arg15[%c0_49, %c0_50] : memref<16x128xf32, #tpu.memory_space<vmem>>, vector<16x128xf32>
    %cst_51 = arith.constant dense<0.000000e+00> : vector<8x128xf32>
    %69 = tpu.matmul %67, %68, %cst_51 {dimension_numbers = #tpu.dot_dimension_numbers<[1], [0], [0], [1], [0, 0, 1, 1], [], []>} : vector<8x16xf32>, vector<16x128xf32>, vector<8x128xf32> -> vector<8x128xf32>
    %c0_52 = arith.constant 0 : index
    %c0_53 = arith.constant 0 : index
    %70 = vector.load %arg16[%c0_52, %c0_53] : memref<1x128xf32, #tpu.memory_space<vmem>>, vector<1x128xf32>
    %71 = vector.broadcast %70 : vector<1x128xf32> to vector<8x128xf32>
    %72 = arith.addf %69, %71 : vector<8x128xf32>
    %73 = arith.negf %72 : vector<8x128xf32>
    %74 = math.exp %73 : vector<8x128xf32>
    %cst_54 = arith.constant 1.000000e+00 : f32
    %75 = vector.broadcast %cst_54 : f32 to vector<8x128xf32>
    %76 = arith.addf %75, %74 : vector<8x128xf32>
    %77 = arith.divf %75, %76 : vector<8x128xf32>
    %78 = vector.shape_cast %77 : vector<8x128xf32> to vector<8x1x128xf32>
    %79 = vector.broadcast %78 : vector<8x1x128xf32> to vector<8x16x128xf32>
    %80 = arith.mulf %55, %79 : vector<8x16x128xf32>
    %cst_55 = arith.constant 0.000000e+00 : f32
    %81 = vector.broadcast %cst_55 : f32 to vector<8x16x128xf32>
    %82 = arith.maximumf %80, %81 : vector<8x16x128xf32>
    %83 = vector.shape_cast %82 : vector<8x16x128xf32> to vector<128x128xf32>
    %cst_56 = arith.constant dense<0.000000e+00> : vector<128x128xf32>
    %84 = tpu.matmul %0, %83, %cst_56 {dimension_numbers = #tpu.dot_dimension_numbers<[1], [0], [0], [1], [0, 0, 1, 1], [], []>} : vector<128x128xf32>, vector<128x128xf32>, vector<128x128xf32> -> vector<128x128xf32>
    %c0_57 = arith.constant 0 : index
    %c0_58 = arith.constant 0 : index
    %85 = vector.load %arg17[%c0_57, %c0_58] : memref<128x256xf32, #tpu.memory_space<vmem>>, vector<128x256xf32>
    %cst_59 = arith.constant dense<0.000000e+00> : vector<128x256xf32>
    %86 = tpu.matmul %84, %85, %cst_59 {dimension_numbers = #tpu.dot_dimension_numbers<[1], [0], [0], [1], [0, 0, 1, 1], [], []>} : vector<128x128xf32>, vector<128x256xf32>, vector<128x256xf32> -> vector<128x256xf32>
    %c0_60 = arith.constant 0 : index
    %c0_61 = arith.constant 0 : index
    %87 = vector.load %arg18[%c0_60, %c0_61] : memref<1x256xf32, #tpu.memory_space<vmem>>, vector<1x256xf32>
    %88 = vector.broadcast %87 : vector<1x256xf32> to vector<128x256xf32>
    %89 = arith.addf %86, %88 : vector<128x256xf32>
    %cst_62 = arith.constant 0.000000e+00 : f32
    %90 = vector.broadcast %cst_62 : f32 to vector<128x256xf32>
    %91 = arith.maximumf %89, %90 : vector<128x256xf32>
    %92 = vector.shape_cast %91 : vector<128x256xf32> to vector<8x16x256xf32>
    %cst_63 = arith.constant dense<0.000000e+00> : vector<8x256xf32>
    %93 = vector.multi_reduction <add>, %92, %cst_63 [1] : vector<8x16x256xf32> to vector<8x256xf32>
    %cst_64 = arith.constant 1.600000e+01 : f32
    %94 = vector.broadcast %cst_64 : f32 to vector<8x256xf32>
    %95 = arith.divf %93, %94 : vector<8x256xf32>
    %cst_65 = arith.constant dense<0xFF800000> : vector<8x256xf32>
    %96 = vector.multi_reduction <maximumf>, %92, %cst_65 [1] : vector<8x16x256xf32> to vector<8x256xf32>
    %97 = arith.addf %95, %96 : vector<8x256xf32>
    %c0_66 = arith.constant 0 : index
    %c0_67 = arith.constant 0 : index
    %98 = vector.load %arg19[%c0_66, %c0_67] : memref<256x32xf32, #tpu.memory_space<vmem>>, vector<256x32xf32>
    %cst_68 = arith.constant dense<0.000000e+00> : vector<8x32xf32>
    %99 = tpu.matmul %97, %98, %cst_68 {dimension_numbers = #tpu.dot_dimension_numbers<[1], [0], [0], [1], [0, 0, 1, 1], [], []>} : vector<8x256xf32>, vector<256x32xf32>, vector<8x32xf32> -> vector<8x32xf32>
    %c0_69 = arith.constant 0 : index
    %c0_70 = arith.constant 0 : index
    %100 = vector.load %arg20[%c0_69, %c0_70] : memref<1x32xf32, #tpu.memory_space<vmem>>, vector<1x32xf32>
    %101 = vector.broadcast %100 : vector<1x32xf32> to vector<8x32xf32>
    %102 = arith.addf %99, %101 : vector<8x32xf32>
    %cst_71 = arith.constant 0.000000e+00 : f32
    %103 = vector.broadcast %cst_71 : f32 to vector<8x32xf32>
    %104 = arith.maximumf %102, %103 : vector<8x32xf32>
    %c0_72 = arith.constant 0 : index
    %c0_73 = arith.constant 0 : index
    %105 = vector.load %arg21[%c0_72, %c0_73] : memref<32x256xf32, #tpu.memory_space<vmem>>, vector<32x256xf32>
    %cst_74 = arith.constant dense<0.000000e+00> : vector<8x256xf32>
    %106 = tpu.matmul %104, %105, %cst_74 {dimension_numbers = #tpu.dot_dimension_numbers<[1], [0], [0], [1], [0, 0, 1, 1], [], []>} : vector<8x32xf32>, vector<32x256xf32>, vector<8x256xf32> -> vector<8x256xf32>
    %c0_75 = arith.constant 0 : index
    %c0_76 = arith.constant 0 : index
    %107 = vector.load %arg22[%c0_75, %c0_76] : memref<1x256xf32, #tpu.memory_space<vmem>>, vector<1x256xf32>
    %108 = vector.broadcast %107 : vector<1x256xf32> to vector<8x256xf32>
    %109 = arith.addf %106, %108 : vector<8x256xf32>
    %110 = arith.negf %109 : vector<8x256xf32>
    %111 = math.exp %110 : vector<8x256xf32>
    %cst_77 = arith.constant 1.000000e+00 : f32
    %112 = vector.broadcast %cst_77 : f32 to vector<8x256xf32>
    %113 = arith.addf %112, %111 : vector<8x256xf32>
    %114 = arith.divf %112, %113 : vector<8x256xf32>
    %115 = vector.shape_cast %114 : vector<8x256xf32> to vector<8x1x256xf32>
    %116 = vector.broadcast %115 : vector<8x1x256xf32> to vector<8x16x256xf32>
    %117 = arith.mulf %92, %116 : vector<8x16x256xf32>
    %cst_78 = arith.constant 0.000000e+00 : f32
    %118 = vector.broadcast %cst_78 : f32 to vector<8x16x256xf32>
    %119 = arith.maximumf %117, %118 : vector<8x16x256xf32>
    %120 = vector.shape_cast %119 : vector<8x16x256xf32> to vector<128x256xf32>
    %cst_79 = arith.constant dense<0.000000e+00> : vector<256xf32>
    %121 = vector.multi_reduction <add>, %120, %cst_79 [0] : vector<128x256xf32> to vector<256xf32>
    %122 = vector.shape_cast %121 : vector<256xf32> to vector<1x256xf32>
    %cst_80 = arith.constant 1.280000e+02 : f32
    %123 = vector.broadcast %cst_80 : f32 to vector<1x256xf32>
    %124 = arith.divf %122, %123 : vector<1x256xf32>
    %c0_81 = arith.constant 0 : index
    %c0_82 = arith.constant 0 : index
    %c0_83 = arith.constant 0 : index
    %125 = vector.load %arg23[%c0_81, %c0_82, %c0_83] : memref<2x256x10xf32, #tpu.memory_space<vmem>>, vector<1x256x10xf32>
    %126 = vector.shape_cast %125 : vector<1x256x10xf32> to vector<256x10xf32>
    %cst_84 = arith.constant dense<0.000000e+00> : vector<1x10xf32>
    %127 = tpu.matmul %124, %126, %cst_84 {dimension_numbers = #tpu.dot_dimension_numbers<[1], [0], [0], [1], [0, 0, 1, 1], [], []>} : vector<1x256xf32>, vector<256x10xf32>, vector<1x10xf32> -> vector<1x10xf32>
    %128 = arith.addf %1, %127 : vector<1x10xf32>
    %c0_85 = arith.constant 0 : index
    %c1 = arith.constant 1 : index
    %c0_86 = arith.constant 0 : index
    %c0_87 = arith.constant 0 : index
    %129 = vector.load %arg1[%c0_85, %c1, %c0_86, %c0_87] : memref<1x2x128x3xf32, #tpu.memory_space<vmem>>, vector<1x1x128x3xf32>
    %130 = vector.shape_cast %129 : vector<1x1x128x3xf32> to vector<128x3xf32>
    %c0_88 = arith.constant 0 : index
    %c0_89 = arith.constant 0 : index
    %131 = vector.load %arg2[%c0_88, %c0_89] : memref<1x3xf32, #tpu.memory_space<vmem>>, vector<1x3xf32>
    %132 = vector.broadcast %131 : vector<1x3xf32> to vector<128x3xf32>
    %133 = arith.mulf %130, %132 : vector<128x3xf32>
    %c0_90 = arith.constant 0 : index
    %c0_91 = arith.constant 0 : index
    %134 = vector.load %arg3[%c0_90, %c0_91] : memref<1x3xf32, #tpu.memory_space<vmem>>, vector<1x3xf32>
    %135 = vector.broadcast %134 : vector<1x3xf32> to vector<128x3xf32>
    %136 = arith.addf %133, %135 : vector<128x3xf32>
    %cst_92 = arith.constant dense<0.000000e+00> : vector<128x3xf32>
    %137 = tpu.matmul %0, %136, %cst_92 {dimension_numbers = #tpu.dot_dimension_numbers<[1], [0], [0], [1], [0, 0, 1, 1], [], []>} : vector<128x128xf32>, vector<128x3xf32>, vector<128x3xf32> -> vector<128x3xf32>
    %c0_93 = arith.constant 0 : index
    %c0_94 = arith.constant 0 : index
    %138 = vector.load %arg5[%c0_93, %c0_94] : memref<3x64xf32, #tpu.memory_space<vmem>>, vector<3x64xf32>
    %cst_95 = arith.constant dense<0.000000e+00> : vector<128x64xf32>
    %139 = tpu.matmul %137, %138, %cst_95 {dimension_numbers = #tpu.dot_dimension_numbers<[1], [0], [0], [1], [0, 0, 1, 1], [], []>} : vector<128x3xf32>, vector<3x64xf32>, vector<128x64xf32> -> vector<128x64xf32>
    %c0_96 = arith.constant 0 : index
    %c0_97 = arith.constant 0 : index
    %140 = vector.load %arg6[%c0_96, %c0_97] : memref<1x64xf32, #tpu.memory_space<vmem>>, vector<1x64xf32>
    %141 = vector.broadcast %140 : vector<1x64xf32> to vector<128x64xf32>
    %142 = arith.addf %139, %141 : vector<128x64xf32>
    %cst_98 = arith.constant 0.000000e+00 : f32
    %143 = vector.broadcast %cst_98 : f32 to vector<128x64xf32>
    %144 = arith.maximumf %142, %143 : vector<128x64xf32>
    %145 = vector.shape_cast %144 : vector<128x64xf32> to vector<8x16x64xf32>
    %cst_99 = arith.constant dense<0.000000e+00> : vector<8x64xf32>
    %146 = vector.multi_reduction <add>, %145, %cst_99 [1] : vector<8x16x64xf32> to vector<8x64xf32>
    %cst_100 = arith.constant 1.600000e+01 : f32
    %147 = vector.broadcast %cst_100 : f32 to vector<8x64xf32>
    %148 = arith.divf %146, %147 : vector<8x64xf32>
    %cst_101 = arith.constant dense<0xFF800000> : vector<8x64xf32>
    %149 = vector.multi_reduction <maximumf>, %145, %cst_101 [1] : vector<8x16x64xf32> to vector<8x64xf32>
    %150 = arith.addf %148, %149 : vector<8x64xf32>
    %c0_102 = arith.constant 0 : index
    %c0_103 = arith.constant 0 : index
    %151 = vector.load %arg7[%c0_102, %c0_103] : memref<64x8xf32, #tpu.memory_space<vmem>>, vector<64x8xf32>
    %cst_104 = arith.constant dense<0.000000e+00> : vector<8x8xf32>
    %152 = tpu.matmul %150, %151, %cst_104 {dimension_numbers = #tpu.dot_dimension_numbers<[1], [0], [0], [1], [0, 0, 1, 1], [], []>} : vector<8x64xf32>, vector<64x8xf32>, vector<8x8xf32> -> vector<8x8xf32>
    %c0_105 = arith.constant 0 : index
    %c0_106 = arith.constant 0 : index
    %153 = vector.load %arg8[%c0_105, %c0_106] : memref<1x8xf32, #tpu.memory_space<vmem>>, vector<1x8xf32>
    %154 = vector.broadcast %153 : vector<1x8xf32> to vector<8x8xf32>
    %155 = arith.addf %152, %154 : vector<8x8xf32>
    %cst_107 = arith.constant 0.000000e+00 : f32
    %156 = vector.broadcast %cst_107 : f32 to vector<8x8xf32>
    %157 = arith.maximumf %155, %156 : vector<8x8xf32>
    %c0_108 = arith.constant 0 : index
    %c0_109 = arith.constant 0 : index
    %158 = vector.load %arg9[%c0_108, %c0_109] : memref<8x64xf32, #tpu.memory_space<vmem>>, vector<8x64xf32>
    %cst_110 = arith.constant dense<0.000000e+00> : vector<8x64xf32>
    %159 = tpu.matmul %157, %158, %cst_110 {dimension_numbers = #tpu.dot_dimension_numbers<[1], [0], [0], [1], [0, 0, 1, 1], [], []>} : vector<8x8xf32>, vector<8x64xf32>, vector<8x64xf32> -> vector<8x64xf32>
    %c0_111 = arith.constant 0 : index
    %c0_112 = arith.constant 0 : index
    %160 = vector.load %arg10[%c0_111, %c0_112] : memref<1x64xf32, #tpu.memory_space<vmem>>, vector<1x64xf32>
    %161 = vector.broadcast %160 : vector<1x64xf32> to vector<8x64xf32>
    %162 = arith.addf %159, %161 : vector<8x64xf32>
    %163 = arith.negf %162 : vector<8x64xf32>
    %164 = math.exp %163 : vector<8x64xf32>
    %cst_113 = arith.constant 1.000000e+00 : f32
    %165 = vector.broadcast %cst_113 : f32 to vector<8x64xf32>
    %166 = arith.addf %165, %164 : vector<8x64xf32>
    %167 = arith.divf %165, %166 : vector<8x64xf32>
    %168 = vector.shape_cast %167 : vector<8x64xf32> to vector<8x1x64xf32>
    %169 = vector.broadcast %168 : vector<8x1x64xf32> to vector<8x16x64xf32>
    %170 = arith.mulf %145, %169 : vector<8x16x64xf32>
    %cst_114 = arith.constant 0.000000e+00 : f32
    %171 = vector.broadcast %cst_114 : f32 to vector<8x16x64xf32>
    %172 = arith.maximumf %170, %171 : vector<8x16x64xf32>
    %173 = vector.shape_cast %172 : vector<8x16x64xf32> to vector<128x64xf32>
    %cst_115 = arith.constant dense<0.000000e+00> : vector<128x64xf32>
    %174 = tpu.matmul %0, %173, %cst_115 {dimension_numbers = #tpu.dot_dimension_numbers<[1], [0], [0], [1], [0, 0, 1, 1], [], []>} : vector<128x128xf32>, vector<128x64xf32>, vector<128x64xf32> -> vector<128x64xf32>
    %c0_116 = arith.constant 0 : index
    %c0_117 = arith.constant 0 : index
    %175 = vector.load %arg11[%c0_116, %c0_117] : memref<64x128xf32, #tpu.memory_space<vmem>>, vector<64x128xf32>
    %cst_118 = arith.constant dense<0.000000e+00> : vector<128x128xf32>
    %176 = tpu.matmul %174, %175, %cst_118 {dimension_numbers = #tpu.dot_dimension_numbers<[1], [0], [0], [1], [0, 0, 1, 1], [], []>} : vector<128x64xf32>, vector<64x128xf32>, vector<128x128xf32> -> vector<128x128xf32>
    %c0_119 = arith.constant 0 : index
    %c0_120 = arith.constant 0 : index
    %177 = vector.load %arg12[%c0_119, %c0_120] : memref<1x128xf32, #tpu.memory_space<vmem>>, vector<1x128xf32>
    %178 = vector.broadcast %177 : vector<1x128xf32> to vector<128x128xf32>
    %179 = arith.addf %176, %178 : vector<128x128xf32>
    %cst_121 = arith.constant 0.000000e+00 : f32
    %180 = vector.broadcast %cst_121 : f32 to vector<128x128xf32>
    %181 = arith.maximumf %179, %180 : vector<128x128xf32>
    %182 = vector.shape_cast %181 : vector<128x128xf32> to vector<8x16x128xf32>
    %cst_122 = arith.constant dense<0.000000e+00> : vector<8x128xf32>
    %183 = vector.multi_reduction <add>, %182, %cst_122 [1] : vector<8x16x128xf32> to vector<8x128xf32>
    %cst_123 = arith.constant 1.600000e+01 : f32
    %184 = vector.broadcast %cst_123 : f32 to vector<8x128xf32>
    %185 = arith.divf %183, %184 : vector<8x128xf32>
    %cst_124 = arith.constant dense<0xFF800000> : vector<8x128xf32>
    %186 = vector.multi_reduction <maximumf>, %182, %cst_124 [1] : vector<8x16x128xf32> to vector<8x128xf32>
    %187 = arith.addf %185, %186 : vector<8x128xf32>
    %c0_125 = arith.constant 0 : index
    %c0_126 = arith.constant 0 : index
    %188 = vector.load %arg13[%c0_125, %c0_126] : memref<128x16xf32, #tpu.memory_space<vmem>>, vector<128x16xf32>
    %cst_127 = arith.constant dense<0.000000e+00> : vector<8x16xf32>
    %189 = tpu.matmul %187, %188, %cst_127 {dimension_numbers = #tpu.dot_dimension_numbers<[1], [0], [0], [1], [0, 0, 1, 1], [], []>} : vector<8x128xf32>, vector<128x16xf32>, vector<8x16xf32> -> vector<8x16xf32>
    %c0_128 = arith.constant 0 : index
    %c0_129 = arith.constant 0 : index
    %190 = vector.load %arg14[%c0_128, %c0_129] : memref<1x16xf32, #tpu.memory_space<vmem>>, vector<1x16xf32>
    %191 = vector.broadcast %190 : vector<1x16xf32> to vector<8x16xf32>
    %192 = arith.addf %189, %191 : vector<8x16xf32>
    %cst_130 = arith.constant 0.000000e+00 : f32
    %193 = vector.broadcast %cst_130 : f32 to vector<8x16xf32>
    %194 = arith.maximumf %192, %193 : vector<8x16xf32>
    %c0_131 = arith.constant 0 : index
    %c0_132 = arith.constant 0 : index
    %195 = vector.load %arg15[%c0_131, %c0_132] : memref<16x128xf32, #tpu.memory_space<vmem>>, vector<16x128xf32>
    %cst_133 = arith.constant dense<0.000000e+00> : vector<8x128xf32>
    %196 = tpu.matmul %194, %195, %cst_133 {dimension_numbers = #tpu.dot_dimension_numbers<[1], [0], [0], [1], [0, 0, 1, 1], [], []>} : vector<8x16xf32>, vector<16x128xf32>, vector<8x128xf32> -> vector<8x128xf32>
    %c0_134 = arith.constant 0 : index
    %c0_135 = arith.constant 0 : index
    %197 = vector.load %arg16[%c0_134, %c0_135] : memref<1x128xf32, #tpu.memory_space<vmem>>, vector<1x128xf32>
    %198 = vector.broadcast %197 : vector<1x128xf32> to vector<8x128xf32>
    %199 = arith.addf %196, %198 : vector<8x128xf32>
    %200 = arith.negf %199 : vector<8x128xf32>
    %201 = math.exp %200 : vector<8x128xf32>
    %cst_136 = arith.constant 1.000000e+00 : f32
    %202 = vector.broadcast %cst_136 : f32 to vector<8x128xf32>
    %203 = arith.addf %202, %201 : vector<8x128xf32>
    %204 = arith.divf %202, %203 : vector<8x128xf32>
    %205 = vector.shape_cast %204 : vector<8x128xf32> to vector<8x1x128xf32>
    %206 = vector.broadcast %205 : vector<8x1x128xf32> to vector<8x16x128xf32>
    %207 = arith.mulf %182, %206 : vector<8x16x128xf32>
    %cst_137 = arith.constant 0.000000e+00 : f32
    %208 = vector.broadcast %cst_137 : f32 to vector<8x16x128xf32>
    %209 = arith.maximumf %207, %208 : vector<8x16x128xf32>
    %210 = vector.shape_cast %209 : vector<8x16x128xf32> to vector<128x128xf32>
    %cst_138 = arith.constant dense<0.000000e+00> : vector<128x128xf32>
    %211 = tpu.matmul %0, %210, %cst_138 {dimension_numbers = #tpu.dot_dimension_numbers<[1], [0], [0], [1], [0, 0, 1, 1], [], []>} : vector<128x128xf32>, vector<128x128xf32>, vector<128x128xf32> -> vector<128x128xf32>
    %c0_139 = arith.constant 0 : index
    %c0_140 = arith.constant 0 : index
    %212 = vector.load %arg17[%c0_139, %c0_140] : memref<128x256xf32, #tpu.memory_space<vmem>>, vector<128x256xf32>
    %cst_141 = arith.constant dense<0.000000e+00> : vector<128x256xf32>
    %213 = tpu.matmul %211, %212, %cst_141 {dimension_numbers = #tpu.dot_dimension_numbers<[1], [0], [0], [1], [0, 0, 1, 1], [], []>} : vector<128x128xf32>, vector<128x256xf32>, vector<128x256xf32> -> vector<128x256xf32>
    %c0_142 = arith.constant 0 : index
    %c0_143 = arith.constant 0 : index
    %214 = vector.load %arg18[%c0_142, %c0_143] : memref<1x256xf32, #tpu.memory_space<vmem>>, vector<1x256xf32>
    %215 = vector.broadcast %214 : vector<1x256xf32> to vector<128x256xf32>
    %216 = arith.addf %213, %215 : vector<128x256xf32>
    %cst_144 = arith.constant 0.000000e+00 : f32
    %217 = vector.broadcast %cst_144 : f32 to vector<128x256xf32>
    %218 = arith.maximumf %216, %217 : vector<128x256xf32>
    %219 = vector.shape_cast %218 : vector<128x256xf32> to vector<8x16x256xf32>
    %cst_145 = arith.constant dense<0.000000e+00> : vector<8x256xf32>
    %220 = vector.multi_reduction <add>, %219, %cst_145 [1] : vector<8x16x256xf32> to vector<8x256xf32>
    %cst_146 = arith.constant 1.600000e+01 : f32
    %221 = vector.broadcast %cst_146 : f32 to vector<8x256xf32>
    %222 = arith.divf %220, %221 : vector<8x256xf32>
    %cst_147 = arith.constant dense<0xFF800000> : vector<8x256xf32>
    %223 = vector.multi_reduction <maximumf>, %219, %cst_147 [1] : vector<8x16x256xf32> to vector<8x256xf32>
    %224 = arith.addf %222, %223 : vector<8x256xf32>
    %c0_148 = arith.constant 0 : index
    %c0_149 = arith.constant 0 : index
    %225 = vector.load %arg19[%c0_148, %c0_149] : memref<256x32xf32, #tpu.memory_space<vmem>>, vector<256x32xf32>
    %cst_150 = arith.constant dense<0.000000e+00> : vector<8x32xf32>
    %226 = tpu.matmul %224, %225, %cst_150 {dimension_numbers = #tpu.dot_dimension_numbers<[1], [0], [0], [1], [0, 0, 1, 1], [], []>} : vector<8x256xf32>, vector<256x32xf32>, vector<8x32xf32> -> vector<8x32xf32>
    %c0_151 = arith.constant 0 : index
    %c0_152 = arith.constant 0 : index
    %227 = vector.load %arg20[%c0_151, %c0_152] : memref<1x32xf32, #tpu.memory_space<vmem>>, vector<1x32xf32>
    %228 = vector.broadcast %227 : vector<1x32xf32> to vector<8x32xf32>
    %229 = arith.addf %226, %228 : vector<8x32xf32>
    %cst_153 = arith.constant 0.000000e+00 : f32
    %230 = vector.broadcast %cst_153 : f32 to vector<8x32xf32>
    %231 = arith.maximumf %229, %230 : vector<8x32xf32>
    %c0_154 = arith.constant 0 : index
    %c0_155 = arith.constant 0 : index
    %232 = vector.load %arg21[%c0_154, %c0_155] : memref<32x256xf32, #tpu.memory_space<vmem>>, vector<32x256xf32>
    %cst_156 = arith.constant dense<0.000000e+00> : vector<8x256xf32>
    %233 = tpu.matmul %231, %232, %cst_156 {dimension_numbers = #tpu.dot_dimension_numbers<[1], [0], [0], [1], [0, 0, 1, 1], [], []>} : vector<8x32xf32>, vector<32x256xf32>, vector<8x256xf32> -> vector<8x256xf32>
    %c0_157 = arith.constant 0 : index
    %c0_158 = arith.constant 0 : index
    %234 = vector.load %arg22[%c0_157, %c0_158] : memref<1x256xf32, #tpu.memory_space<vmem>>, vector<1x256xf32>
    %235 = vector.broadcast %234 : vector<1x256xf32> to vector<8x256xf32>
    %236 = arith.addf %233, %235 : vector<8x256xf32>
    %237 = arith.negf %236 : vector<8x256xf32>
    %238 = math.exp %237 : vector<8x256xf32>
    %cst_159 = arith.constant 1.000000e+00 : f32
    %239 = vector.broadcast %cst_159 : f32 to vector<8x256xf32>
    %240 = arith.addf %239, %238 : vector<8x256xf32>
    %241 = arith.divf %239, %240 : vector<8x256xf32>
    %242 = vector.shape_cast %241 : vector<8x256xf32> to vector<8x1x256xf32>
    %243 = vector.broadcast %242 : vector<8x1x256xf32> to vector<8x16x256xf32>
    %244 = arith.mulf %219, %243 : vector<8x16x256xf32>
    %cst_160 = arith.constant 0.000000e+00 : f32
    %245 = vector.broadcast %cst_160 : f32 to vector<8x16x256xf32>
    %246 = arith.maximumf %244, %245 : vector<8x16x256xf32>
    %247 = vector.shape_cast %246 : vector<8x16x256xf32> to vector<128x256xf32>
    %cst_161 = arith.constant dense<0.000000e+00> : vector<256xf32>
    %248 = vector.multi_reduction <add>, %247, %cst_161 [0] : vector<128x256xf32> to vector<256xf32>
    %249 = vector.shape_cast %248 : vector<256xf32> to vector<1x256xf32>
    %cst_162 = arith.constant 1.280000e+02 : f32
    %250 = vector.broadcast %cst_162 : f32 to vector<1x256xf32>
    %251 = arith.divf %249, %250 : vector<1x256xf32>
    %c1_163 = arith.constant 1 : index
    %c0_164 = arith.constant 0 : index
    %c0_165 = arith.constant 0 : index
    %252 = vector.load %arg23[%c1_163, %c0_164, %c0_165] : memref<2x256x10xf32, #tpu.memory_space<vmem>>, vector<1x256x10xf32>
    %253 = vector.shape_cast %252 : vector<1x256x10xf32> to vector<256x10xf32>
    %cst_166 = arith.constant dense<0.000000e+00> : vector<1x10xf32>
    %254 = tpu.matmul %251, %253, %cst_166 {dimension_numbers = #tpu.dot_dimension_numbers<[1], [0], [0], [1], [0, 0, 1, 1], [], []>} : vector<1x256xf32>, vector<256x10xf32>, vector<1x10xf32> -> vector<1x10xf32>
    %255 = arith.addf %128, %254 : vector<1x10xf32>
    %c0_167 = arith.constant 0 : index
    %c0_168 = arith.constant 0 : index
    %c0_169 = arith.constant 0 : index
    %256 = vector.load %arg25[%c0_167, %c0_168, %c0_169] : memref<1x1x10xf32, #tpu.memory_space<vmem>>, vector<1x1x10xf32>
    %257 = vector.shape_cast %256 : vector<1x1x10xf32> to vector<1x10xf32>
    %258 = vector.shape_cast %255 : vector<1x10xf32> to vector<1x1x10xf32>
    tpu.vector_store %arg25[%c0_167, %c0_168, %c0_169], %258 {strides = array<i32>} : memref<1x1x10xf32, #tpu.memory_space<vmem>>, vector<1x1x10xf32>,
    return
  }
  func.func @transform_0(%arg0: i32) -> (i32, i32, i32, i32) {
    %c0_i32 = arith.constant 0 : i32
    %c0_i32_0 = arith.constant 0 : i32
    %c0_i32_1 = arith.constant 0 : i32
    %c0_i32_2 = arith.constant 0 : i32
    return %arg0, %c0_i32, %c0_i32_0, %c0_i32_1 : i32, i32, i32, i32
  }
  func.func @transform_1(%arg0: i32) -> (i32, i32) {
    %c0_i32 = arith.constant 0 : i32
    %c0_i32_0 = arith.constant 0 : i32
    %c0_i32_1 = arith.constant 0 : i32
    return %c0_i32, %c0_i32_0 : i32, i32
  }
  func.func @transform_2(%arg0: i32) -> (i32, i32) {
    %c0_i32 = arith.constant 0 : i32
    %c0_i32_0 = arith.constant 0 : i32
    %c0_i32_1 = arith.constant 0 : i32
    return %c0_i32, %c0_i32_0 : i32, i32
  }
  func.func @transform_3(%arg0: i32) -> (i32, i32) {
    %c0_i32 = arith.constant 0 : i32
    %c0_i32_0 = arith.constant 0 : i32
    %c0_i32_1 = arith.constant 0 : i32
    return %c0_i32, %c0_i32_0 : i32, i32
  }
  func.func @transform_4(%arg0: i32) -> (i32, i32) {
    %c0_i32 = arith.constant 0 : i32
    %c0_i32_0 = arith.constant 0 : i32
    %c0_i32_1 = arith.constant 0 : i32
    return %c0_i32, %c0_i32_0 : i32, i32
  }
  func.func @transform_5(%arg0: i32) -> (i32, i32) {
    %c0_i32 = arith.constant 0 : i32
    %c0_i32_0 = arith.constant 0 : i32
    %c0_i32_1 = arith.constant 0 : i32
    return %c0_i32, %c0_i32_0 : i32, i32
  }
  func.func @transform_6(%arg0: i32) -> (i32, i32) {
    %c0_i32 = arith.constant 0 : i32
    %c0_i32_0 = arith.constant 0 : i32
    %c0_i32_1 = arith.constant 0 : i32
    return %c0_i32, %c0_i32_0 : i32, i32
  }
  func.func @transform_7(%arg0: i32) -> (i32, i32) {
    %c0_i32 = arith.constant 0 : i32
    %c0_i32_0 = arith.constant 0 : i32
    %c0_i32_1 = arith.constant 0 : i32
    return %c0_i32, %c0_i32_0 : i32, i32
  }
  func.func @transform_8(%arg0: i32) -> (i32, i32) {
    %c0_i32 = arith.constant 0 : i32
    %c0_i32_0 = arith.constant 0 : i32
    %c0_i32_1 = arith.constant 0 : i32
    return %c0_i32, %c0_i32_0 : i32, i32
  }
  func.func @transform_9(%arg0: i32) -> (i32, i32) {
    %c0_i32 = arith.constant 0 : i32
    %c0_i32_0 = arith.constant 0 : i32
    %c0_i32_1 = arith.constant 0 : i32
    return %c0_i32, %c0_i32_0 : i32, i32
  }
  func.func @transform_10(%arg0: i32) -> (i32, i32) {
    %c0_i32 = arith.constant 0 : i32
    %c0_i32_0 = arith.constant 0 : i32
    %c0_i32_1 = arith.constant 0 : i32
    return %c0_i32, %c0_i32_0 : i32, i32
  }
  func.func @transform_11(%arg0: i32) -> (i32, i32) {
    %c0_i32 = arith.constant 0 : i32
    %c0_i32_0 = arith.constant 0 : i32
    %c0_i32_1 = arith.constant 0 : i32
    return %c0_i32, %c0_i32_0 : i32, i32
  }
  func.func @transform_12(%arg0: i32) -> (i32, i32) {
    %c0_i32 = arith.constant 0 : i32
    %c0_i32_0 = arith.constant 0 : i32
    %c0_i32_1 = arith.constant 0 : i32
    return %c0_i32, %c0_i32_0 : i32, i32
  }
  func.func @transform_13(%arg0: i32) -> (i32, i32) {
    %c0_i32 = arith.constant 0 : i32
    %c0_i32_0 = arith.constant 0 : i32
    %c0_i32_1 = arith.constant 0 : i32
    return %c0_i32, %c0_i32_0 : i32, i32
  }
  func.func @transform_14(%arg0: i32) -> (i32, i32) {
    %c0_i32 = arith.constant 0 : i32
    %c0_i32_0 = arith.constant 0 : i32
    %c0_i32_1 = arith.constant 0 : i32
    return %c0_i32, %c0_i32_0 : i32, i32
  }
  func.func @transform_15(%arg0: i32) -> (i32, i32) {
    %c0_i32 = arith.constant 0 : i32
    %c0_i32_0 = arith.constant 0 : i32
    %c0_i32_1 = arith.constant 0 : i32
    return %c0_i32, %c0_i32_0 : i32, i32
  }
  func.func @transform_16(%arg0: i32) -> (i32, i32) {
    %c0_i32 = arith.constant 0 : i32
    %c0_i32_0 = arith.constant 0 : i32
    %c0_i32_1 = arith.constant 0 : i32
    return %c0_i32, %c0_i32_0 : i32, i32
  }
  func.func @transform_17(%arg0: i32) -> (i32, i32) {
    %c0_i32 = arith.constant 0 : i32
    %c0_i32_0 = arith.constant 0 : i32
    %c0_i32_1 = arith.constant 0 : i32
    return %c0_i32, %c0_i32_0 : i32, i32
  }
  func.func @transform_18(%arg0: i32) -> (i32, i32) {
    %c0_i32 = arith.constant 0 : i32
    %c0_i32_0 = arith.constant 0 : i32
    %c0_i32_1 = arith.constant 0 : i32
    return %c0_i32, %c0_i32_0 : i32, i32
  }
  func.func @transform_19(%arg0: i32) -> (i32, i32) {
    %c0_i32 = arith.constant 0 : i32
    %c0_i32_0 = arith.constant 0 : i32
    %c0_i32_1 = arith.constant 0 : i32
    return %c0_i32, %c0_i32_0 : i32, i32
  }
  func.func @transform_20(%arg0: i32) -> (i32, i32) {
    %c0_i32 = arith.constant 0 : i32
    %c0_i32_0 = arith.constant 0 : i32
    %c0_i32_1 = arith.constant 0 : i32
    return %c0_i32, %c0_i32_0 : i32, i32
  }
  func.func @transform_21(%arg0: i32) -> (i32, i32) {
    %c0_i32 = arith.constant 0 : i32
    %c0_i32_0 = arith.constant 0 : i32
    %c0_i32_1 = arith.constant 0 : i32
    return %c0_i32, %c0_i32_0 : i32, i32
  }
  func.func @transform_22(%arg0: i32) -> (i32, i32, i32) {
    %c0_i32 = arith.constant 0 : i32
    %c0_i32_0 = arith.constant 0 : i32
    %c0_i32_1 = arith.constant 0 : i32
    %c0_i32_2 = arith.constant 0 : i32
    return %c0_i32, %c0_i32_0, %c0_i32_1 : i32, i32, i32
  }
  func.func @transform_23(%arg0: i32) -> (i32, i32) {
    %c0_i32 = arith.constant 0 : i32
    %c0_i32_0 = arith.constant 0 : i32
    %c0_i32_1 = arith.constant 0 : i32
    return %c0_i32, %c0_i32_0 : i32, i32
  }
  func.func @transform_24(%arg0: i32) -> (i32, i32, i32) {
    %c0_i32 = arith.constant 0 : i32
    %c0_i32_0 = arith.constant 0 : i32
    %c0_i32_1 = arith.constant 0 : i32
    return %arg0, %c0_i32, %c0_i32_0 : i32, i32, i32
  }
}

</mosaic_0001>

<bundles_post_ra>
// kernel: two_stream_agcn_forward.1
= control target key start
LH: loop header
LB: loop body
LE: loop exit
PB: predicated region body
PF: predicated region fallthrough
CT: control target
= control target key end

     0   :  { %s8055_s0 = inlined_call_operand.vmem [shape: f32[2,2,128,3], index: 0, kind: input, shape index: {}]   ;;  %s8056_s1 = inlined_call_operand.vmem [shape: f32[1,3], index: 1, kind: input, shape index: {}]   ;;  %s8057_s2 = inlined_call_operand.vmem [shape: f32[1,3], index: 2, kind: input, shape index: {}]   ;;  %s8058_s3 = inlined_call_operand.vmem [shape: f32[128,128], index: 3, kind: input, shape index: {}]   ;;  %s8059_s4 = inlined_call_operand.vmem [shape: f32[3,64], index: 4, kind: input, shape index: {}]   ;;  %s8060_s5 = inlined_call_operand.vmem [shape: f32[1,64], index: 5, kind: input, shape index: {}]   ;;  %s8061_s6 = inlined_call_operand.vmem [shape: f32[64,8], index: 6, kind: input, shape index: {}]   ;;  %s8062_s7 = inlined_call_operand.vmem [shape: f32[1,8], index: 7, kind: input, shape index: {}]   ;;  %s8063_s8 = inlined_call_operand.vmem [shape: f32[8,64], index: 8, kind: input, shape index: {}]   ;;  %s8064_s9 = inlined_call_operand.vmem [shape: f32[1,64], index: 9, kind: input, shape index: {}]   ;;  %s8065_s10 = inlined_call_operand.vmem [shape: f32[64,128], index: 10, kind: input, shape index: {}]   ;;  %s8066_s11 = inlined_call_operand.vmem [shape: f32[1,128], index: 11, kind: input, shape index: {}]   ;;  %s8067_s12 = inlined_call_operand.vmem [shape: f32[128,16], index: 12, kind: input, shape index: {}]   ;;  %s8068_s13 = inlined_call_operand.vmem [shape: f32[1,16], index: 13, kind: input, shape index: {}]   ;;  %s8069_s14 = inlined_call_operand.vmem [shape: f32[16,128], index: 14, kind: input, shape index: {}]   ;;  %s8070_s15 = inlined_call_operand.vmem [shape: f32[1,128], index: 15, kind: input, shape index: {}]   ;;  %s8071_s16 = inlined_call_operand.vmem [shape: f32[128,256], index: 16, kind: input, shape index: {}]   ;;  %s8072_s17 = inlined_call_operand.vmem [shape: f32[1,256], index: 17, kind: input, shape index: {}]   ;;  %s8073_s18 = inlined_call_operand.vmem [shape: f32[256,32], index: 18, kind: input, shape index: {}]   ;;  %s8074_s19 = inlined_call_operand.vmem [shape: f32[1,32], index: 19, kind: input, shape index: {}]   ;;  %s8075_s20 = inlined_call_operand.vmem [shape: f32[32,256], index: 20, kind: input, shape index: {}]   ;;  %s8076_s21 = inlined_call_operand.vmem [shape: f32[1,256], index: 21, kind: input, shape index: {}]   ;;  %s8077_s22 = inlined_call_operand.vmem [shape: f32[2,256,10], index: 22, kind: input, shape index: {}]   ;;  %s8078_s23 = inlined_call_operand.vmem [shape: f32[1,10], index: 23, kind: input, shape index: {}]   ;;  %s8079_s24 = inlined_call_operand.hbm [shape: f32[2,1,10], index: 24, kind: output, shape index: {}]  }
   0x1   :  { %8190 = sst [smem:[#allocation41_spill]] %s8055_s0 }
   0x2   :  { %8191 = sst [smem:[#allocation42_spill]] %s8056_s1 }
   0x3   :  { %8192 = sst [smem:[#allocation43_spill]] %s8057_s2 }
   0x4   :  { %8193 = sst [smem:[#allocation44_spill]] %s8058_s3 }
   0x5   :  { %8194 = sst [smem:[#allocation45_spill]] %s8059_s4 }
   0x6   :  { %8195 = sst [smem:[#allocation46_spill]] %s8060_s5 }
   0x7   :  { %8196 = sst [smem:[#allocation47_spill]] %s8061_s6 }
   0x8   :  { %8197 = sst [smem:[#allocation48_spill]] %s8062_s7 }
   0x9   :  { %8198 = sst [smem:[#allocation49_spill]] %s8063_s8 }
   0xa   :  { %8199 = sst [smem:[#allocation50_spill]] %s8064_s9 }
   0xb   :  { %8200 = sst [smem:[#allocation51_spill]] %s8078_s23 }
   0xc   :  { %8201 = sst [smem:[#allocation52_spill]] %s8079_s24 }
   0xd   :  { %29 = vsyncpa [#allocation3], 0 }
   0xe   :  { %31 = vsyncpa [#allocation3 + $0x1], 0  ;;  %s5255_s5 = smov 0   ;;  %s5257_s26 = smov 0  }
   0xf   :  { %s5259_s27 = smov 0   ;;  %s5261_s28 = smov 0  }
  0x10 LB: > { %8202 = sst [smem:[#allocation5_spill]] %s5114_s5  ;;  %s5276_s6 = sadd.s32 4294967295, %s5126_s28   ;;  %s5126_s28 = sphi %s5261_s28, %s8406_s28   ;;  %s5122_s27 = sphi %s5259_s27, %s8409_s27   ;;  %s5118_s26 = sphi %s5257_s26, %s8408_s26   ;;  %s5114_s5 = sphi %s5255_s5, %s8407_s5  }
  0x11   : > { %8203 = sst [smem:[#allocation6_spill]] %s5118_s26  ;;  %s4738_s2 = sadd.s32 4294967294, %s5126_s28  }
  0x12   : > { %8204 = sst [smem:[#allocation7_spill]] %s5122_s27  ;;  %s5280_s29 = sadd.s32 1, %s5126_s28  }
  0x13   : > { %8205 = sst [smem:[#allocation8_spill]] %s5126_s28  ;;  %s553_s0 = sadd.s32 1, %s5122_s27 }
  0x14   : > { %8206 = sst [smem:[#allocation9_spill]] %s5276_s6  ;;  %s550_s7 = ssub.s32 %s5126_s28, %s5280_s29 }
  0x15   : > { %8207 = sst [smem:[#allocation10_spill]] %s5280_s29  ;;  %p563_p0 = scmp.ne.s32.totalorder %s5122_s27, %s5118_s26 }
  0x16   : > { %p551_p1 = scmp.eq.s32.totalorder %s550_s7, 0  ;;  %p564_p2 = scmp.eq.s32.totalorder %s5276_s6, 1 }
  0x17   : > { %p569_p3 = scmp.ne.s32.totalorder %s5118_s26, %s5114_s5  ;;  %p570_p4 = scmp.eq.s32.totalorder %s4738_s2, 1 }
  0x18   : > { %s5291_s30 = scalar_select %p551_p1, %s5122_s27, %s553_s0  }
  0x19   : > { %p5293_p5 = por %p564_p2, %p563_p0  ;;  %p5297_p6 = por %p570_p4, %p569_p3 }
  0x1a   : > { %8208 = sst [smem:[#allocation11_spill]] %s5291_s30  ;;  %p4741_p7 = scmp.ge.s32.totalorder %s5126_s28, 1 }
  0x1b   : > { %s8209_s3 = scalar_select %p5293_p5, 1, 0 }
  0x1c   : > { %s8211_s25 = scalar_select %p5297_p6, 1, 0 }
  0x1d   : > { %8210 = sst [smem:[#allocation12_spill]] %s8209_s3  ;;  %p665_p8 = scmp.lt.s32.totalorder %s5126_s28, 3 }
  0x1e   : > { %8212 = sst [smem:[#allocation13_spill]] %s8211_s25 }
  0x1f   : > { %p666_p9 = pnand %p4741_p7, %p665_p8 }
  0x21   : > { %669 = sbr.rel (%p666_p9) target bundleno = 4143 (0x102f), region = 116 }
  0x26   : > { %p730_p10 = scmp.lt.s32.totalorder %s5276_s6, 1  ;;  %s8213_s1 = sld [smem:[#allocation42_spill]]  ;;  %vm927_vm0 = vcmask 1042432   ;;  %vm878_vm1 = vcmask 23552   ;;  %vm1012_vm2 = vcmask 523264   ;;  %vm1200_vm4 = vcmask 1041409  }
  0x27   : > { %s8214_s27 = sld [smem:[#allocation41_spill]]  ;;  %vm1202_vm5 = vcmask 1042434   ;;  %vm1204_vm6 = vcmask 1043459   ;;  %vm1206_vm7 = vcmask 1044484   ;;  %vm1208_vm8 = vcmask 1045509  }
  0x28   : > { %s731_s2 = scalar_select %p730_p10, %s5276_s6, 1  ;;  %vm1210_vm9 = vcmask 1046534   ;;  %vm1212_vm10 = vcmask 1047559   ;;  %vm1242_vm11 = vcmask 64512  }
  0x29   : > { %s8215_s3 = sld [smem:[#allocation43_spill]] }
  0x2a   : > { %s4878_s0 = sshll.u32 %s731_s2, 8  ;;  %s8216_s30 = sld [smem:[#allocation44_spill]] }
  0x2b   : > { %s8224_s25 = sld [smem:[#allocation45_spill]] }
  0x2c   : > { %v4920_v0 = vld [vmem:[%s8213_s1] ss:$0 sm:$0xff]  ;;  %s8229_s4 = sld [smem:[#allocation46_spill]] }
  0x2d   : > { %s5311_s29 = scalar_lea.vmem %s8214_s27, %s4878_s0  ;;  %s8230_s7 = sld [smem:[#allocation47_spill]] }
  0x2e   : > { %v767_v2 = vld [vmem:[%s5311_s29 + $0x78] sm:$0xff]  ;;  %v766_v3 = vld [vmem:[%s5311_s29 + $0x70] sm:$0xff]  ;;  %v765_v4 = vld [vmem:[%s5311_s29 + $0x68] sm:$0xff]  ;;  %s8231_s2 = sld [smem:[#allocation49_spill]] }
  0x2f   : > { %v4921_v1 = vld [vmem:[%s8215_s3] ss:$0 sm:$0xff]  ;;  %v787_v5 = vmul.f32 %v4920_v0, %v767_v2  ;;  %v786_v6 = vmul.f32 %v4920_v0, %v766_v3  ;;  %v785_v7 = vmul.f32 %v4920_v0, %v765_v4  ;;  %v763_v9 = vld [vmem:[%s5311_s29 + $0x58] sm:$0xff]  ;;  %v762_v13 = vld [vmem:[%s5311_s29 + $0x50] sm:$0xff]  ;;  %s8232_s5 = sld [smem:[#allocation48_spill]] }
  0x30   : > { %v764_v8 = vld [vmem:[%s5311_s29 + $0x60] sm:$0xff]  ;;  %v783_v15 = vmul.f32 %v4920_v0, %v763_v9  ;;  %v761_v16 = vld [vmem:[%s5311_s29 + $0x48] sm:$0xff]  ;;  %v782_v18 = vmul.f32 %v4920_v0, %v762_v13  ;;  %v759_v22 = vld [vmem:[%s5311_s29 + $0x38] sm:$0xff]  ;;  %s8233_s9 = sld [smem:[#allocation50_spill]] }
  0x31   : > { %v807_v10 = vadd.f32 %v4921_v1, %v787_v5  ;;  %v806_v11 = vadd.f32 %v4921_v1, %v786_v6  ;;  %v784_v12 = vmul.f32 %v4920_v0, %v764_v8  ;;  %v805_v14 = vadd.f32 %v4921_v1, %v785_v7  ;;  %v760_v19 = vld [vmem:[%s5311_s29 + $0x40] sm:$0xff]  ;;  %v758_v25 = vld [vmem:[%s5311_s29 + $0x30] sm:$0xff]  ;;  %v757_v28 = vld [vmem:[%s5311_s29 + $0x28] sm:$0xff]  ;;  %s8321_s24 = sld [smem:[#allocation48_spill]] }
  0x32   : > { %v803_v20 = vadd.f32 %v4921_v1, %v783_v15  ;;  %v781_v21 = vmul.f32 %v4920_v0, %v761_v16  ;;  %v802_v23 = vadd.f32 %v4921_v1, %v782_v18  ;;  %v780_v24 = vmul.f32 %v4920_v0, %v760_v19  ;;  %v756_v31 = vld [vmem:[%s5311_s29 + $0x20] sm:$0xff]  ;;  %v755_v34 = vld [vmem:[%s5311_s29 + $0x18] sm:$0xff]  ;;  %v754_v37 = vld [vmem:[%s5311_s29 + $0x10] sm:$0xff]  ;;  %s8324_s8 = sld [smem:[#allocation50_spill]] }
  0x33   : > { %808 = vmatpush.msra.mxu0 %v807_v10  ;;  %v804_v17 = vadd.f32 %v4921_v1, %v784_v12  ;;  %v779_v27 = vmul.f32 %v4920_v0, %v759_v22  ;;  %v778_v30 = vmul.f32 %v4920_v0, %v758_v25  ;;  %v777_v33 = vmul.f32 %v4920_v0, %v757_v28  ;;  %v753_v40 = vld [vmem:[%s5311_s29 + $0x8] sm:$0xff]  ;;  %v752_v43 = vld [vmem:[%s5311_s29] sm:$0xff]  ;;  %v5347_v52 = vld [vmem:[%s8216_s30 + $0x10] sm:$0xff]  ;;  %s8395_s6 = sld [smem:[#allocation6_spill]] }
  0x34   : > { %v801_v26 = vadd.f32 %v4921_v1, %v781_v21  ;;  %v800_v29 = vadd.f32 %v4921_v1, %v780_v24  ;;  %v776_v36 = vmul.f32 %v4920_v0, %v756_v31  ;;  %v775_v39 = vmul.f32 %v4920_v0, %v755_v34  ;;  %v5335_v50 = vld [vmem:[%s8216_s30] sm:$0xff]  ;;  %v5341_v51 = vld [vmem:[%s8216_s30 + $0x8] sm:$0xff]  ;;  %v5353_v53 = vld [vmem:[%s8216_s30 + $0x18] sm:$0xff]  ;;  %s8396_s27 = sld [smem:[#allocation9_spill]] }
  0x35   : > { %809 = vmatpush.msra.mxu0 %v806_v11  ;;  %v799_v32 = vadd.f32 %v4921_v1, %v779_v27  ;;  %v798_v35 = vadd.f32 %v4921_v1, %v778_v30  ;;  %v797_v38 = vadd.f32 %v4921_v1, %v777_v33  ;;  %v774_v42 = vmul.f32 %v4920_v0, %v754_v37  ;;  %v5359_v54 = vld [vmem:[%s8216_s30 + $0x20] sm:$0xff]  ;;  %v5365_v55 = vld [vmem:[%s8216_s30 + $0x28] sm:$0xff]  ;;  %v5371_v56 = vld [vmem:[%s8216_s30 + $0x30] sm:$0xff]  ;;  %s8400_s0 = sld [smem:[#allocation52_spill]] }
  0x36   : > { %v796_v41 = vadd.f32 %v4921_v1, %v776_v36  ;;  %v795_v44 = vadd.f32 %v4921_v1, %v775_v39  ;;  %v773_v45 = vmul.f32 %v4920_v0, %v753_v40  ;;  %v772_v47 = vmul.f32 %v4920_v0, %v752_v43  ;;  %8217 = vst [vmem:[#allocation14_spill] sm:$0xff] %v5365_v55  ;;  %v5377_v57 = vld [vmem:[%s8216_s30 + $0x38] sm:$0xff]  ;;  %v5383_v58 = vld [vmem:[%s8216_s30 + $0x40] sm:$0xff]  ;;  %v5389_v59 = vld [vmem:[%s8216_s30 + $0x48] sm:$0xff] }
  0x37   : > { %810 = vmatpush.msra.mxu0 %v805_v14  ;;  %v794_v46 = vadd.f32 %v4921_v1, %v774_v42  ;;  %8218 = vst [vmem:[#allocation15_spill] sm:$0xff] %v5371_v56  ;;  %v5395_v60 = vld [vmem:[%s8216_s30 + $0x50] sm:$0xff]  ;;  %v5401_v61 = vld [vmem:[%s8216_s30 + $0x58] sm:$0xff]  ;;  %v873_v62 = vld [vmem:[%s8224_s25] sm:$0x7] }
  0x38   : > { %v793_v48 = vadd.f32 %v4921_v1, %v773_v45  ;;  %v792_v49 = vadd.f32 %v4921_v1, %v772_v47  ;;  %8219 = vst [vmem:[#allocation16_spill] sm:$0xff] %v5377_v57  ;;  %v5410_v63 = vld [vmem:[%s8216_s30 + $0x60] sm:$0xff]  ;;  %4744 = vmatpush.msk.msra.mxu1 %vm927_vm0, %v873_v62  ;;  %v5417_v0 = vld [vmem:[%s8216_s30 + $0x68] sm:$0xff]  ;;  %v5423_v1 = vld [vmem:[%s8216_s30 + $0x70] sm:$0xff] }
  0x39   : > { %811 = vmatpush.msra.mxu0 %v804_v17  ;;  %8220 = vst [vmem:[#allocation17_spill] sm:$0xff] %v5383_v58  ;;  %v5429_v2 = vld [vmem:[%s8216_s30 + $0x78] sm:$0xff]  ;;  %v5451_v28 = vld [vmem:[%s8229_s4] ss:$0 sm:$0xff] }
  0x3a   : > { %8221 = vst [vmem:[#allocation18_spill] sm:$0xff] %v5389_v59 }
  0x3b   : > { %812 = vmatpush.msra.mxu0 %v803_v20  ;;  %8222 = vst [vmem:[#allocation19_spill] sm:$0xff] %v5395_v60  ;;  %s5084_s23 = scalar_lea.hbm %s8400_s0, 2 }
  0x3c   : > { %8223 = vst [vmem:[#allocation20_spill] sm:$0xff] %v5401_v61 }
  0x3d   : > { %813 = vmatpush.msra.mxu0 %v802_v23  ;;  %8225 = vst [vmem:[#allocation21_spill] sm:$0xff] %v5410_v63 }
  0x3e   : > { %8226 = vst [vmem:[#allocation22_spill] sm:$0xff] %v5417_v0 }
  0x3f   : > { %814 = vmatpush.msra.mxu0 %v801_v26  ;;  %8227 = vst [vmem:[#allocation23_spill] sm:$0xff] %v5423_v1 }
  0x40   : > { %8228 = vst [vmem:[#allocation24_spill] sm:$0xff] %v5429_v2 }
  0x41   : > { %815 = vmatpush.msra.mxu0 %v800_v29 }
  0x43   : > { %816 = vmatpush.msra.mxu0 %v799_v32 }
  0x45   : > { %817 = vmatpush.msra.mxu0 %v798_v35  ;;  %v5128_v35 = vmov 16.0  }
  0x46   : > { %4929 = vrcp.f32 %v5128_v35 }
  0x47   : > { %818 = vmatpush.msra.mxu0 %v797_v38 }
  0x49   : > { %819 = vmatpush.msra.mxu0 %v796_v41 }
  0x4b   : > { %820 = vmatpush.msra.mxu0 %v795_v44 }
  0x4c   : > { %v5469_v44 = vpop.eup %4929 }
  0x4d   : > { %821 = vmatpush.msra.mxu0 %v794_v46  ;;  %v1086_v62 = vmul.f32 16.0, %v5469_v44  ;;  %vm1090_vm3 = vweird.f32 %v5469_v44 }
  0x4f   : > { %822 = vmatpush.msra.mxu0 %v793_v48 }
  0x51   : > { %823 = vmatpush.msra.mxu0 %v792_v49 }
  0x52   : > { %824 = vmatmul.f32.vlgmr.msra.gmra.mxu0 %v5335_v50 }
  0x5a   : > { %827 = vmatmul.f32.gmra.mxu0 %v5341_v51 }
  0x62   : > { %830 = vmatmul.f32.gmra.mxu0 %v5347_v52 }
  0x6a   : > { %833 = vmatmul.f32.gmra.mxu0 %v5353_v53 }
  0x72   : > { %836 = vmatmul.f32.gmra.mxu0 %v5359_v54 }
  0x7a   : > { %839 = vmatmul.f32.gmra.mxu0 %v5365_v55 }
  0x82   : > { %842 = vmatmul.f32.gmra.mxu0 %v5371_v56 }
  0x8a   : > { %845 = vmatmul.f32.gmra.mxu0 %v5377_v57 }
  0x92   : > { %848 = vmatmul.f32.gmra.mxu0 %v5383_v58 }
  0x9a   : > { %851 = vmatmul.f32.gmra.mxu0 %v5389_v59 }
  0xa2   : > { %854 = vmatmul.f32.gmra.mxu0 %v5395_v60 }
  0xaa   : > { %857 = vmatmul.f32.gmra.mxu0 %v5401_v61 }
  0xb2   : > { %860 = vmatmul.f32.gmra.mxu0 %v5410_v63 }
  0xba   : > { %863 = vmatmul.f32.gmra.mxu0 %v5417_v0 }
  0xc2   : > { %866 = vmatmul.f32.gmra.mxu0 %v5423_v1 }
  0xca   : > { %869 = vmatmul.f32.gmra.mxu0 %v5429_v2 }
  0xcf   : > { %v825_v3 = vpop.f32.mrf.mxu0 }
  0xd0   : > { %4745 = vmatmul.msk.f32.vlgmr.msra.gmra.mxu1 %vm878_vm1, %v825_v3 }
  0xd7   : > { %v828_v4 = vpop.f32.mrf.mxu0 }
  0xd8   : > { %4746 = vmatmul.msk.f32.gmra.mxu1 %vm878_vm1, %v828_v4 }
  0xdf   : > { %v831_v5 = vpop.f32.mrf.mxu0 }
  0xe0   : > { %4747 = vmatmul.msk.f32.gmra.mxu1 %vm878_vm1, %v831_v5 }
  0xe7   : > { %v834_v6 = vpop.f32.mrf.mxu0 }
  0xe8   : > { %4748 = vmatmul.msk.f32.gmra.mxu1 %vm878_vm1, %v834_v6 }
  0xef   : > { %v837_v7 = vpop.f32.mrf.mxu0 }
  0xf0   : > { %4749 = vmatmul.msk.f32.gmra.mxu1 %vm878_vm1, %v837_v7 }
  0xf7   : > { %v840_v8 = vpop.f32.mrf.mxu0 }
  0xf8   : > { %4750 = vmatmul.msk.f32.gmra.mxu1 %vm878_vm1, %v840_v8 }
  0xff   : > { %v843_v9 = vpop.f32.mrf.mxu0 }
 0x100   : > { %4751 = vmatmul.msk.f32.gmra.mxu1 %vm878_vm1, %v843_v9 }
 0x107   : > { %v846_v10 = vpop.f32.mrf.mxu0 }
 0x108   : > { %4752 = vmatmul.msk.f32.gmra.mxu1 %vm878_vm1, %v846_v10 }
 0x10f   : > { %v849_v11 = vpop.f32.mrf.mxu0 }
 0x110   : > { %4753 = vmatmul.msk.f32.gmra.mxu1 %vm878_vm1, %v849_v11  ;;  %v1087_v11 = vsub.f32 1.0, %v1086_v62 }
 0x117   : > { %v852_v12 = vpop.f32.mrf.mxu0 }
 0x118   : > { %4754 = vmatmul.msk.f32.gmra.mxu1 %vm878_vm1, %v852_v12 }
 0x11f   : > { %v855_v13 = vpop.f32.mrf.mxu0 }
 0x120   : > { %4755 = vmatmul.msk.f32.gmra.mxu1 %vm878_vm1, %v855_v13 }
 0x127   : > { %v858_v14 = vpop.f32.mrf.mxu0 }
 0x128   : > { %4756 = vmatmul.msk.f32.gmra.mxu1 %vm878_vm1, %v858_v14 }
 0x12f   : > { %v861_v15 = vpop.f32.mrf.mxu0 }
 0x130   : > { %4757 = vmatmul.msk.f32.gmra.mxu1 %vm878_vm1, %v861_v15 }
 0x137   : > { %v864_v16 = vpop.f32.mrf.mxu0 }
 0x138   : > { %4758 = vmatmul.msk.f32.gmra.mxu1 %vm878_vm1, %v864_v16 }
 0x13f   : > { %v867_v17 = vpop.f32.mrf.mxu0 }
 0x140   : > { %4759 = vmatmul.msk.f32.gmra.mxu1 %vm878_vm1, %v867_v17 }
 0x147   : > { %v870_v18 = vpop.f32.mrf.mxu0 }
 0x148   : > { %4760 = vmatmul.msk.f32.gmra.mxu1 %vm878_vm1, %v870_v18 }
 0x14d   : > { %v948_v19 = vpop.f32.mrf.mxu1 }
 0x14e   : > { %v949_v31 = vadd.f32 %v5451_v28, %v948_v19 }
 0x150   : > { %v5457_v33 = vmax.f32 %v949_v31, 0.0 }
 0x152   : > { %v1013_v39 = vsel %vm1012_vm2, %v5457_v33, 0.0  ;;  %v1100_v40 = vsel %vm1012_vm2, %v5457_v33, -inf }
 0x155   : > { %v951_v20 = vpop.f32.mrf.mxu1 }
 0x156   : > { %v952_v30 = vadd.f32 %v5451_v28, %v951_v20 }
 0x158   : > { %v5455_v32 = vmax.f32 %v952_v30, 0.0 }
 0x15a   : > { %v1014_v36 = vsel %vm1012_vm2, %v5455_v32, 0.0  ;;  %v1101_v37 = vsel %vm1012_vm2, %v5455_v32, -inf }
 0x15b   : > { %v1015_v41 = vadd.f32 %v1014_v36, %v1013_v39  ;;  %v1102_v43 = vmax.f32 %v1100_v40, %v1101_v37  ;;  %v1186_v36 = vld [vmem:[%s8230_s7 + $0x30] sm:$0xff] }
 0x15d   : > { %v954_v21 = vpop.f32.mrf.mxu1  ;;  %v1016_v47 = vrot.slane %v1015_v41, 4  ;;  %v1103_v3 = vrot.slane %v1102_v43, 4 }
 0x15e   : > { %v955_v42 = vadd.f32 %v5451_v28, %v954_v21 }
 0x15f   : > { %v1017_v7 = vadd.f32 %v1016_v47, %v1015_v41  ;;  %v1104_v12 = vmax.f32 %v1102_v43, %v1103_v3  ;;  %v1185_v47 = vld [vmem:[%s8230_s7 + $0x28] sm:$0xff] }
 0x160   : > { %v5473_v48 = vmax.f32 %v955_v42, 0.0 }
 0x161   : > { %v1018_v20 = vrot.slane %v1017_v7, 2 }
 0x162   : > { %v1022_v8 = vsel %vm1012_vm2, %v5473_v48, 0.0  ;;  %v1109_v37 = vsel %vm1012_vm2, %v5473_v48, -inf }
 0x163   : > { %v1019_v41 = vadd.f32 %v1018_v20, %v1017_v7 }
 0x165   : > { %v957_v22 = vpop.f32.mrf.mxu1 }
 0x166   : > { %v958_v38 = vadd.f32 %v5451_v28, %v957_v22 }
 0x168   : > { %v5471_v45 = vmax.f32 %v958_v38, 0.0 }
 0x16a   : > { %v1023_v4 = vsel %vm1012_vm2, %v5471_v45, 0.0  ;;  %v1110_v30 = vsel %vm1012_vm2, %v5471_v45, -inf }
 0x16b   : > { %v1024_v13 = vadd.f32 %v1023_v4, %v1022_v8  ;;  %v1111_v62 = vmax.f32 %v1109_v37, %v1110_v30 }
 0x16d   : > { %v960_v23 = vpop.f32.mrf.mxu1  ;;  %v1112_v30 = vrot.slane %v1111_v62, 4 }
 0x16e   : > { %v961_v5 = vadd.f32 %v5451_v28, %v960_v23 }
 0x170   : > { %v5487_v15 = vmax.f32 %v961_v5, 0.0  ;;  %v1184_v5 = vld [vmem:[%s8230_s7 + $0x20] sm:$0xff] }
 0x172   : > { %v1031_v31 = vsel %vm1012_vm2, %v5487_v15, 0.0  ;;  %v1118_v3 = vsel %vm1012_vm2, %v5487_v15, -inf }
 0x175   : > { %v963_v24 = vpop.f32.mrf.mxu1 }
 0x176   : > { %v964_v49 = vadd.f32 %v5451_v28, %v963_v24  ;;  %v1187_v24 = vld [vmem:[%s8230_s7 + $0x38] sm:$0xff] }
 0x177   : > { %1224 = vmatpush.msra.mxu2 %v1187_v24  ;;  %v1182_v24 = vld [vmem:[%s8230_s7 + $0x10] sm:$0xff] }
 0x178   : > { %v5483_v9 = vmax.f32 %v964_v49, 0.0 }
 0x179   : > { %1225 = vmatpush.msra.mxu2 %v1186_v36 }
 0x17a   : > { %v1032_v21 = vsel %vm1012_vm2, %v5483_v9, 0.0  ;;  %v1119_v39 = vsel %vm1012_vm2, %v5483_v9, -inf }
 0x17b   : > { %v1033_v38 = vadd.f32 %v1032_v21, %v1031_v31  ;;  %1226 = vmatpush.msra.mxu2 %v1185_v47 }
 0x17d   : > { %v966_v25 = vpop.f32.mrf.mxu1  ;;  %1227 = vmatpush.msra.mxu2 %v1184_v5 }
 0x17e   : > { %v967_v14 = vadd.f32 %v5451_v28, %v966_v25  ;;  %v1088_v25 = vmul.f32 %v5469_v44, %v1087_v11  ;;  %v1183_v11 = vld [vmem:[%s8230_s7 + $0x18] sm:$0xff] }
 0x17f   : > { %1228 = vmatpush.msra.mxu2 %v1183_v11 }
 0x181   : > { %1229 = vmatpush.msra.mxu2 %v1182_v24 }
 0x185   : > { %v969_v26 = vpop.f32.mrf.mxu1 }
 0x186   : > { %v970_v6 = vadd.f32 %v5451_v28, %v969_v26  ;;  %v1105_v26 = vrot.slane %v1104_v12, 2 }
 0x188   : > { %v5491_v18 = vmax.f32 %v970_v6, 0.0  ;;  %v1120_v6 = vmax.f32 %v1118_v3, %v1119_v39  ;;  %v1181_v39 = vld [vmem:[%s8230_s7 + $0x8] sm:$0xff] }
 0x189   : > { %1230 = vmatpush.msra.mxu2 %v1181_v39 }
 0x18a   : > { %v1041_v40 = vsel %vm1012_vm2, %v5491_v18, 0.0  ;;  %v1121_v36 = vrot.slane %v1120_v6, 4 }
 0x18c   : > { %v1122_v39 = vmax.f32 %v1120_v6, %v1121_v36 }
 0x18d   : > { %v972_v27 = vpop.f32.mrf.mxu1 }
 0x18e   : > { %v973_v16 = vadd.f32 %v5451_v28, %v972_v27  ;;  %v1025_v27 = vrot.slane %v1024_v13, 4 }
 0x190   : > { %v5508_v35 = vmax.f32 %v973_v16, 0.0  ;;  %v1026_v49 = vadd.f32 %v1025_v27, %v1024_v13  ;;  %v1089_v13 = vadd.f32 %v5469_v44, %v1088_v25  ;;  %v1020_v27 = vrot.slane %v1019_v41, 1 }
 0x192   : > { %v1049_v8 = vsel %vm1012_vm2, %v5508_v35, 0.0  ;;  %v1027_v25 = vrot.slane %v1026_v49, 2  ;;  %v1136_v11 = vsel %vm1012_vm2, %v5508_v35, -inf }
 0x195   : > { %v975_v29 = vpop.f32.mrf.mxu1 }
 0x196   : > { %v976_v10 = vadd.f32 %v5451_v28, %v975_v29  ;;  %v5502_v29 = vmax.f32 %v967_v14, 0.0  ;;  %v1034_v14 = vrot.slane %v1033_v38, 4 }
 0x198   : > { %v5495_v22 = vmax.f32 %v976_v10, 0.0  ;;  %v1040_v4 = vsel %vm1012_vm2, %v5502_v29, 0.0 }
 0x199   : > { %v1042_v7 = vadd.f32 %v1041_v40, %v1040_v4  ;;  %v1035_v40 = vadd.f32 %v1034_v14, %v1033_v38 }
 0x19a   : > { %v1050_v42 = vsel %vm1012_vm2, %v5495_v22, 0.0  ;;  %v1137_v47 = vsel %vm1012_vm2, %v5495_v22, -inf }
 0x19b   : > { %v1051_v16 = vadd.f32 %v1050_v42, %v1049_v8  ;;  %v1043_v37 = vrot.slane %v1042_v7, 4  ;;  %v1127_v42 = vsel %vm1012_vm2, %v5502_v29, -inf  ;;  %v1180_v8 = vld [vmem:[%s8230_s7] sm:$0xff] }
 0x19c   : > { %1231 = vmatpush.msra.mxu2 %v1180_v8 }
 0x19d   : > { %v978_v34 = vpop.f32.mrf.mxu1 }
 0x19e   : > { %v979_v23 = vadd.f32 %v5451_v28, %v978_v34 }
 0x1a0   : > { %v5523_v43 = vmax.f32 %v979_v23, 0.0 }
 0x1a2   : > { %v1058_v20 = vsel %vm1012_vm2, %v5523_v43, 0.0  ;;  %v1145_v24 = vsel %vm1012_vm2, %v5523_v43, -inf }
 0x1a5   : > { %v981_v46 = vpop.f32.mrf.mxu1 }
 0x1a6   : > { %v982_v17 = vadd.f32 %v5451_v28, %v981_v46 }
 0x1a8   : > { %v5510_v34 = vmax.f32 %v982_v17, 0.0 }
 0x1aa   : > { %v1059_v10 = vsel %vm1012_vm2, %v5510_v34, 0.0  ;;  %v1146_v3 = vsel %vm1012_vm2, %v5510_v34, -inf }
 0x1ab   : > { %v1060_v31 = vadd.f32 %v1059_v10, %v1058_v20  ;;  %v1044_v20 = vadd.f32 %v1043_v37, %v1042_v7  ;;  %v1147_v0 = vmax.f32 %v1145_v24, %v1146_v3  ;;  %v1113_v7 = vmax.f32 %v1111_v62, %v1112_v30 }
 0x1ac   : > { %v1028_v37 = vadd.f32 %v1027_v25, %v1026_v49 }
 0x1ad   : > { %v984_v19 = vpop.f32.mrf.mxu1  ;;  %v1061_v14 = vrot.slane %v1060_v31, 4 }
 0x1ae   : > { %v985_v46 = vadd.f32 %v5451_v28, %v984_v19  ;;  %v1106_v19 = vmax.f32 %v1104_v12, %v1105_v26  ;;  %v1128_v12 = vsel %vm1012_vm2, %v5491_v18, -inf }
 0x1af   : > { %v1129_v10 = vmax.f32 %v1127_v42, %v1128_v12  ;;  %v1021_v12 = vadd.f32 %v1020_v27, %v1019_v41  ;;  %v5584_v42 = vsel %vm1090_vm3, %v5469_v44, %v1089_v13  ;;  %v1114_v27 = vrot.slane %v1113_v7, 2 }
 0x1b0   : > { %v5547_v21 = vmax.f32 %v985_v46, 0.0  ;;  %v1052_v46 = vrot.slane %v1051_v16, 4  ;;  %v1029_v44 = vrot.slane %v1028_v37, 1  ;;  %v1123_v13 = vrot.slane %v1122_v39, 2 }
 0x1b1   : > { %v1092_v41 = vmul.f32 %v5584_v42, %v1021_v12  ;;  %v1115_v57 = vmax.f32 %v1113_v7, %v1114_v27  ;;  %vm1738_vm3 = vcmask 130048  }
 0x1b2   : > { %v1067_v4 = vsel %vm1012_vm2, %v5547_v21, 0.0  ;;  %v1154_v2 = vsel %vm1012_vm2, %v5547_v21, -inf  ;;  %v1053_v1 = vadd.f32 %v1052_v46, %v1051_v16  ;;  %v1045_v46 = vrot.slane %v1044_v20, 2 }
 0x1b3   : > { %v1030_v56 = vadd.f32 %v1029_v44, %v1028_v37  ;;  %v1124_v55 = vmax.f32 %v1122_v39, %v1123_v13 }
 0x1b4   : > { %v1054_v3 = vrot.slane %v1053_v1, 2  ;;  %v1046_v36 = vadd.f32 %v1045_v46, %v1044_v20  ;;  %v1116_v46 = vrot.slane %v1115_v57, 1 }
 0x1b5   : > { %v987_v17 = vpop.f32.mrf.mxu1  ;;  %v1093_v13 = vmul.f32 %v5584_v42, %v1030_v56 }
 0x1b6   : > { %v988_v23 = vadd.f32 %v5451_v28, %v987_v17 }
 0x1b8   : > { %v5555_v26 = vmax.f32 %v988_v23, 0.0  ;;  %v1138_v23 = vmax.f32 %v1136_v11, %v1137_v47  ;;  %v1130_v47 = vrot.slane %v1129_v10, 4  ;;  %v1036_v11 = vrot.slane %v1035_v40, 2 }
 0x1ba   : > { %v1068_v5 = vsel %vm1012_vm2, %v5555_v26, 0.0  ;;  %v1155_v38 = vsel %vm1012_vm2, %v5555_v26, -inf  ;;  %v1139_v59 = vrot.slane %v1138_v23, 4  ;;  %v1131_v62 = vmax.f32 %v1129_v10, %v1130_v47 }
 0x1bb   : > { %v1069_v17 = vadd.f32 %v1068_v5, %v1067_v4  ;;  %v1156_v61 = vmax.f32 %v1154_v2, %v1155_v38  ;;  %v1062_v4 = vadd.f32 %v1061_v14, %v1060_v31  ;;  %v1107_v5 = vrot.slane %v1106_v19, 1 }
 0x1bc   : > { %v1148_v2 = vrot.slane %v1147_v0, 4  ;;  %v1037_v25 = vadd.f32 %v1036_v11, %v1035_v40  ;;  %v1140_v30 = vmax.f32 %v1138_v23, %v1139_v59  ;;  %v1055_v14 = vadd.f32 %v1054_v3, %v1053_v1 }
 0x1bd   : > { %v1070_v63 = vrot.slane %v1069_v17, 4  ;;  %v990_v60 = vpop.f32.mrf.mxu1  ;;  %v1157_v38 = vrot.slane %v1156_v61, 4  ;;  %v1063_v49 = vrot.slane %v1062_v4, 2  ;;  %v1108_v6 = vmax.f32 %v1106_v19, %v1107_v5 }
 0x1be   : > { %v991_v8 = vadd.f32 %v5451_v28, %v990_v60  ;;  %v1132_v10 = vrot.slane %v1131_v62, 2  ;;  %v1038_v19 = vrot.slane %v1037_v25, 1  ;;  %v1141_v40 = vrot.slane %v1140_v30, 2 }
 0x1bf   : > { %v1071_v16 = vadd.f32 %v1070_v63, %v1069_v17  ;;  %v1149_v63 = vmax.f32 %v1147_v0, %v1148_v2  ;;  %v1158_v17 = vmax.f32 %v1156_v61, %v1157_v38  ;;  %v5588_v58 = vadd.f32 %v1108_v6, %v1092_v41 }
 0x1c0   : > { %v5590_v12 = vmax.f32 %v991_v8, 0.0  ;;  %v1064_v47 = vadd.f32 %v1063_v49, %v1062_v4  ;;  %v1047_v1 = vrot.slane %v1046_v36, 1  ;;  %v1056_v0 = vrot.slane %v1055_v14, 1 }
 0x1c1   : > { %v1072_v31 = vrot.slane %v1071_v16, 2  ;;  %v1150_v61 = vrot.slane %v1149_v63, 2  ;;  %v1159_v20 = vrot.slane %v1158_v17, 2  ;;  %v1133_v39 = vmax.f32 %v1131_v62, %v1132_v10 }
 0x1c2   : > { %v1076_v7 = vsel %vm1012_vm2, %v5590_v12, 0.0  ;;  %v1163_v5 = vsel %vm1012_vm2, %v5590_v12, -inf  ;;  %v1065_v4 = vrot.slane %v1064_v47, 1  ;;  %v1039_v3 = vadd.f32 %v1038_v19, %v1037_v25 }
 0x1c3   : > { %v1073_v59 = vadd.f32 %v1072_v31, %v1071_v16  ;;  %v1142_v2 = vmax.f32 %v1140_v30, %v1141_v40  ;;  %v1048_v41 = vadd.f32 %v1047_v1, %v1046_v36  ;;  %v1151_v27 = vmax.f32 %v1149_v63, %v1150_v61 }
 0x1c4   : > { %v1125_v49 = vrot.slane %v1124_v55, 1  ;;  %v1057_v6 = vadd.f32 %v1056_v0, %v1055_v14  ;;  %v1160_v31 = vmax.f32 %v1158_v17, %v1159_v20 }
 0x1c5   : > { %v993_v24 = vpop.f32.mrf.mxu1  ;;  %v1074_v38 = vrot.slane %v1073_v59, 1  ;;  %v1143_v25 = vrot.slane %v1142_v2, 1  ;;  %v1095_v19 = vmul.f32 %v5584_v42, %v1048_v41  ;;  %v1152_v36 = vrot.slane %v1151_v27, 1 }
 0x1c6   : > { %v994_v60 = vadd.f32 %v5451_v28, %v993_v24  ;;  %v1134_v24 = vrot.slane %v1133_v39, 1  ;;  %v1126_v61 = vmax.f32 %v1124_v55, %v1125_v49  ;;  %v1096_v56 = vmul.f32 %v5584_v42, %v1057_v6 }
 0x1c7   : > { %v1075_v30 = vadd.f32 %v1074_v38, %v1073_v59  ;;  %v1161_v14 = vrot.slane %v1160_v31, 1 }
 0x1c8   : > { %v5593_v23 = vmax.f32 %v994_v60, 0.0  ;;  %v1066_v60 = vadd.f32 %v1065_v4, %v1064_v47  ;;  %v1135_v17 = vmax.f32 %v1133_v39, %v1134_v24  ;;  %v1153_v4 = vmax.f32 %v1151_v27, %v1152_v36  ;;  %v1237_v24 = vld [vmem:[%s8231_s2] sm:$0xff] }
 0x1c9   : > { %1261 = vmatpush.msra.mxu3 %v1237_v24 }
 0x1ca   : > { %v1077_v28 = vsel %vm1012_vm2, %v5593_v23, 0.0  ;;  %v1164_v37 = vsel %vm1012_vm2, %v5593_v23, -inf  ;;  %v1097_v47 = vmul.f32 %v5584_v42, %v1066_v60  ;;  %v4923_v60 = vld [vmem:[%s8232_s5] ss:$0 sm:$0xff]  ;;  %s8401_s5 = sld [smem:[#allocation51_spill]] }
 0x1cb   : > { %v1078_v11 = vadd.f32 %v1077_v28, %v1076_v7  ;;  %v1165_v16 = vmax.f32 %v1163_v5, %v1164_v37  ;;  %v1117_v7 = vmax.f32 %v1115_v57, %v1116_v46  ;;  %v1094_v5 = vmul.f32 %v5584_v42, %v1039_v3 }
 0x1cc   : > { %v1144_v28 = vmax.f32 %v1142_v2, %v1143_v25  ;;  %v1098_v37 = vmul.f32 %v5584_v42, %v1075_v30  ;;  %v1162_v46 = vmax.f32 %v1160_v31, %v1161_v14  ;;  %v1177_v38 = vadd.f32 %v1153_v4, %v1097_v47 }
 0x1cd   : > { %v1079_v8 = vrot.slane %v1078_v11, 4  ;;  %v1166_v44 = vrot.slane %v1165_v16, 4  ;;  %v1173_v1 = vadd.f32 %v1117_v7, %v1093_v13  ;;  %v1174_v57 = vadd.f32 %v1126_v61, %v1094_v5  ;;  %v4924_v5 = vld [vmem:[%s8233_s9] ss:$0 sm:$0xff]  ;;  %s4679_s9 = scalar_lea.hbm %s8400_s0, %s8396_s27 }
 0x1ce   : > { %v1176_v3 = vadd.f32 %v1144_v28, %v1096_v56  ;;  %v1178_v41 = vadd.f32 %v1162_v46, %v1098_v37 }
 0x1cf   : > { %v1080_v62 = vadd.f32 %v1079_v8, %v1078_v11  ;;  %v1167_v10 = vmax.f32 %v1165_v16, %v1166_v44  ;;  %v1175_v16 = vadd.f32 %v1135_v17, %v1095_v19  ;;  %v1201_v39 = vsel %vm1200_vm4, %v1173_v1, %v5588_v58 }
 0x1d0   : > { %v1203_v8 = vsel %vm1202_vm5, %v1174_v57, %v1201_v39 }
 0x1d1   : > { %v1081_v63 = vrot.slane %v1080_v62, 2  ;;  %v1168_v40 = vrot.slane %v1167_v10, 2  ;;  %v1205_v27 = vsel %vm1204_vm6, %v1175_v16, %v1203_v8 }
 0x1d2   : > { %v1207_v13 = vsel %vm1206_vm7, %v1176_v3, %v1205_v27 }
 0x1d3   : > { %v1082_v0 = vadd.f32 %v1081_v63, %v1080_v62  ;;  %v1169_v20 = vmax.f32 %v1167_v10, %v1168_v40  ;;  %v1209_v6 = vsel %vm1208_vm8, %v1177_v38, %v1207_v13 }
 0x1d4   : > { %v1211_v31 = vsel %vm1210_vm9, %v1178_v41, %v1209_v6 }
 0x1d5   : > { %v1083_v59 = vrot.slane %v1082_v0, 1  ;;  %v1170_v11 = vrot.slane %v1169_v20, 1 }
 0x1d7   : > { %v1084_v55 = vadd.f32 %v1083_v59, %v1082_v0  ;;  %v1171_v44 = vmax.f32 %v1169_v20, %v1170_v11 }
 0x1d9   : > { %v1099_v2 = vmul.f32 %v5584_v42, %v1084_v55 }
 0x1db   : > { %v1179_v49 = vadd.f32 %v1171_v44, %v1099_v2 }
 0x1dd   : > { %v1213_v58 = vsel %vm1212_vm10, %v1179_v49, %v1211_v31 }
 0x1de   : > { %4761 = vmatmul.msk.f32.vlgmr.msra.gmra.mxu2 %vm1012_vm2, %v1213_v58 }
 0x261   : > { %v1233_v62 = vpop.f32.mrf.mxu2 }
 0x262   : > { %v1234_v10 = vadd.f32 %v4923_v60, %v1233_v62 }
 0x264   : > { %v1236_v7 = vmax.f32 %v1234_v10, 0.0 }
 0x266   : > { %4762 = vmatmul.msk.f32.vlgmr.msra.gmra.mxu3 %vm1242_vm11, %v1236_v7 }
 0x2e9   : > { %v1263_v25 = vpop.f32.mrf.mxu3 }
 0x2ea   : > { %v1264_v30 = vadd.f32 %v4924_v5, %v1263_v25 }
 0x2ec   : > { %v4763_v19 = vmul.f32 -1.442695, %v1264_v30 }
 0x2ee   : > { %4931 = vpow2.f32 %v4763_v19 }
 0x2f4   : > { %v4932_v36 = vpop.eup %4931 }
 0x2f5   : > { %v1269_v63 = vadd.f32 1.0, %v4932_v36 }
 0x2f7   : > { %4933 = vrcp.f32 %v1269_v63  ;;  %v1281_v56 = vand.u32 2147483648, %v1269_v63  ;;  %v1279_v17 = vand.u32 2147483647, %v1269_v63  ;;  %vm1275_vm13 = vweird.f32 %v1269_v63 }
 0x2f9   : > { %v1282_v47 = vor.u32 1.1754944e-38, %v1281_v56  ;;  %vm1280_vm15 = vcmp.eq.f32.partialorder %v1279_v17, 8.507059e+37  ;;  %v8238_v56 = vld [vmem:[#allocation18_spill] sm:$0xff]  ;;  %v1409_v17 = vld [vmem:[%s8065_s10 + $0x18] sm:$0xff] }
 0x2fd   : > { %v4934_v40 = vpop.eup %4933 }
 0x2fe   : > { %v1271_v1 = vmul.f32 %v4934_v40, %v1269_v63  ;;  %vm1276_vm12 = vweird.f32 %v4934_v40 }
 0x2ff   : > { %vm1277_vm14 = vmor %vm1275_vm13, %vm1276_vm12 }
 0x300   : > { %v1272_v61 = vsub.f32 1.0, %v1271_v1 }
 0x302   : > { %v1273_v14 = vmul.f32 %v4934_v40, %v1272_v61 }
 0x304   : > { %v1274_v0 = vadd.f32 %v4934_v40, %v1273_v14  ;;  %v8239_v14 = vld [vmem:[#allocation19_spill] sm:$0xff] }
 0x306   : > { %v1278_v20 = vsel %vm1277_vm14, %v4934_v40, %v1274_v0  ;;  %v1408_v0 = vld [vmem:[%s8065_s10 + $0x10] sm:$0xff] }
 0x307   : > { %v1283_v57 = vsel %vm1280_vm15, %v1282_v47, %v1278_v20  ;;  %v1407_v47 = vld [vmem:[%s8065_s10 + $0x8] sm:$0xff]  ;;  %v8241_v20 = vld [vmem:[#allocation21_spill] sm:$0xff] }
 0x308   : > { %v1292_v28 = vrot.slane %v1283_v57, 7  ;;  %v1291_v37 = vrot.slane %v1283_v57, 6  ;;  %v1290_v11 = vrot.slane %v1283_v57, 5  ;;  %v1289_v39 = vrot.slane %v1283_v57, 4 }
 0x309   : > { %v1288_v13 = vrot.slane %v1283_v57, 3  ;;  %v1287_v31 = vrot.slane %v1283_v57, 2  ;;  %v1286_v62 = vrot.slane %v1283_v57, 1 }
 0x30a   : > { %v1300_v59 = vperm.slane %v1292_v28, 0  ;;  %v1299_v4 = vperm.slane %v1291_v37, 0  ;;  %v1298_v38 = vperm.slane %v1290_v11, 0  ;;  %v1297_v27 = vperm.slane %v1289_v39, 0  ;;  %v8242_v28 = vld [vmem:[#allocation22_spill] sm:$0xff]  ;;  %v8243_v37 = vld [vmem:[#allocation23_spill] sm:$0xff] }
 0x30b   : > { %v1296_v6 = vperm.slane %v1288_v13, 0  ;;  %v1295_v60 = vperm.slane %v1287_v31, 0  ;;  %v1294_v5 = vperm.slane %v1286_v62, 0 }
 0x30c   : > { %v1324_v16 = vmul.f32 %v1300_v59, %v5593_v23  ;;  %v1323_v46 = vmul.f32 %v1300_v59, %v5590_v12  ;;  %v1322_v55 = vmul.f32 %v1299_v4, %v5555_v26  ;;  %v1321_v8 = vmul.f32 %v1299_v4, %v5547_v21  ;;  %v8244_v59 = vld [vmem:[#allocation24_spill] sm:$0xff] }
 0x30d   : > { %v1320_v44 = vmul.f32 %v1298_v38, %v5510_v34  ;;  %v1319_v23 = vmul.f32 %v1298_v38, %v5523_v43  ;;  %v1318_v26 = vmul.f32 %v1297_v27, %v5495_v22  ;;  %v1317_v21 = vmul.f32 %v1297_v27, %v5508_v35 }
 0x30e   : > { %v1340_v3 = vmax.f32 %v1324_v16, 0.0  ;;  %v1339_v41 = vmax.f32 %v1323_v46, 0.0  ;;  %v1338_v2 = vmax.f32 %v1322_v55, 0.0  ;;  %v1337_v49 = vmax.f32 %v1321_v8, 0.0 }
 0x30f   : > { %v1336_v12 = vmax.f32 %v1320_v44, 0.0  ;;  %v1335_v58 = vmax.f32 %v1319_v23, 0.0  ;;  %v1334_v24 = vmax.f32 %v1318_v26, 0.0  ;;  %v1316_v34 = vmul.f32 %v1296_v6, %v5491_v18 }
 0x310   : > { %1341 = vmatpush.msrb.mxu3 %v1340_v3  ;;  %v1333_v10 = vmax.f32 %v1317_v21, 0.0  ;;  %v1315_v43 = vmul.f32 %v1296_v6, %v5502_v29  ;;  %v1314_v22 = vmul.f32 %v1295_v60, %v5483_v9  ;;  %v1313_v30 = vmul.f32 %v1295_v60, %v5487_v15 }
 0x311   : > { %v1332_v7 = vmax.f32 %v1316_v34, 0.0  ;;  %v1312_v19 = vmul.f32 %v1294_v5, %v5471_v45  ;;  %v1293_v18 = vperm.slane %v1283_v57, 0  ;;  %v1311_v63 = vmul.f32 %v1294_v5, %v5473_v48  ;;  %v8235_v45 = vld [vmem:[#allocation15_spill] sm:$0xff]  ;;  %v8237_v48 = vld [vmem:[#allocation17_spill] sm:$0xff] }
 0x312   : > { %1342 = vmatpush.msrb.mxu3 %v1339_v41  ;;  %v1331_v25 = vmax.f32 %v1315_v43, 0.0  ;;  %v1330_v35 = vmax.f32 %v1314_v22, 0.0  ;;  %v1329_v36 = vmax.f32 %v1313_v30, 0.0  ;;  %v1406_v57 = vld [vmem:[%s8065_s10] sm:$0xff]  ;;  %v5711_v5 = vld [vmem:[%s8067_s12 + $0x78] sm:$0xff] }
 0x313   : > { %v1328_v29 = vmax.f32 %v1312_v19, 0.0  ;;  %v1310_v40 = vmul.f32 %v1293_v18, %v5455_v32  ;;  %v1327_v9 = vmax.f32 %v1311_v63, 0.0  ;;  %v1309_v1 = vmul.f32 %v1293_v18, %v5457_v33  ;;  %v8234_v32 = vld [vmem:[#allocation14_spill] sm:$0xff]  ;;  %v8236_v33 = vld [vmem:[#allocation16_spill] sm:$0xff]  ;;  %v5704_v43 = vld [vmem:[%s8066_s11] ss:$0 sm:$0xff]  ;;  %1711 = vmatpush.msrb.mxu1 %v5711_v5 }
 0x314   : > { %1343 = vmatpush.msrb.mxu3 %v1338_v2  ;;  %v5724_v19 = vld [vmem:[%s8067_s12 + $0x68] sm:$0xff] }
 0x315   : > { %v1326_v61 = vmax.f32 %v1310_v40, 0.0  ;;  %v1325_v15 = vmax.f32 %v1309_v1, 0.0 }
 0x316   : > { %1344 = vmatpush.msrb.mxu3 %v1337_v49 }
 0x318   : > { %1345 = vmatpush.msrb.mxu3 %v1336_v12 }
 0x31a   : > { %1346 = vmatpush.msrb.mxu3 %v1335_v58 }
 0x31c   : > { %1347 = vmatpush.msrb.mxu3 %v1334_v24 }
 0x31e   : > { %1348 = vmatpush.msrb.mxu3 %v1333_v10 }
 0x320   : > { %1349 = vmatpush.msrb.mxu3 %v1332_v7 }
 0x322   : > { %1350 = vmatpush.msrb.mxu3 %v1331_v25  ;;  %v5716_v25 = vld [vmem:[%s8067_s12 + $0x70] sm:$0xff] }
 0x323   : > { %1712 = vmatpush.msrb.mxu1 %v5716_v25 }
 0x324   : > { %1351 = vmatpush.msrb.mxu3 %v1330_v35 }
 0x325   : > { %1713 = vmatpush.msrb.mxu1 %v5724_v19 }
 0x326   : > { %1352 = vmatpush.msrb.mxu3 %v1329_v36  ;;  %v5732_v36 = vld [vmem:[%s8067_s12 + $0x60] sm:$0xff] }
 0x327   : > { %1714 = vmatpush.msrb.mxu1 %v5732_v36 }
 0x328   : > { %1353 = vmatpush.msrb.mxu3 %v1328_v29 }
 0x32a   : > { %1354 = vmatpush.msrb.mxu3 %v1327_v9 }
 0x32c   : > { %1355 = vmatpush.msrb.mxu3 %v1326_v61 }
 0x32e   : > { %1356 = vmatpush.msrb.mxu3 %v1325_v15  ;;  %v5747_v15 = vld [vmem:[%s8067_s12 + $0x58] sm:$0xff] }
 0x32f   : > { %1357 = vmatmul.f32.vlgmr.msrb.gmra.mxu3 %v5335_v50  ;;  %v1413_v50 = vld [vmem:[%s8065_s10 + $0x38] sm:$0xff]  ;;  %1715 = vmatpush.msrb.mxu1 %v5747_v15 }
 0x330   : > { %1474 = vmatpush.msrb.mxu2 %v1413_v50 }
 0x337   : > { %1360 = vmatmul.f32.gmra.mxu3 %v5341_v51  ;;  %v1412_v51 = vld [vmem:[%s8065_s10 + $0x30] sm:$0xff] }
 0x338   : > { %1475 = vmatpush.msrb.mxu2 %v1412_v51  ;;  %v5759_v51 = vld [vmem:[%s8067_s12 + $0x50] sm:$0xff] }
 0x339   : > { %8245 = vst [vmem:[#allocation14_spill] sm:$0xff] %v5759_v51  ;;  %1716 = vmatpush.msrb.mxu1 %v5759_v51 }
 0x33f   : > { %1363 = vmatmul.f32.gmra.mxu3 %v5347_v52  ;;  %v8240_v52 = vld [vmem:[#allocation20_spill] sm:$0xff] }
 0x347   : > { %1366 = vmatmul.f32.gmra.mxu3 %v5353_v53  ;;  %v1411_v53 = vld [vmem:[%s8065_s10 + $0x28] sm:$0xff] }
 0x348   : > { %1476 = vmatpush.msrb.mxu2 %v1411_v53 }
 0x34f   : > { %1369 = vmatmul.f32.gmra.mxu3 %v5359_v54  ;;  %v1410_v54 = vld [vmem:[%s8065_s10 + $0x20] sm:$0xff] }
 0x350   : > { %1477 = vmatpush.msrb.mxu2 %v1410_v54 }
 0x352   : > { %1478 = vmatpush.msrb.mxu2 %v1409_v17 }
 0x354   : > { %1479 = vmatpush.msrb.mxu2 %v1408_v0 }
 0x356   : > { %1480 = vmatpush.msrb.mxu2 %v1407_v47 }
 0x357   : > { %1372 = vmatmul.f32.gmra.mxu3 %v8234_v32 }
 0x358   : > { %1481 = vmatpush.msrb.mxu2 %v1406_v57 }
 0x35f   : > { %1375 = vmatmul.f32.gmra.mxu3 %v8235_v45 }
 0x367   : > { %1378 = vmatmul.f32.gmra.mxu3 %v8236_v33 }
 0x36f   : > { %1381 = vmatmul.f32.gmra.mxu3 %v8237_v48 }
 0x377   : > { %1384 = vmatmul.f32.gmra.mxu3 %v8238_v56 }
 0x37f   : > { %1387 = vmatmul.f32.gmra.mxu3 %v8239_v14 }
 0x387   : > { %1390 = vmatmul.f32.gmra.mxu3 %v8240_v52 }
 0x38f   : > { %1393 = vmatmul.f32.gmra.mxu3 %v8241_v20  ;;  %v5773_v20 = vld [vmem:[%s8067_s12 + $0x48] sm:$0xff] }
 0x390   : > { %8246 = vst [vmem:[#allocation15_spill] sm:$0xff] %v5773_v20  ;;  %1717 = vmatpush.msrb.mxu1 %v5773_v20 }
 0x397   : > { %1396 = vmatmul.f32.gmra.mxu3 %v8242_v28 }
 0x39f   : > { %1399 = vmatmul.f32.gmra.mxu3 %v8243_v37 }
 0x3a7   : > { %1402 = vmatmul.f32.gmra.mxu3 %v8244_v59 }
 0x3b2   : > { %v1358_v4 = vpop.f32.mrf.mxu3 }
 0x3b3   : > { %4764 = vmatmul.msk.f32.vlgmr.msrb.gmra.mxu2 %vm1012_vm2, %v1358_v4 }
 0x3ba   : > { %v1361_v11 = vpop.f32.mrf.mxu3 }
 0x3bb   : > { %4765 = vmatmul.msk.f32.gmra.mxu2 %vm1012_vm2, %v1361_v11 }
 0x3c2   : > { %v1364_v16 = vpop.f32.mrf.mxu3 }
 0x3c3   : > { %4766 = vmatmul.msk.f32.gmra.mxu2 %vm1012_vm2, %v1364_v16  ;;  %v5789_v16 = vld [vmem:[%s8067_s12 + $0x40] sm:$0xff] }
 0x3c4   : > { %8247 = vst [vmem:[#allocation16_spill] sm:$0xff] %v5789_v16  ;;  %1718 = vmatpush.msrb.mxu1 %v5789_v16 }
 0x3ca   : > { %v1367_v46 = vpop.f32.mrf.mxu3 }
 0x3cb   : > { %4767 = vmatmul.msk.f32.gmra.mxu2 %vm1012_vm2, %v1367_v46  ;;  %v5794_v46 = vld [vmem:[%s8067_s12 + $0x38] sm:$0xff] }
 0x3cc   : > { %8248 = vst [vmem:[#allocation17_spill] sm:$0xff] %v5794_v46  ;;  %1719 = vmatpush.msrb.mxu1 %v5794_v46 }
 0x3d2   : > { %v1370_v3 = vpop.f32.mrf.mxu3 }
 0x3d3   : > { %4768 = vmatmul.msk.f32.gmra.mxu2 %vm1012_vm2, %v1370_v3 }
 0x3da   : > { %v1373_v55 = vpop.f32.mrf.mxu3 }
 0x3db   : > { %4769 = vmatmul.msk.f32.gmra.mxu2 %vm1012_vm2, %v1373_v55 }
 0x3e2   : > { %v1376_v38 = vpop.f32.mrf.mxu3 }
 0x3e3   : > { %4770 = vmatmul.msk.f32.gmra.mxu2 %vm1012_vm2, %v1376_v38 }
 0x3ea   : > { %v1379_v39 = vpop.f32.mrf.mxu3 }
 0x3eb   : > { %4771 = vmatmul.msk.f32.gmra.mxu2 %vm1012_vm2, %v1379_v39 }
 0x3f2   : > { %v1382_v41 = vpop.f32.mrf.mxu3 }
 0x3f3   : > { %4772 = vmatmul.msk.f32.gmra.mxu2 %vm1012_vm2, %v1382_v41 }
 0x3fa   : > { %v1385_v8 = vpop.f32.mrf.mxu3 }
 0x3fb   : > { %4773 = vmatmul.msk.f32.gmra.mxu2 %vm1012_vm2, %v1385_v8 }
 0x402   : > { %v1388_v2 = vpop.f32.mrf.mxu3 }
 0x403   : > { %4774 = vmatmul.msk.f32.gmra.mxu2 %vm1012_vm2, %v1388_v2  ;;  %v5809_v2 = vld [vmem:[%s8067_s12 + $0x30] sm:$0xff] }
 0x404   : > { %8249 = vst [vmem:[#allocation18_spill] sm:$0xff] %v5809_v2  ;;  %1720 = vmatpush.msrb.mxu1 %v5809_v2 }
 0x40a   : > { %v1391_v44 = vpop.f32.mrf.mxu3 }
 0x40b   : > { %4775 = vmatmul.msk.f32.gmra.mxu2 %vm1012_vm2, %v1391_v44 }
 0x412   : > { %v1394_v27 = vpop.f32.mrf.mxu3 }
 0x413   : > { %4776 = vmatmul.msk.f32.gmra.mxu2 %vm1012_vm2, %v1394_v27 }
 0x41a   : > { %v1397_v13 = vpop.f32.mrf.mxu3 }
 0x41b   : > { %4777 = vmatmul.msk.f32.gmra.mxu2 %vm1012_vm2, %v1397_v13 }
 0x422   : > { %v1400_v49 = vpop.f32.mrf.mxu3 }
 0x423   : > { %4778 = vmatmul.msk.f32.gmra.mxu2 %vm1012_vm2, %v1400_v49 }
 0x42a   : > { %v1403_v23 = vpop.f32.mrf.mxu3 }
 0x42b   : > { %4779 = vmatmul.msk.f32.gmra.mxu2 %vm1012_vm2, %v1403_v23 }
 0x436   : > { %v1483_v12 = vpop.f32.mrf.mxu2 }
 0x437   : > { %v1484_v22 = vadd.f32 %v5704_v43, %v1483_v12 }
 0x439   : > { %v5727_v18 = vmax.f32 %v1484_v22, 0.0 }
 0x43e   : > { %v1486_v26 = vpop.f32.mrf.mxu2 }
 0x43f   : > { %v1487_v7 = vadd.f32 %v5704_v43, %v1486_v26  ;;  %v5820_v26 = vld [vmem:[%s8067_s12 + $0x28] sm:$0xff] }
 0x440   : > { %8250 = vst [vmem:[#allocation19_spill] sm:$0xff] %v5820_v26  ;;  %1721 = vmatpush.msrb.mxu1 %v5820_v26 }
 0x441   : > { %v5719_v35 = vmax.f32 %v1487_v7, 0.0 }
 0x443   : > { %v1547_v29 = vadd.f32 %v5719_v35, %v5727_v18  ;;  %v1611_v1 = vmax.f32 %v5727_v18, %v5719_v35 }
 0x445   : > { %v1548_v56 = vrot.slane %v1547_v29, 4  ;;  %v1612_v17 = vrot.slane %v1611_v1, 4 }
 0x446   : > { %v1489_v6 = vpop.f32.mrf.mxu2 }
 0x447   : > { %v1490_v40 = vadd.f32 %v5704_v43, %v1489_v6  ;;  %v1549_v59 = vadd.f32 %v1548_v56, %v1547_v29  ;;  %v1613_v38 = vmax.f32 %v1611_v1, %v1612_v17 }
 0x449   : > { %v5761_v52 = vmax.f32 %v1490_v40, 0.0  ;;  %v1550_v49 = vrot.slane %v1549_v59, 2  ;;  %v5844_v40 = vld [vmem:[%s8067_s12 + $0x18] sm:$0xff] }
 0x44a   : > { %8252 = vst [vmem:[#allocation21_spill] sm:$0xff] %v5844_v40 }
 0x44b   : > { %v1551_v22 = vadd.f32 %v1550_v49, %v1549_v59 }
 0x44d   : > { %v1552_v59 = vrot.slane %v1551_v22, 1 }
 0x44e   : > { %v1492_v31 = vpop.f32.mrf.mxu2 }
 0x44f   : > { %v1493_v63 = vadd.f32 %v5704_v43, %v1492_v31 }
 0x451   : > { %v5749_v32 = vmax.f32 %v1493_v63, 0.0 }
 0x453   : > { %v1554_v57 = vadd.f32 %v5749_v32, %v5761_v52  ;;  %v1618_v6 = vmax.f32 %v5761_v52, %v5749_v32 }
 0x455   : > { %v1555_v44 = vrot.slane %v1554_v57, 4 }
 0x456   : > { %v1495_v58 = vpop.f32.mrf.mxu2 }
 0x457   : > { %v1496_v45 = vadd.f32 %v5704_v43, %v1495_v58  ;;  %v1614_v58 = vrot.slane %v1613_v38, 2 }
 0x459   : > { %v5777_v28 = vmax.f32 %v1496_v45, 0.0  ;;  %v1615_v45 = vmax.f32 %v1613_v38, %v1614_v58  ;;  %v5868_v58 = vld [vmem:[%s8067_s12] sm:$0xff] }
 0x45a   : > { %8255 = vst [vmem:[#allocation24_spill] sm:$0xff] %v5868_v58 }
 0x45e   : > { %v1498_v21 = vpop.f32.mrf.mxu2 }
 0x45f   : > { %v1499_v9 = vadd.f32 %v5704_v43, %v1498_v21 }
 0x461   : > { %v5763_v53 = vmax.f32 %v1499_v9, 0.0  ;;  %v1619_v9 = vrot.slane %v1618_v6, 4 }
 0x463   : > { %v1561_v3 = vadd.f32 %v5763_v53, %v5777_v28 }
 0x465   : > { %v1562_v31 = vrot.slane %v1561_v3, 4 }
 0x466   : > { %v1501_v24 = vpop.f32.mrf.mxu2 }
 0x467   : > { %v1502_v14 = vadd.f32 %v5704_v43, %v1501_v24  ;;  %v1563_v1 = vadd.f32 %v1562_v31, %v1561_v3 }
 0x469   : > { %v5782_v4 = vmax.f32 %v1502_v14, 0.0  ;;  %v5854_v14 = vld [vmem:[%s8067_s12 + $0x10] sm:$0xff] }
 0x46a   : > { %8253 = vst [vmem:[#allocation22_spill] sm:$0xff] %v5854_v14 }
 0x46e   : > { %v1504_v34 = vpop.f32.mrf.mxu2 }
 0x46f   : > { %v1505_v61 = vadd.f32 %v5704_v43, %v1504_v34 }
 0x471   : > { %v5767_v0 = vmax.f32 %v1505_v61, 0.0 }
 0x473   : > { %v1568_v39 = vadd.f32 %v5767_v0, %v5782_v4 }
 0x475   : > { %v1569_v21 = vrot.slane %v1568_v39, 4 }
 0x476   : > { %v1507_v60 = vpop.f32.mrf.mxu2 }
 0x477   : > { %v1508_v54 = vadd.f32 %v5704_v43, %v1507_v60  ;;  %v5832_v60 = vld [vmem:[%s8067_s12 + $0x20] sm:$0xff] }
 0x478   : > { %8251 = vst [vmem:[#allocation20_spill] sm:$0xff] %v5832_v60  ;;  %1722 = vmatpush.msrb.mxu1 %v5832_v60 }
 0x479   : > { %v5798_v55 = vmax.f32 %v1508_v54, 0.0 }
 0x47a   : > { %1723 = vmatpush.msrb.mxu1 %v5844_v40 }
 0x47c   : > { %1724 = vmatpush.msrb.mxu1 %v5854_v14 }
 0x47e   : > { %v1510_v62 = vpop.f32.mrf.mxu2 }
 0x47f   : > { %v1511_v33 = vadd.f32 %v5704_v43, %v1510_v62  ;;  %v1556_v62 = vadd.f32 %v1555_v44, %v1554_v57  ;;  %v1564_v44 = vrot.slane %v1563_v1, 2 }
 0x481   : > { %v5779_v37 = vmax.f32 %v1511_v33, 0.0  ;;  %v1570_v33 = vadd.f32 %v1569_v21, %v1568_v39  ;;  %v5862_v39 = vld [vmem:[%s8067_s12 + $0x8] sm:$0xff] }
 0x482   : > { %8254 = vst [vmem:[#allocation23_spill] sm:$0xff] %v5862_v39  ;;  %1725 = vmatpush.msrb.mxu1 %v5862_v39 }
 0x483   : > { %v1575_v27 = vadd.f32 %v5779_v37, %v5798_v55  ;;  %v1639_v61 = vmax.f32 %v5798_v55, %v5779_v37 }
 0x484   : > { %1726 = vmatpush.msrb.mxu1 %v5868_v58 }
 0x485   : > { %v1576_v7 = vrot.slane %v1575_v27, 4 }
 0x486   : > { %v1513_v10 = vpop.f32.mrf.mxu2 }
 0x487   : > { %v1514_v47 = vadd.f32 %v5704_v43, %v1513_v10  ;;  %v1625_v10 = vmax.f32 %v5777_v28, %v5763_v53  ;;  %v1577_v17 = vadd.f32 %v1576_v7, %v1575_v27  ;;  %v1616_v27 = vrot.slane %v1615_v45, 1 }
 0x489   : > { %v5803_v41 = vmax.f32 %v1514_v47, 0.0  ;;  %v1626_v54 = vrot.slane %v1625_v10, 4  ;;  %v1578_v7 = vrot.slane %v1577_v17, 2  ;;  %v1617_v26 = vmax.f32 %v1615_v45, %v1616_v27 }
 0x48b   : > { %v1627_v21 = vmax.f32 %v1625_v10, %v1626_v54 }
 0x48d   : > { %v1628_v10 = vrot.slane %v1627_v21, 2 }
 0x48e   : > { %v1516_v30 = vpop.f32.mrf.mxu2 }
 0x48f   : > { %v1517_v50 = vadd.f32 %v5704_v43, %v1516_v30  ;;  %v1632_v30 = vmax.f32 %v5782_v4, %v5767_v0 }
 0x491   : > { %v5784_v11 = vmax.f32 %v1517_v50, 0.0  ;;  %v1557_v50 = vrot.slane %v1556_v62, 2  ;;  %v1633_v3 = vrot.slane %v1632_v30, 4 }
 0x493   : > { %v1582_v23 = vadd.f32 %v5784_v11, %v5803_v41 }
 0x495   : > { %v1583_v63 = vrot.slane %v1582_v23, 4 }
 0x496   : > { %v1519_v48 = vpop.f32.mrf.mxu2 }
 0x497   : > { %v1520_v8 = vadd.f32 %v5704_v43, %v1519_v48  ;;  %v1646_v48 = vmax.f32 %v5803_v41, %v5784_v11  ;;  %v1584_v38 = vadd.f32 %v1583_v63, %v1582_v23  ;;  %v1558_v23 = vadd.f32 %v1557_v50, %v1556_v62 }
 0x498   : > { %v1579_v50 = vadd.f32 %v1578_v7, %v1577_v17  ;;  %v1629_v17 = vmax.f32 %v1627_v21, %v1628_v10 }
 0x499   : > { %v5825_v24 = vmax.f32 %v1520_v8, 0.0  ;;  %v1620_v8 = vmax.f32 %v1618_v6, %v1619_v9  ;;  %v1647_v31 = vrot.slane %v1646_v48, 4  ;;  %v1553_v6 = vadd.f32 %v1552_v59, %v1551_v22 }
 0x49a   : > { %v1634_v9 = vmax.f32 %v1632_v30, %v1633_v3  ;;  %v1585_v40 = vrot.slane %v1584_v38, 2  ;;  %v1559_v62 = vrot.slane %v1558_v23, 1  ;;  %v1630_v21 = vrot.slane %v1629_v17, 1 }
 0x49b   : > { %v1648_v46 = vmax.f32 %v1646_v48, %v1647_v31  ;;  %v1603_v22 = vmul.f32 %v1553_v6, %v5584_v42 }
 0x49c   : > { %v1635_v30 = vrot.slane %v1634_v9, 2  ;;  %v1586_v59 = vadd.f32 %v1585_v40, %v1584_v38  ;;  %v1560_v27 = vadd.f32 %v1559_v62, %v1558_v23 }
 0x49e   : > { %v1522_v13 = vpop.f32.mrf.mxu2  ;;  %v1636_v31 = vmax.f32 %v1634_v9, %v1635_v30  ;;  %v1587_v7 = vrot.slane %v1586_v59, 1  ;;  %v1604_v23 = vmul.f32 %v1560_v27, %v5584_v42 }
 0x49f   : > { %v1523_v12 = vadd.f32 %v5704_v43, %v1522_v13  ;;  %v1640_v13 = vrot.slane %v1639_v61, 4 }
 0x4a0   : > { %v1637_v62 = vrot.slane %v1636_v31, 1  ;;  %v1588_v10 = vadd.f32 %v1587_v7, %v1586_v59 }
 0x4a1   : > { %v5827_v34 = vmax.f32 %v1523_v12, 0.0  ;;  %v1571_v12 = vrot.slane %v1570_v33, 2  ;;  %v1641_v14 = vmax.f32 %v1639_v61, %v1640_v13 }
 0x4a2   : > { %v1608_v59 = vmul.f32 %v1588_v10, %v5584_v42 }
 0x4a3   : > { %v1589_v29 = vadd.f32 %v5827_v34, %v5825_v24  ;;  %v1653_v47 = vmax.f32 %v5825_v24, %v5827_v34  ;;  %v1572_v2 = vadd.f32 %v1571_v12, %v1570_v33  ;;  %v1649_v33 = vrot.slane %v1648_v46, 2 }
 0x4a5   : > { %v1590_v56 = vrot.slane %v1589_v29, 4  ;;  %v1654_v63 = vrot.slane %v1653_v47, 4  ;;  %v1573_v45 = vrot.slane %v1572_v2, 1 }
 0x4a6   : > { %v1525_v57 = vpop.f32.mrf.mxu2 }
 0x4a7   : > { %v1591_v49 = vadd.f32 %v1590_v56, %v1589_v29  ;;  %v1621_v29 = vrot.slane %v1620_v8, 2  ;;  %v1565_v56 = vadd.f32 %v1564_v44, %v1563_v1  ;;  %v1526_v16 = vadd.f32 %v5704_v43, %v1525_v57 }
 0x4a8   : > { %v1655_v54 = vmax.f32 %v1653_v47, %v1654_v63  ;;  %v1642_v44 = vrot.slane %v1641_v14, 2  ;;  %v1580_v47 = vrot.slane %v1579_v50, 1 }
 0x4a9   : > { %v1592_v60 = vrot.slane %v1591_v49, 2  ;;  %v1622_v61 = vmax.f32 %v1620_v8, %v1621_v29  ;;  %v1566_v3 = vrot.slane %v1565_v56, 1  ;;  %v5875_v48 = vmax.f32 %v1526_v16, 0.0 }
 0x4aa   : > { %v1656_v12 = vrot.slane %v1655_v54, 2  ;;  %v1643_v38 = vmax.f32 %v1641_v14, %v1642_v44  ;;  %v1574_v16 = vadd.f32 %v1573_v45, %v1572_v2  ;;  %v1581_v29 = vadd.f32 %v1580_v47, %v1579_v50 }
 0x4ab   : > { %v1593_v13 = vadd.f32 %v1592_v60, %v1591_v49  ;;  %v1567_v60 = vadd.f32 %v1566_v3, %v1565_v56  ;;  %v1650_v49 = vmax.f32 %v1648_v46, %v1649_v33  ;;  %v1631_v45 = vmax.f32 %v1629_v17, %v1630_v21 }
 0x4ac   : > { %v1657_v9 = vmax.f32 %v1655_v54, %v1656_v12  ;;  %v1644_v51 = vrot.slane %v1643_v38, 1  ;;  %v1606_v14 = vmul.f32 %v1574_v16, %v5584_v42  ;;  %v1607_v33 = vmul.f32 %v1581_v29, %v5584_v42  ;;  %v5900_v29 = vld [vmem:[%s8069_s14 + $0x8] sm:$0xff] }
 0x4ad   : > { %v1594_v8 = vrot.slane %v1593_v13, 1  ;;  %v1605_v39 = vmul.f32 %v1567_v60, %v5584_v42  ;;  %v1651_v2 = vrot.slane %v1650_v49, 1  ;;  %v1638_v54 = vmax.f32 %v1636_v31, %v1637_v62  ;;  %1756 = vmatpush.msra.mxu1 %v5900_v29  ;;  %v4926_v62 = vld [vmem:[%s8068_s13] ss:$0 sm:$0xff] }
 0x4ae   : > { %v1528_v20 = vpop.f32.mrf.mxu2  ;;  %v1658_v50 = vrot.slane %v1657_v9, 1  ;;  %v1645_v7 = vmax.f32 %v1643_v38, %v1644_v51 }
 0x4af   : > { %v1529_v1 = vadd.f32 %v5704_v43, %v1528_v20  ;;  %v1623_v20 = vrot.slane %v1622_v61, 1  ;;  %v1595_v56 = vadd.f32 %v1594_v8, %v1593_v13  ;;  %v1669_v12 = vadd.f32 %v1631_v45, %v1605_v39 }
 0x4b0   : > { %v1659_v8 = vmax.f32 %v1657_v9, %v1658_v50  ;;  %v5905_v9 = vld [vmem:[%s8069_s14] sm:$0xff] }
 0x4b1   : > { %v5877_v57 = vmax.f32 %v1529_v1, 0.0  ;;  %v1624_v58 = vmax.f32 %v1622_v61, %v1623_v20  ;;  %v1667_v61 = vadd.f32 %v1617_v26, %v1603_v22  ;;  %v1609_v13 = vmul.f32 %v1595_v56, %v5584_v42  ;;  %1757 = vmatpush.msra.mxu1 %v5905_v9  ;;  %v4927_v56 = vld [vmem:[%s8070_s15] ss:$0 sm:$0xff] }
 0x4b2   : > { %v1652_v20 = vmax.f32 %v1650_v49, %v1651_v2 }
 0x4b3   : > { %v1596_v40 = vadd.f32 %v5877_v57, %v5875_v48  ;;  %v1660_v43 = vmax.f32 %v5875_v48, %v5877_v57  ;;  %v1668_v44 = vadd.f32 %v1624_v58, %v1604_v23  ;;  %v1671_v58 = vadd.f32 %v1645_v7, %v1607_v33 }
 0x4b4   : > { %v1672_v16 = vadd.f32 %v1652_v20, %v1608_v59  ;;  %v1673_v31 = vadd.f32 %v1659_v8, %v1609_v13 }
 0x4b5   : > { %v1597_v63 = vrot.slane %v1596_v40, 4  ;;  %v1661_v6 = vrot.slane %v1660_v43, 4 }
 0x4b7   : > { %v1598_v30 = vadd.f32 %v1597_v63, %v1596_v40  ;;  %v1662_v1 = vmax.f32 %v1660_v43, %v1661_v6  ;;  %v1670_v40 = vadd.f32 %v1638_v54, %v1606_v14  ;;  %v1703_v63 = vsel %vm1200_vm4, %v1668_v44, %v1667_v61 }
 0x4b8   : > { %v1704_v6 = vsel %vm1202_vm5, %v1669_v12, %v1703_v63 }
 0x4b9   : > { %v1599_v46 = vrot.slane %v1598_v30, 2  ;;  %v1663_v3 = vrot.slane %v1662_v1, 2  ;;  %v1705_v51 = vsel %vm1204_vm6, %v1670_v40, %v1704_v6 }
 0x4ba   : > { %v1706_v39 = vsel %vm1206_vm7, %v1671_v58, %v1705_v51 }
 0x4bb   : > { %v1600_v27 = vadd.f32 %v1599_v46, %v1598_v30  ;;  %v1664_v47 = vmax.f32 %v1662_v1, %v1663_v3  ;;  %v1707_v38 = vsel %vm1208_vm8, %v1672_v16, %v1706_v39 }
 0x4bc   : > { %v1708_v49 = vsel %vm1210_vm9, %v1673_v31, %v1707_v38 }
 0x4bd   : > { %v1601_v43 = vrot.slane %v1600_v27, 1  ;;  %v1665_v60 = vrot.slane %v1664_v47, 1 }
 0x4bf   : > { %v1602_v17 = vadd.f32 %v1601_v43, %v1600_v27  ;;  %v1666_v26 = vmax.f32 %v1664_v47, %v1665_v60 }
 0x4c1   : > { %v1610_v23 = vmul.f32 %v1602_v17, %v5584_v42 }
 0x4c3   : > { %v1674_v22 = vadd.f32 %v1666_v26, %v1610_v23 }
 0x4c5   : > { %v1709_v21 = vsel %vm1212_vm10, %v1674_v22, %v1708_v49 }
 0x4c6   : > { %1727 = vmatmul.f32.vlgmr.msrb.gmra.mxu1 %v1709_v21 }
 0x543   : > { %v1728_v10 = vpop.f32.mrf.mxu1 }
 0x544   : > { %v1729_v30 = vadd.f32 %v4926_v62, %v1728_v10 }
 0x546   : > { %v1731_v1 = vmax.f32 %v1729_v30, 0.0 }
 0x548   : > { %4780 = vmatmul.msk.f32.vlgmr.msra.gmra.mxu1 %vm1738_vm3, %v1731_v1 }
 0x5c5   : > { %v1759_v14 = vpop.f32.mrf.mxu1 }
 0x5c6   : > { %v1760_v2 = vadd.f32 %v4927_v56, %v1759_v14 }
 0x5c8   : > { %v4781_v46 = vmul.f32 -1.442695, %v1760_v2 }
 0x5ca   : > { %4935 = vpow2.f32 %v4781_v46 }
 0x5d0   : > { %v4936_v3 = vpop.eup %4935 }
 0x5d1   : > { %v1765_v44 = vadd.f32 1.0, %v4936_v3 }
 0x5d3   : > { %4937 = vrcp.f32 %v1765_v44  ;;  %v1777_v54 = vand.u32 2147483648, %v1765_v44  ;;  %v1775_v59 = vand.u32 2147483647, %v1765_v44  ;;  %vm1771_vm13 = vweird.f32 %v1765_v44 }
 0x5d5   : > { %v1778_v61 = vor.u32 1.1754944e-38, %v1777_v54  ;;  %vm1776_vm15 = vcmp.eq.f32.partialorder %v1775_v59, 8.507059e+37  ;;  %v5959_v59 = vld [vmem:[%s8216_s30 + $0x20] sm:$0xff] }
 0x5d9   : > { %v4938_v45 = vpop.eup %4937 }
 0x5da   : > { %v1767_v33 = vmul.f32 %v4938_v45, %v1765_v44  ;;  %vm1772_vm12 = vweird.f32 %v4938_v45 }
 0x5db   : > { %vm1773_vm14 = vmor %vm1771_vm13, %vm1772_vm12 }
 0x5dc   : > { %v1768_v50 = vsub.f32 1.0, %v1767_v33 }
 0x5de   : > { %v1769_v27 = vmul.f32 %v4938_v45, %v1768_v50 }
 0x5e0   : > { %v1770_v47 = vadd.f32 %v4938_v45, %v1769_v27 }
 0x5e2   : > { %v1774_v12 = vsel %vm1773_vm14, %v4938_v45, %v1770_v47  ;;  %v5965_v47 = vld [vmem:[%s8216_s30 + $0x28] sm:$0xff] }
 0x5e3   : > { %v1779_v7 = vsel %vm1776_vm15, %v1778_v61, %v1774_v12  ;;  %v5971_v61 = vld [vmem:[%s8216_s30 + $0x30] sm:$0xff]  ;;  %v5977_v12 = vld [vmem:[%s8216_s30 + $0x38] sm:$0xff] }
 0x5e4   : > { %v1788_v13 = vrot.slane %v1779_v7, 7  ;;  %v1787_v40 = vrot.slane %v1779_v7, 6  ;;  %v1786_v60 = vrot.slane %v1779_v7, 5  ;;  %v1785_v31 = vrot.slane %v1779_v7, 4 }
 0x5e5   : > { %v1784_v22 = vrot.slane %v1779_v7, 3  ;;  %v1783_v21 = vrot.slane %v1779_v7, 2  ;;  %v1782_v1 = vrot.slane %v1779_v7, 1 }
 0x5e6   : > { %v1796_v43 = vperm.slane %v1788_v13, 0  ;;  %v1795_v20 = vperm.slane %v1787_v40, 0  ;;  %v1794_v63 = vperm.slane %v1786_v60, 0  ;;  %v1793_v39 = vperm.slane %v1785_v31, 0  ;;  %v5988_v13 = vld [vmem:[%s8071_s16 + $0xf8] sm:$0xff]  ;;  %v5995_v40 = vld [vmem:[%s8216_s30 + $0x40] sm:$0xff] }
 0x5e7   : > { %v1792_v49 = vperm.slane %v1784_v22, 0  ;;  %v1791_v30 = vperm.slane %v1783_v21, 0  ;;  %v1790_v2 = vperm.slane %v1782_v1, 0  ;;  %2005 = vmatpush.msra.mxu3 %v5988_v13  ;;  %v4801_v60 = vld [vmem:[%s5311_s29 + $0xf8] sm:$0xff] }
 0x5e8   : > { %v1820_v8 = vmul.f32 %v1796_v43, %v5877_v57  ;;  %v1819_v58 = vmul.f32 %v1796_v43, %v5875_v48  ;;  %v1818_v16 = vmul.f32 %v1795_v20, %v5827_v34  ;;  %v1817_v23 = vmul.f32 %v1795_v20, %v5825_v24  ;;  %v6001_v43 = vld [vmem:[%s8071_s16 + $0xe0] sm:$0xff]  ;;  %v6006_v20 = vld [vmem:[%s8071_s16 + $0xe8] sm:$0xff]  ;;  %v6062_v21 = vld [vmem:[%s8071_s16 + $0xb8] sm:$0xff] }
 0x5e9   : > { %v1816_v51 = vmul.f32 %v1794_v63, %v5784_v11  ;;  %v1815_v57 = vmul.f32 %v1794_v63, %v5803_v41  ;;  %v1814_v34 = vmul.f32 %v1793_v39, %v5779_v37  ;;  %v1813_v24 = vmul.f32 %v1793_v39, %v5798_v55  ;;  %2006 = vmatpush.msra.mxu3 %v6006_v20  ;;  %v4800_v63 = vld [vmem:[%s5311_s29 + $0xf0] sm:$0xff]  ;;  %v6046_v39 = vld [vmem:[%s8071_s16 + $0xc8] sm:$0xff] }
 0x5ea   : > { %v1836_v17 = vmax.f32 %v1820_v8, 0.0  ;;  %v1835_v6 = vmax.f32 %v1819_v58, 0.0  ;;  %v1834_v26 = vmax.f32 %v1818_v16, 0.0  ;;  %v1833_v38 = vmax.f32 %v1817_v23, 0.0  ;;  %v6014_v8 = vld [vmem:[%s8213_s1] ss:$0 sm:$0xff] }
 0x5eb   : > { %v1832_v48 = vmax.f32 %v1816_v51, 0.0  ;;  %v1831_v62 = vmax.f32 %v1815_v57, 0.0  ;;  %v1830_v10 = vmax.f32 %v1814_v34, 0.0  ;;  %v1812_v11 = vmul.f32 %v1792_v49, %v5767_v0  ;;  %v6025_v16 = vld [vmem:[%s8071_s16 + $0xd8] sm:$0xff]  ;;  %v4799_v23 = vld [vmem:[%s5311_s29 + $0xe8] sm:$0xff] }
 0x5ec   : > { %1837 = vmatpush.msrb.mxu0 %v1836_v17  ;;  %v1829_v56 = vmax.f32 %v1813_v24, 0.0  ;;  %v1811_v41 = vmul.f32 %v1792_v49, %v5782_v4  ;;  %v1810_v37 = vmul.f32 %v1791_v30, %v5763_v53  ;;  %v1809_v3 = vmul.f32 %v1791_v30, %v5777_v28  ;;  %v6020_v17 = vld [vmem:[%s8071_s16 + $0xd0] sm:$0xff]  ;;  %2007 = vmatpush.msra.mxu3 %v6025_v16  ;;  %v6070_v24 = vld [vmem:[%s8216_s30 + $0x48] sm:$0xff]  ;;  %v4797_v30 = vld [vmem:[%s5311_s29 + $0xd8] sm:$0xff] }
 0x5ed   : > { %v1828_v14 = vmax.f32 %v1812_v11, 0.0  ;;  %v1808_v44 = vmul.f32 %v1790_v2, %v5749_v32  ;;  %v1789_v0 = vperm.slane %v1779_v7, 0  ;;  %v1807_v33 = vmul.f32 %v1790_v2, %v5761_v52  ;;  %v5935_v32 = vld [vmem:[%s8216_s30] sm:$0xff]  ;;  %v5953_v52 = vld [vmem:[%s8216_s30 + $0x18] sm:$0xff]  ;;  %v5983_v7 = vld [vmem:[%s8071_s16 + $0xf0] sm:$0xff] }
 0x5ee   : > { %1838 = vmatpush.msrb.mxu0 %v1835_v6  ;;  %v1827_v46 = vmax.f32 %v1811_v41, 0.0  ;;  %v1826_v55 = vmax.f32 %v1810_v37, 0.0  ;;  %v1825_v45 = vmax.f32 %v1809_v3, 0.0  ;;  %1940 = vmatpush.msra.mxu2 %v5983_v7  ;;  %v2835_v58 = vmul.f32 %v6014_v8, %v4801_v60  ;;  %v6032_v6 = vld [vmem:[%s8071_s16 + $0xc0] sm:$0xff]  ;;  %v6082_v11 = vld [vmem:[%s8071_s16 + $0xa8] sm:$0xff]  ;;  %v6095_v41 = vld [vmem:[%s8071_s16 + $0x98] sm:$0xff] }
 0x5ef   : > { %v1824_v4 = vmax.f32 %v1808_v44, 0.0  ;;  %v1806_v50 = vmul.f32 %v1789_v0, %v5719_v35  ;;  %v1823_v53 = vmax.f32 %v1807_v33, 0.0  ;;  %v1805_v54 = vmul.f32 %v1789_v0, %v5727_v18  ;;  %v5941_v35 = vld [vmem:[%s8216_s30 + $0x8] sm:$0xff]  ;;  %v5947_v18 = vld [vmem:[%s8216_s30 + $0x10] sm:$0xff]  ;;  %2008 = vmatpush.msra.mxu3 %v6046_v39  ;;  %v6103_v2 = vld [vmem:[%s8071_s16 + $0x80] sm:$0xff] }
 0x5f0   : > { %1839 = vmatpush.msrb.mxu0 %v1834_v26  ;;  %1941 = vmatpush.msra.mxu2 %v6001_v43  ;;  %v2834_v31 = vmul.f32 %v6014_v8, %v4800_v63  ;;  %v6038_v26 = vld [vmem:[%s8215_s3] ss:$0 sm:$0xff]  ;;  %v2833_v22 = vmul.f32 %v6014_v8, %v4799_v23  ;;  %v2831_v1 = vmul.f32 %v6014_v8, %v4797_v30  ;;  %v6120_v33 = vld [vmem:[%s8071_s16 + $0x70] sm:$0xff]  ;;  %v6148_v60 = vld [vmem:[%s8071_s16 + $0x68] sm:$0xff]  ;;  %s4683_s3 = sshll.u32 %s4679_s9, 4  ;;  %s4684_s3 = int_to_ptr.hbm [resolvable:$true] %s4683_s3 }
 0x5f1   : > { %v1822_v27 = vmax.f32 %v1806_v50, 0.0  ;;  %v1821_v28 = vmax.f32 %v1805_v54, 0.0  ;;  %v2851_v51 = vadd.f32 %v6038_v26, %v2835_v58  ;;  %2009 = vmatpush.msra.mxu3 %v6062_v21  ;;  %v4794_v0 = vld [vmem:[%s5311_s29 + $0xc0] sm:$0xff]  ;;  %v4793_v58 = vld [vmem:[%s5311_s29 + $0xb8] sm:$0xff] }
 0x5f2   : > { %1840 = vmatpush.msrb.mxu0 %v1833_v38  ;;  %1942 = vmatpush.msra.mxu2 %v6020_v17  ;;  %v4798_v38 = vld [vmem:[%s5311_s29 + $0xe0] sm:$0xff]  ;;  %v2850_v57 = vadd.f32 %v6038_v26, %v2834_v31  ;;  %v2849_v49 = vadd.f32 %v6038_v26, %v2833_v22  ;;  %v2847_v3 = vadd.f32 %v6038_v26, %v2831_v1  ;;  %v6156_v31 = vld [vmem:[%s8071_s16 + $0x50] sm:$0xff]  ;;  %v6161_v23 = vld [vmem:[%s8071_s16 + $0x58] sm:$0xff] }
 0x5f3   : > { %v2832_v34 = vmul.f32 %v6014_v8, %v4798_v38  ;;  %2010 = vmatpush.msra.mxu3 %v6082_v11  ;;  %v2827_v63 = vmul.f32 %v6014_v8, %v4793_v58  ;;  %v6169_v38 = vld [vmem:[%s8071_s16 + $0x40] sm:$0xff]  ;;  %v6222_v58 = vld [vmem:[%s8071_s16 + $0x10] sm:$0xff] }
 0x5f4   : > { %1841 = vmatpush.msrb.mxu0 %v1832_v48  ;;  %v6054_v48 = vld [vmem:[%s8071_s16 + $0xb0] sm:$0xff]  ;;  %1943 = vmatpush.msra.mxu2 %v6032_v6  ;;  %v4790_v30 = vld [vmem:[%s5311_s29 + $0xa0] sm:$0xff] }
 0x5f5   : > { %2011 = vmatpush.msra.mxu3 %v6095_v41 }
 0x5f6   : > { %1842 = vmatpush.msrb.mxu0 %v1831_v62  ;;  %1944 = vmatpush.msra.mxu2 %v6054_v48  ;;  %v2848_v62 = vadd.f32 %v6038_v26, %v2832_v34  ;;  %v2843_v34 = vadd.f32 %v6038_v26, %v2827_v63  ;;  %v6227_v63 = vld [vmem:[%s8071_s16 + $0x18] sm:$0xff] }
 0x5f8   : > { %1843 = vmatpush.msrb.mxu0 %v1830_v10  ;;  %v6077_v10 = vld [vmem:[%s8071_s16 + $0xa0] sm:$0xff] }
 0x5f9   : > { %1945 = vmatpush.msra.mxu2 %v6077_v10 }
 0x5fa   : > { %1844 = vmatpush.msrb.mxu0 %v1829_v56  ;;  %v6090_v56 = vld [vmem:[%s8071_s16 + $0x90] sm:$0xff] }
 0x5fb   : > { %1946 = vmatpush.msra.mxu2 %v6090_v56 }
 0x5fc   : > { %1845 = vmatpush.msrb.mxu0 %v1828_v14  ;;  %v4796_v14 = vld [vmem:[%s5311_s29 + $0xd0] sm:$0xff] }
 0x5fd   : > { %v2830_v37 = vmul.f32 %v6014_v8, %v4796_v14  ;;  %1947 = vmatpush.msra.mxu2 %v6103_v2  ;;  %v6186_v14 = vld [vmem:[%s8071_s16 + $0x30] sm:$0xff] }
 0x5fe   : > { %1846 = vmatpush.msrb.mxu0 %v1827_v46  ;;  %v4795_v46 = vld [vmem:[%s5311_s29 + $0xc8] sm:$0xff] }
 0x5ff   : > { %v2829_v44 = vmul.f32 %v6014_v8, %v4795_v46  ;;  %1948 = vmatpush.msra.mxu2 %v6120_v33 }
 0x600   : > { %1847 = vmatpush.msrb.mxu0 %v1826_v55  ;;  %v6111_v55 = vld [vmem:[%s8071_s16 + $0x88] sm:$0xff] }
 0x601   : > { %v2845_v50 = vadd.f32 %v6038_v26, %v2829_v44  ;;  %2012 = vmatpush.msra.mxu3 %v6111_v55 }
 0x602   : > { %1848 = vmatpush.msrb.mxu0 %v1825_v45  ;;  %v2846_v45 = vadd.f32 %v6038_v26, %v2830_v37  ;;  %v2824_v37 = vmul.f32 %v6014_v8, %v4790_v30  ;;  %v6244_v30 = vld [vmem:[%s8071_s16 + $0x8] sm:$0xff] }
 0x604   : > { %1849 = vmatpush.msrb.mxu0 %v1824_v4  ;;  %v2828_v4 = vmul.f32 %v6014_v8, %v4794_v0  ;;  %v2840_v44 = vadd.f32 %v6038_v26, %v2824_v37  ;;  %v6202_v0 = vld [vmem:[%s8216_s30 + $0x58] sm:$0xff] }
 0x606   : > { %1850 = vmatpush.msrb.mxu0 %v1823_v53  ;;  %v6128_v53 = vld [vmem:[%s8071_s16 + $0x78] sm:$0xff]  ;;  %v2844_v54 = vadd.f32 %v6038_v26, %v2828_v4  ;;  %v6214_v4 = vld [vmem:[%s8071_s16 + $0x28] sm:$0xff] }
 0x607   : > { %2013 = vmatpush.msra.mxu3 %v6128_v53 }
 0x608   : > { %1851 = vmatpush.msrb.mxu0 %v1822_v27  ;;  %v6136_v27 = vld [vmem:[%s8216_s30 + $0x50] sm:$0xff] }
 0x609   : > { %2014 = vmatpush.msra.mxu3 %v6148_v60 }
 0x60a   : > { %1852 = vmatpush.msrb.mxu0 %v1821_v28  ;;  %v6143_v28 = vld [vmem:[%s8071_s16 + $0x60] sm:$0xff] }
 0x60b   : > { %1853 = vmatmul.f32.vlgmr.msrb.gmra.mxu0 %v5935_v32  ;;  %1949 = vmatpush.msra.mxu2 %v6143_v28 }
 0x60c   : > { %2852 = vmatpush.msra.mxu0 %v2851_v51  ;;  %v4792_v51 = vld [vmem:[%s5311_s29 + $0xb0] sm:$0xff]  ;;  %2015 = vmatpush.msra.mxu3 %v6161_v23 }
 0x60d   : > { %v2826_v22 = vmul.f32 %v6014_v8, %v4792_v51  ;;  %1950 = vmatpush.msra.mxu2 %v6156_v31  ;;  %v4788_v51 = vld [vmem:[%s5311_s29 + $0x90] sm:$0xff] }
 0x60e   : > { %2853 = vmatpush.msra.mxu0 %v2850_v57  ;;  %v4791_v57 = vld [vmem:[%s5311_s29 + $0xa8] sm:$0xff] }
 0x60f   : > { %v2842_v1 = vadd.f32 %v6038_v26, %v2826_v22  ;;  %1951 = vmatpush.msra.mxu2 %v6169_v38  ;;  %v2822_v22 = vmul.f32 %v6014_v8, %v4788_v51 }
 0x610   : > { %2854 = vmatpush.msra.mxu0 %v2849_v49  ;;  %v6177_v49 = vld [vmem:[%s8071_s16 + $0x48] sm:$0xff] }
 0x611   : > { %2016 = vmatpush.msra.mxu3 %v6177_v49  ;;  %1952 = vmatpush.msra.mxu2 %v6186_v14 }
 0x612   : > { %2855 = vmatpush.msra.mxu0 %v2848_v62  ;;  %v2825_v62 = vmul.f32 %v6014_v8, %v4791_v57 }
 0x613   : > { %1856 = vmatmul.f32.gmra.mxu0 %v5941_v35 }
 0x614   : > { %2856 = vmatpush.msra.mxu0 %v2847_v3  ;;  %v2841_v46 = vadd.f32 %v6038_v26, %v2825_v62  ;;  %v6194_v3 = vld [vmem:[%s8071_s16 + $0x38] sm:$0xff]  ;;  %v6239_v62 = vld [vmem:[%s8071_s16] sm:$0xff] }
 0x615   : > { %2017 = vmatpush.msra.mxu3 %v6194_v3 }
 0x616   : > { %2857 = vmatpush.msra.mxu0 %v2846_v45  ;;  %v6209_v45 = vld [vmem:[%s8071_s16 + $0x20] sm:$0xff] }
 0x617   : > { %1953 = vmatpush.msra.mxu2 %v6209_v45  ;;  %2018 = vmatpush.msra.mxu3 %v6214_v4 }
 0x618   : > { %2858 = vmatpush.msra.mxu0 %v2845_v50  ;;  %v4789_v50 = vld [vmem:[%s5311_s29 + $0x98] sm:$0xff] }
 0x619   : > { %1954 = vmatpush.msra.mxu2 %v6222_v58  ;;  %2019 = vmatpush.msra.mxu3 %v6227_v63 }
 0x61a   : > { %2859 = vmatpush.msra.mxu0 %v2844_v54  ;;  %v2823_v54 = vmul.f32 %v6014_v8, %v4789_v50  ;;  %v4979_v50 = vld [vmem:[%s8224_s25] sm:$0x7] }
 0x61b   : > { %1859 = vmatmul.f32.gmra.mxu0 %v5947_v18  ;;  %1955 = vmatpush.msra.mxu2 %v6239_v62 }
 0x61c   : > { %2860 = vmatpush.msra.mxu0 %v2843_v34  ;;  %v2839_v57 = vadd.f32 %v6038_v26, %v2823_v54  ;;  %v2838_v34 = vadd.f32 %v6038_v26, %v2822_v22  ;;  %2020 = vmatpush.msra.mxu3 %v6244_v30  ;;  %v6259_v54 = vld [vmem:[%s8216_s30 + $0x60] sm:$0xff]  ;;  %v4981_v22 = vld [vmem:[%s8230_s7 + $0x38] sm:$0xff] }
 0x61d   : > { %4802 = vmatpush.msk.msrb.mxu2 %vm927_vm0, %v4979_v50  ;;  %v8258_v50 = vld [vmem:[#allocation16_spill] sm:$0xff]  ;;  %vm8149_vm0 = vcmask 261120  }
 0x61e   : > { %2861 = vmatpush.msra.mxu0 %v2842_v1  ;;  %v4787_v1 = vld [vmem:[%s5311_s29 + $0x88] sm:$0xff]  ;;  %3231 = vmatpush.msrb.mxu3 %v4981_v22  ;;  %v6313_v22 = vld [vmem:[%s8216_s30 + $0x78] sm:$0xff] }
 0x61f   : > { %v2821_v37 = vmul.f32 %v6014_v8, %v4787_v1  ;;  %v4984_v1 = vld [vmem:[%s8230_s7 + $0x20] sm:$0xff] }
 0x620   : > { %2862 = vmatpush.msra.mxu0 %v2841_v46  ;;  %v4786_v46 = vld [vmem:[%s5311_s29 + $0x80] sm:$0xff] }
 0x621   : > { %v2837_v51 = vadd.f32 %v6038_v26, %v2821_v37  ;;  %v4986_v37 = vld [vmem:[%s8230_s7 + $0x18] sm:$0xff] }
 0x622   : > { %2863 = vmatpush.msra.mxu0 %v2840_v44  ;;  %v2820_v44 = vmul.f32 %v6014_v8, %v4786_v46  ;;  %v4989_v46 = vld [vmem:[%s8230_s7] sm:$0xff] }
 0x623   : > { %1862 = vmatmul.f32.gmra.mxu0 %v5953_v52 }
 0x624   : > { %2864 = vmatpush.msra.mxu0 %v2839_v57  ;;  %v2836_v8 = vadd.f32 %v6038_v26, %v2820_v44  ;;  %v4982_v57 = vld [vmem:[%s8230_s7 + $0x30] sm:$0xff]  ;;  %v6281_v26 = vld [vmem:[%s8216_s30 + $0x68] sm:$0xff] }
 0x625   : > { %3232 = vmatpush.msrb.mxu3 %v4982_v57  ;;  %v6303_v44 = vld [vmem:[%s8216_s30 + $0x70] sm:$0xff] }
 0x626   : > { %2865 = vmatpush.msra.mxu0 %v2838_v34  ;;  %v4983_v34 = vld [vmem:[%s8230_s7 + $0x28] sm:$0xff]  ;;  %v8262_v57 = vld [vmem:[#allocation20_spill] sm:$0xff] }
 0x627   : > { %3233 = vmatpush.msrb.mxu3 %v4983_v34 }
 0x628   : > { %2866 = vmatpush.msra.mxu0 %v2837_v51  ;;  %v8259_v51 = vld [vmem:[#allocation17_spill] sm:$0xff] }
 0x629   : > { %3234 = vmatpush.msrb.mxu3 %v4984_v1  ;;  %v8263_v1 = vld [vmem:[#allocation21_spill] sm:$0xff] }
 0x62a   : > { %2867 = vmatpush.msra.mxu0 %v2836_v8  ;;  %v8261_v8 = vld [vmem:[#allocation19_spill] sm:$0xff] }
 0x62b   : > { %1865 = vmatmul.f32.gmra.mxu0 %v5959_v59  ;;  %3235 = vmatpush.msrb.mxu3 %v4986_v37  ;;  %v4992_v37 = vld [vmem:[%s8065_s10 + $0x38] sm:$0xff] }
 0x62c   : > { %3680 = vmatpush.msrb.mxu0 %v5711_v5  ;;  %v4987_v5 = vld [vmem:[%s8230_s7 + $0x10] sm:$0xff] }
 0x62d   : > { %3236 = vmatpush.msrb.mxu3 %v4987_v5  ;;  %v8264_v5 = vld [vmem:[#allocation22_spill] sm:$0xff] }
 0x62e   : > { %3681 = vmatpush.msrb.mxu0 %v5716_v25  ;;  %v4988_v25 = vld [vmem:[%s8230_s7 + $0x8] sm:$0xff] }
 0x62f   : > { %3237 = vmatpush.msrb.mxu3 %v4988_v25  ;;  %v4993_v25 = vld [vmem:[%s8065_s10 + $0x30] sm:$0xff] }
 0x630   : > { %3682 = vmatpush.msrb.mxu0 %v5724_v19  ;;  %v8256_v19 = vld [vmem:[#allocation14_spill] sm:$0xff] }
 0x631   : > { %3238 = vmatpush.msrb.mxu3 %v4989_v46  ;;  %v8265_v46 = vld [vmem:[#allocation23_spill] sm:$0xff] }
 0x632   : > { %3683 = vmatpush.msrb.mxu0 %v5732_v36  ;;  %v8257_v36 = vld [vmem:[#allocation15_spill] sm:$0xff] }
 0x633   : > { %1868 = vmatmul.f32.gmra.mxu0 %v5965_v47 }
 0x634   : > { %3684 = vmatpush.msrb.mxu0 %v5747_v15  ;;  %v8260_v15 = vld [vmem:[#allocation18_spill] sm:$0xff] }
 0x636   : > { %3685 = vmatpush.msrb.mxu0 %v8256_v19  ;;  %v4994_v19 = vld [vmem:[%s8065_s10 + $0x28] sm:$0xff] }
 0x638   : > { %3686 = vmatpush.msrb.mxu0 %v8257_v36  ;;  %v8266_v36 = vld [vmem:[#allocation24_spill] sm:$0xff] }
 0x63a   : > { %3687 = vmatpush.msrb.mxu0 %v8258_v50  ;;  %v4998_v50 = vld [vmem:[%s8065_s10 + $0x8] sm:$0xff] }
 0x63b   : > { %1871 = vmatmul.f32.gmra.mxu0 %v5971_v61 }
 0x63c   : > { %3688 = vmatpush.msrb.mxu0 %v8259_v51 }
 0x63e   : > { %3689 = vmatpush.msrb.mxu0 %v8260_v15 }
 0x640   : > { %3690 = vmatpush.msrb.mxu0 %v8261_v8 }
 0x642   : > { %3691 = vmatpush.msrb.mxu0 %v8262_v57 }
 0x643   : > { %1874 = vmatmul.f32.gmra.mxu0 %v5977_v12 }
 0x644   : > { %3692 = vmatpush.msrb.mxu0 %v8263_v1 }
 0x646   : > { %3693 = vmatpush.msrb.mxu0 %v8264_v5 }
 0x648   : > { %3694 = vmatpush.msrb.mxu0 %v8265_v46 }
 0x64a   : > { %3695 = vmatpush.msrb.mxu0 %v8266_v36 }
 0x64b   : > { %1877 = vmatmul.f32.gmra.mxu0 %v5995_v40 }
 0x653   : > { %1880 = vmatmul.f32.gmra.mxu0 %v6070_v24 }
 0x65b   : > { %1883 = vmatmul.f32.gmra.mxu0 %v6136_v27 }
 0x663   : > { %1886 = vmatmul.f32.gmra.mxu0 %v6202_v0 }
 0x66b   : > { %1889 = vmatmul.f32.gmra.mxu0 %v6259_v54 }
 0x673   : > { %1892 = vmatmul.f32.gmra.mxu0 %v6281_v26 }
 0x67b   : > { %1895 = vmatmul.f32.gmra.mxu0 %v6303_v44 }
 0x683   : > { %1898 = vmatmul.f32.gmra.mxu0 %v6313_v22 }
 0x688   : > { %v1854_v34 = vpop.f32.mrf.mxu0 }
 0x689   : > { %1956 = vmatmul.f32.vlgmr.msra.gmra.mxu2 %v1854_v34  ;;  %2021 = vmatmul.f32.vlgmr.msra.gmra.mxu3 %v1854_v34 }
 0x68a   : > { %3463 = vmatpush.msra.mxu3 %v4992_v37  ;;  %3718 = vmatpush.msra.mxu2 %v5900_v29  ;;  %v4995_v29 = vld [vmem:[%s8065_s10 + $0x20] sm:$0xff] }
 0x68b   : > { %2868 = vmatmul.f32.vlgmr.msra.gmra.mxu0 %v5935_v32 }
 0x68c   : > { %3464 = vmatpush.msra.mxu3 %v4993_v25  ;;  %3719 = vmatpush.msra.mxu2 %v5905_v9  ;;  %v4996_v9 = vld [vmem:[%s8065_s10 + $0x18] sm:$0xff] }
 0x68d   : > { %3864 = vmatpush.msra.mxu0 %v5983_v7  ;;  %v4997_v7 = vld [vmem:[%s8065_s10 + $0x10] sm:$0xff] }
 0x68e   : > { %3465 = vmatpush.msra.mxu3 %v4994_v19 }
 0x68f   : > { %3865 = vmatpush.msra.mxu0 %v6001_v43  ;;  %v4999_v43 = vld [vmem:[%s8065_s10] sm:$0xff] }
 0x690   : > { %v1857_v32 = vpop.f32.mrf.mxu0  ;;  %3466 = vmatpush.msra.mxu3 %v4995_v29 }
 0x691   : > { %1959 = vmatmul.f32.gmra.mxu2 %v1857_v32  ;;  %2024 = vmatmul.f32.gmra.mxu3 %v1857_v32 }
 0x692   : > { %3467 = vmatpush.msra.mxu3 %v4996_v9  ;;  %3866 = vmatpush.msra.mxu0 %v6020_v17 }
 0x693   : > { %2871 = vmatmul.f32.gmra.mxu0 %v5941_v35 }
 0x694   : > { %3468 = vmatpush.msra.mxu3 %v4997_v7  ;;  %3867 = vmatpush.msra.mxu0 %v6032_v6 }
 0x696   : > { %3469 = vmatpush.msra.mxu3 %v4998_v50  ;;  %3868 = vmatpush.msra.mxu0 %v6054_v48 }
 0x698   : > { %v1860_v51 = vpop.f32.mrf.mxu0  ;;  %3470 = vmatpush.msra.mxu3 %v4999_v43  ;;  %3869 = vmatpush.msra.mxu0 %v6077_v10 }
 0x699   : > { %1962 = vmatmul.f32.gmra.mxu2 %v1860_v51  ;;  %2027 = vmatmul.f32.gmra.mxu3 %v1860_v51 }
 0x69a   : > { %3870 = vmatpush.msra.mxu0 %v6090_v56 }
 0x69b   : > { %2874 = vmatmul.f32.gmra.mxu0 %v5947_v18 }
 0x69c   : > { %3871 = vmatpush.msra.mxu0 %v6103_v2 }
 0x69e   : > { %3872 = vmatpush.msra.mxu0 %v6120_v33 }
 0x6a0   : > { %v1863_v35 = vpop.f32.mrf.mxu0  ;;  %3873 = vmatpush.msra.mxu0 %v6143_v28 }
 0x6a1   : > { %1965 = vmatmul.f32.gmra.mxu2 %v1863_v35  ;;  %2030 = vmatmul.f32.gmra.mxu3 %v1863_v35 }
 0x6a2   : > { %3874 = vmatpush.msra.mxu0 %v6156_v31 }
 0x6a3   : > { %2877 = vmatmul.f32.gmra.mxu0 %v5953_v52 }
 0x6a4   : > { %3875 = vmatpush.msra.mxu0 %v6169_v38 }
 0x6a6   : > { %3876 = vmatpush.msra.mxu0 %v6186_v14  ;;  %v1934_v14 = vld [vmem:[%s8072_s17] sm:$0x3] }
 0x6a8   : > { %v1866_v17 = vpop.f32.mrf.mxu0  ;;  %3877 = vmatpush.msra.mxu0 %v6209_v45 }
 0x6a9   : > { %1968 = vmatmul.f32.gmra.mxu2 %v1866_v17  ;;  %2033 = vmatmul.f32.gmra.mxu3 %v1866_v17 }
 0x6aa   : > { %3878 = vmatpush.msra.mxu0 %v6222_v58 }
 0x6ab   : > { %2880 = vmatmul.f32.gmra.mxu0 %v5959_v59 }
 0x6ac   : > { %3879 = vmatpush.msra.mxu0 %v6239_v62 }
 0x6b0   : > { %v1869_v18 = vpop.f32.mrf.mxu0 }
 0x6b1   : > { %1971 = vmatmul.f32.gmra.mxu2 %v1869_v18  ;;  %2036 = vmatmul.f32.gmra.mxu3 %v1869_v18  ;;  %v2373_v18 = vld [vmem:[%s8073_s18 + $0x78] sm:$0xff] }
 0x6b2   : > { %2426 = vmatpush.msrb.mxu1 %v2373_v18 }
 0x6b3   : > { %2883 = vmatmul.f32.gmra.mxu0 %v5965_v47 }
 0x6b8   : > { %v1872_v52 = vpop.f32.mrf.mxu0 }
 0x6b9   : > { %1974 = vmatmul.f32.gmra.mxu2 %v1872_v52  ;;  %2039 = vmatmul.f32.gmra.mxu3 %v1872_v52 }
 0x6bb   : > { %2886 = vmatmul.f32.gmra.mxu0 %v5971_v61 }
 0x6c0   : > { %v1875_v6 = vpop.f32.mrf.mxu0 }
 0x6c1   : > { %1977 = vmatmul.f32.gmra.mxu2 %v1875_v6  ;;  %2042 = vmatmul.f32.gmra.mxu3 %v1875_v6 }
 0x6c3   : > { %2889 = vmatmul.f32.gmra.mxu0 %v5977_v12 }
 0x6c8   : > { %v1878_v59 = vpop.f32.mrf.mxu0 }
 0x6c9   : > { %1980 = vmatmul.f32.gmra.mxu2 %v1878_v59  ;;  %2045 = vmatmul.f32.gmra.mxu3 %v1878_v59 }
 0x6cb   : > { %2892 = vmatmul.f32.gmra.mxu0 %v5995_v40 }
 0x6d0   : > { %v1881_v48 = vpop.f32.mrf.mxu0 }
 0x6d1   : > { %1983 = vmatmul.f32.gmra.mxu2 %v1881_v48  ;;  %2048 = vmatmul.f32.gmra.mxu3 %v1881_v48 }
 0x6d3   : > { %2895 = vmatmul.f32.gmra.mxu0 %v6070_v24 }
 0x6d8   : > { %v1884_v47 = vpop.f32.mrf.mxu0 }
 0x6d9   : > { %1986 = vmatmul.f32.gmra.mxu2 %v1884_v47  ;;  %2051 = vmatmul.f32.gmra.mxu3 %v1884_v47 }
 0x6db   : > { %2898 = vmatmul.f32.gmra.mxu0 %v6136_v27 }
 0x6e0   : > { %v1887_v61 = vpop.f32.mrf.mxu0 }
 0x6e1   : > { %1989 = vmatmul.f32.gmra.mxu2 %v1887_v61  ;;  %2054 = vmatmul.f32.gmra.mxu3 %v1887_v61  ;;  %v2372_v61 = vld [vmem:[%s8073_s18 + $0x70] sm:$0xff] }
 0x6e2   : > { %2427 = vmatpush.msrb.mxu1 %v2372_v61 }
 0x6e3   : > { %2901 = vmatmul.f32.gmra.mxu0 %v6202_v0 }
 0x6e8   : > { %v1890_v12 = vpop.f32.mrf.mxu0 }
 0x6e9   : > { %1992 = vmatmul.f32.gmra.mxu2 %v1890_v12  ;;  %2057 = vmatmul.f32.gmra.mxu3 %v1890_v12 }
 0x6eb   : > { %2904 = vmatmul.f32.gmra.mxu0 %v6259_v54 }
 0x6f0   : > { %v1893_v40 = vpop.f32.mrf.mxu0 }
 0x6f1   : > { %1995 = vmatmul.f32.gmra.mxu2 %v1893_v40  ;;  %2060 = vmatmul.f32.gmra.mxu3 %v1893_v40 }
 0x6f3   : > { %2907 = vmatmul.f32.gmra.mxu0 %v6281_v26 }
 0x6f8   : > { %v1896_v24 = vpop.f32.mrf.mxu0 }
 0x6f9   : > { %1998 = vmatmul.f32.gmra.mxu2 %v1896_v24  ;;  %2063 = vmatmul.f32.gmra.mxu3 %v1896_v24 }
 0x6fb   : > { %2910 = vmatmul.f32.gmra.mxu0 %v6303_v44 }
 0x700   : > { %v1899_v10 = vpop.f32.mrf.mxu0 }
 0x701   : > { %2001 = vmatmul.f32.gmra.mxu2 %v1899_v10  ;;  %2066 = vmatmul.f32.gmra.mxu3 %v1899_v10 }
 0x703   : > { %2913 = vmatmul.f32.gmra.mxu0 %v6313_v22 }
 0x708   : > { %v2869_v56 = vpop.f32.mrf.mxu0 }
 0x709   : > { %4803 = vmatmul.msk.f32.vlgmr.msrb.gmra.mxu2 %vm878_vm1, %v2869_v56 }
 0x70a   : > { %3929 = vmatpush.msrb.mxu2 %v5988_v13 }
 0x70c   : > { %v1957_v2 = vpop.f32.mrf.mxu2  ;;  %v2022_v33 = vpop.f32.mrf.mxu3  ;;  %3930 = vmatpush.msrb.mxu2 %v6006_v20 }
 0x70e   : > { %3931 = vmatpush.msrb.mxu2 %v6025_v16 }
 0x710   : > { %v2872_v27 = vpop.f32.mrf.mxu0  ;;  %3932 = vmatpush.msrb.mxu2 %v6046_v39 }
 0x711   : > { %4804 = vmatmul.msk.f32.gmra.mxu2 %vm878_vm1, %v2872_v27 }
 0x712   : > { %3933 = vmatpush.msrb.mxu2 %v6062_v21 }
 0x714   : > { %v1960_v28 = vpop.f32.mrf.mxu2  ;;  %v2025_v31 = vpop.f32.mrf.mxu3  ;;  %3934 = vmatpush.msrb.mxu2 %v6082_v11 }
 0x716   : > { %3935 = vmatpush.msrb.mxu2 %v6095_v41 }
 0x718   : > { %v2875_v13 = vpop.f32.mrf.mxu0  ;;  %3936 = vmatpush.msrb.mxu2 %v6111_v55 }
 0x719   : > { %4805 = vmatmul.msk.f32.gmra.mxu2 %vm878_vm1, %v2875_v13 }
 0x71a   : > { %3937 = vmatpush.msrb.mxu2 %v6128_v53 }
 0x71c   : > { %v1963_v20 = vpop.f32.mrf.mxu2  ;;  %v2028_v16 = vpop.f32.mrf.mxu3  ;;  %3938 = vmatpush.msrb.mxu2 %v6148_v60 }
 0x71e   : > { %3939 = vmatpush.msrb.mxu2 %v6161_v23 }
 0x720   : > { %v2878_v39 = vpop.f32.mrf.mxu0  ;;  %3940 = vmatpush.msrb.mxu2 %v6177_v49 }
 0x721   : > { %4806 = vmatmul.msk.f32.gmra.mxu2 %vm878_vm1, %v2878_v39  ;;  %v2370_v39 = vld [vmem:[%s8073_s18 + $0x60] sm:$0xff] }
 0x722   : > { %3941 = vmatpush.msrb.mxu2 %v6194_v3  ;;  %v6408_v3 = vperm.slane %v1934_v14, 0 }
 0x724   : > { %v1966_v21 = vpop.f32.mrf.mxu2  ;;  %v2031_v11 = vpop.f32.mrf.mxu3  ;;  %3942 = vmatpush.msrb.mxu2 %v6214_v4  ;;  %8267 = vst [vmem:[#allocation14_spill] sm:$0xff] %v6408_v3  ;;  %v6414_v4 = vperm.slane %v1934_v14, 1  ;;  %v1961_v58 = vadd.f32 %v1960_v28, %v6408_v3  ;;  %v1958_v62 = vadd.f32 %v1957_v2, %v6408_v3  ;;  %v1964_v37 = vadd.f32 %v1963_v20, %v6408_v3 }
 0x725   : > { %v1967_v22 = vadd.f32 %v1966_v21, %v6408_v3 }
 0x726   : > { %3943 = vmatpush.msrb.mxu2 %v6227_v63  ;;  %8268 = vst [vmem:[#allocation15_spill] sm:$0xff] %v6414_v4  ;;  %v2026_v63 = vadd.f32 %v2025_v31, %v6414_v4  ;;  %v2023_v54 = vadd.f32 %v2022_v33, %v6414_v4  ;;  %v6421_v26 = vmax.f32 %v1961_v58, 0.0  ;;  %v6425_v15 = vmax.f32 %v1958_v62, 0.0  ;;  %v2371_v33 = vld [vmem:[%s8073_s18 + $0x68] sm:$0xff] }
 0x727   : > { %v2032_v25 = vadd.f32 %v2031_v11, %v6414_v4  ;;  %v6440_v46 = vmax.f32 %v1967_v22, 0.0  ;;  %v2029_v32 = vadd.f32 %v2028_v16, %v6414_v4  ;;  %v6446_v9 = vmax.f32 %v1964_v37, 0.0  ;;  %2428 = vmatpush.msrb.mxu1 %v2371_v33  ;;  %v2367_v37 = vld [vmem:[%s8073_s18 + $0x48] sm:$0xff] }
 0x728   : > { %v2881_v41 = vpop.f32.mrf.mxu0  ;;  %3944 = vmatpush.msrb.mxu2 %v6244_v30  ;;  %v6423_v44 = vmax.f32 %v2026_v63, 0.0  ;;  %v6432_v34 = vmax.f32 %v2023_v54, 0.0  ;;  %v2102_v1 = vadd.f32 %v6421_v26, %v6425_v15  ;;  %v2230_v36 = vmax.f32 %v6425_v15, %v6421_v26 }
 0x729   : > { %4807 = vmatmul.msk.f32.gmra.mxu2 %vm878_vm1, %v2881_v41  ;;  %v6448_v50 = vmax.f32 %v2032_v25, 0.0  ;;  %v2116_v51 = vadd.f32 %v6440_v46, %v6446_v9  ;;  %v6462_v59 = vmax.f32 %v2029_v32, 0.0  ;;  %v2244_v10 = vmax.f32 %v6446_v9, %v6440_v46  ;;  %2429 = vmatpush.msrb.mxu1 %v2370_v39 }
 0x72a   : > { %v2109_v5 = vadd.f32 %v6423_v44, %v6432_v34  ;;  %v2103_v29 = vrot.slane %v2102_v1, 4  ;;  %v2231_v52 = vrot.slane %v2230_v36, 4  ;;  %v2237_v6 = vmax.f32 %v6432_v34, %v6423_v44 }
 0x72b   : > { %8269 = vst [vmem:[#allocation16_spill] sm:$0xff] %v6448_v50  ;;  %v2123_v40 = vadd.f32 %v6448_v50, %v6462_v59  ;;  %v2117_v24 = vrot.slane %v2116_v51, 4  ;;  %v2251_v13 = vmax.f32 %v6462_v59, %v6448_v50 }
 0x72c   : > { %v1969_v55 = vpop.f32.mrf.mxu2  ;;  %v6401_v53 = vpop.f32.mrf.mxu3  ;;  %v2110_v7 = vrot.slane %v2109_v5, 4  ;;  %8270 = vst [vmem:[#allocation17_spill] sm:$0xff] %v6462_v59  ;;  %v2104_v48 = vadd.f32 %v2103_v29, %v2102_v1  ;;  %v2232_v27 = vmax.f32 %v2230_v36, %v2231_v52  ;;  %v2238_v28 = vrot.slane %v2237_v6, 4 }
 0x72d   : > { %v1970_v47 = vadd.f32 %v1969_v55, %v6408_v3  ;;  %v2124_v11 = vrot.slane %v2123_v40, 4  ;;  %v2118_v41 = vadd.f32 %v2117_v24, %v2116_v51  ;;  %v2245_v55 = vrot.slane %v2244_v10, 4 }
 0x72e   : > { %v2111_v12 = vadd.f32 %v2110_v7, %v2109_v5  ;;  %v2105_v31 = vrot.slane %v2104_v48, 2  ;;  %v2233_v58 = vrot.slane %v2232_v27, 2  ;;  %v2239_v63 = vmax.f32 %v2237_v6, %v2238_v28  ;;  %v2365_v28 = vld [vmem:[%s8073_s18 + $0x38] sm:$0xff] }
 0x72f   : > { %v6480_v20 = vmax.f32 %v1970_v47, 0.0  ;;  %v2125_v1 = vadd.f32 %v2124_v11, %v2123_v40  ;;  %v2119_v5 = vrot.slane %v2118_v41, 2  ;;  %v2246_v25 = vmax.f32 %v2244_v10, %v2245_v55 }
 0x730   : > { %v2884_v60 = vpop.f32.mrf.mxu0  ;;  %v2112_v21 = vrot.slane %v2111_v12, 2  ;;  %v2106_v62 = vadd.f32 %v2105_v31, %v2104_v48  ;;  %v2234_v29 = vmax.f32 %v2232_v27, %v2233_v58  ;;  %v2240_v7 = vrot.slane %v2239_v63, 2  ;;  %v2366_v48 = vld [vmem:[%s8073_s18 + $0x40] sm:$0xff] }
 0x731   : > { %4808 = vmatmul.msk.f32.gmra.mxu2 %vm878_vm1, %v2884_v60  ;;  %v2035_v60 = vadd.f32 %v6401_v53, %v6414_v4  ;;  %v2368_v53 = vld [vmem:[%s8073_s18 + $0x50] sm:$0xff]  ;;  %v2126_v61 = vrot.slane %v2125_v1, 2  ;;  %v2120_v40 = vadd.f32 %v2119_v5, %v2118_v41  ;;  %v2247_v24 = vrot.slane %v2246_v25, 2 }
 0x732   : > { %v2113_v22 = vadd.f32 %v2112_v21, %v2111_v12  ;;  %v2107_v18 = vrot.slane %v2106_v62, 1  ;;  %v2235_v31 = vrot.slane %v2234_v29, 1  ;;  %v2364_v41 = vld [vmem:[%s8073_s18 + $0x30] sm:$0xff] }
 0x733   : > { %v2121_v58 = vrot.slane %v2120_v40, 1 }
 0x734   : > { %v1972_v23 = vpop.f32.mrf.mxu2  ;;  %v2037_v38 = vpop.f32.mrf.mxu3  ;;  %v2114_v47 = vrot.slane %v2113_v22, 1 }
 0x735   : > { %v1973_v43 = vadd.f32 %v1972_v23, %v6408_v3  ;;  %v2038_v16 = vadd.f32 %v2037_v38, %v6414_v4  ;;  %v2369_v38 = vld [vmem:[%s8073_s18 + $0x58] sm:$0xff] }
 0x736   : > { %2430 = vmatpush.msrb.mxu1 %v2369_v38  ;;  %v2115_v55 = vadd.f32 %v2114_v47, %v2113_v22  ;;  %v2122_v47 = vadd.f32 %v2121_v58, %v2120_v40  ;;  %v2360_v40 = vld [vmem:[%s8073_s18 + $0x10] sm:$0xff] }
 0x737   : > { %v6472_v56 = vmax.f32 %v1973_v43, 0.0  ;;  %v6497_v54 = vmax.f32 %v2038_v16, 0.0 }
 0x738   : > { %v2887_v49 = vpop.f32.mrf.mxu0  ;;  %2431 = vmatpush.msrb.mxu1 %v2368_v53 }
 0x739   : > { %4809 = vmatmul.msk.f32.gmra.mxu2 %vm878_vm1, %v2887_v49  ;;  %v2130_v23 = vadd.f32 %v6472_v56, %v6480_v20  ;;  %8271 = vst [vmem:[#allocation18_spill] sm:$0xff] %v6497_v54  ;;  %v2258_v51 = vmax.f32 %v6480_v20, %v6472_v56 }
 0x73a   : > { %2432 = vmatpush.msrb.mxu1 %v2367_v37 }
 0x73b   : > { %v2131_v36 = vrot.slane %v2130_v23, 4  ;;  %v2259_v16 = vrot.slane %v2258_v51, 4 }
 0x73c   : > { %v6410_v0 = vpop.f32.mrf.mxu2  ;;  %v6412_v45 = vpop.f32.mrf.mxu3  ;;  %2433 = vmatpush.msrb.mxu1 %v2366_v48 }
 0x73d   : > { %v2132_v10 = vadd.f32 %v2131_v36, %v2130_v23  ;;  %v2260_v5 = vmax.f32 %v2258_v51, %v2259_v16 }
 0x73e   : > { %2434 = vmatpush.msrb.mxu1 %v2365_v28 }
 0x740   : > { %v2890_v30 = vpop.f32.mrf.mxu0  ;;  %2435 = vmatpush.msrb.mxu1 %v2364_v41 }
 0x741   : > { %4810 = vmatmul.msk.f32.gmra.mxu2 %vm878_vm1, %v2890_v30  ;;  %v2252_v30 = vrot.slane %v2251_v13, 4 }
 0x743   : > { %v2253_v52 = vmax.f32 %v2251_v13, %v2252_v30  ;;  %v2241_v13 = vmax.f32 %v2239_v63, %v2240_v7  ;;  %v2248_v63 = vmax.f32 %v2246_v25, %v2247_v24  ;;  %v2133_v30 = vrot.slane %v2132_v10, 2  ;;  %v2362_v7 = vld [vmem:[%s8073_s18 + $0x20] sm:$0xff] }
 0x744   : > { %v6428_v8 = vpop.f32.mrf.mxu2  ;;  %v6430_v57 = vpop.f32.mrf.mxu3 }
 0x745   : > { %v1979_v43 = vadd.f32 %v6428_v8, %v6408_v3  ;;  %v1976_v8 = vadd.f32 %v6410_v0, %v6408_v3  ;;  %v2108_v0 = vadd.f32 %v2107_v18, %v2106_v62  ;;  %v2254_v21 = vrot.slane %v2253_v52, 2 }
 0x746   : > { %v2242_v37 = vrot.slane %v2241_v13, 1  ;;  %v2215_v18 = vmul.f32 %v2115_v55, %v5584_v42  ;;  %v2216_v55 = vmul.f32 %v2122_v47, %v5584_v42 }
 0x747   : > { %v6530_v39 = vmax.f32 %v1979_v43, 0.0  ;;  %v6537_v38 = vmax.f32 %v1976_v8, 0.0  ;;  %v2255_v36 = vmax.f32 %v2253_v52, %v2254_v21  ;;  %v2236_v43 = vmax.f32 %v2234_v29, %v2235_v31 }
 0x748   : > { %v2893_v19 = vpop.f32.mrf.mxu0  ;;  %v2134_v8 = vadd.f32 %v2133_v30, %v2132_v10  ;;  %v2243_v28 = vmax.f32 %v2241_v13, %v2242_v37  ;;  %v2261_v29 = vrot.slane %v2260_v5, 2 }
 0x749   : > { %4811 = vmatmul.msk.f32.gmra.mxu2 %vm878_vm1, %v2893_v19  ;;  %v6505_v19 = vmax.f32 %v2035_v60, 0.0  ;;  %v2127_v60 = vadd.f32 %v2126_v61, %v2125_v1  ;;  %v2144_v22 = vadd.f32 %v6530_v39, %v6537_v38  ;;  %v2214_v1 = vmul.f32 %v2108_v0, %v5584_v42 }
 0x74a   : > { %v2249_v61 = vrot.slane %v2248_v63, 1  ;;  %v2256_v16 = vrot.slane %v2255_v36, 1  ;;  %v2272_v21 = vmax.f32 %v6537_v38, %v6530_v39  ;;  %v2135_v58 = vrot.slane %v2134_v8, 1 }
 0x74b   : > { %8272 = vst [vmem:[#allocation19_spill] sm:$0xff] %v6505_v19  ;;  %v2137_v6 = vadd.f32 %v6497_v54, %v6505_v19  ;;  %v2265_v12 = vmax.f32 %v6505_v19, %v6497_v54  ;;  %v2128_v51 = vrot.slane %v2127_v60, 1  ;;  %v2145_v31 = vrot.slane %v2144_v22, 4 }
 0x74c   : > { %v6453_v35 = vpop.f32.mrf.mxu2  ;;  %v6455_v17 = vpop.f32.mrf.mxu3  ;;  %v2342_v10 = vadd.f32 %v2236_v43, %v2214_v1  ;;  %v2273_v43 = vrot.slane %v2272_v21, 4  ;;  %v2136_v47 = vadd.f32 %v2135_v58, %v2134_v8 }
 0x74d   : > { %v2138_v11 = vrot.slane %v2137_v6, 4  ;;  %v2266_v23 = vrot.slane %v2265_v12, 4  ;;  %v1982_v41 = vadd.f32 %v6453_v35, %v6408_v3  ;;  %v2146_v37 = vadd.f32 %v2145_v31, %v2144_v22 }
 0x74e   : > { %v2257_v35 = vmax.f32 %v2255_v36, %v2256_v16  ;;  %v2389_v36 = vld [vmem:[%s8073_s18 + $0xf8] sm:$0xff] }
 0x74f   : > { %v2139_v25 = vadd.f32 %v2138_v11, %v2137_v6  ;;  %v2267_v48 = vmax.f32 %v2265_v12, %v2266_v23  ;;  %v6568_v11 = vadd.f32 %v2243_v28, %v2215_v18  ;;  %v2250_v23 = vmax.f32 %v2248_v63, %v2249_v61  ;;  %v2358_v63 = vld [vmem:[%s8073_s18] sm:$0xff] }
 0x750   : > { %v2896_v2 = vpop.f32.mrf.mxu0 }
 0x751   : > { %4812 = vmatmul.msk.f32.gmra.mxu2 %vm878_vm1, %v2896_v2  ;;  %v2044_v2 = vadd.f32 %v6430_v57, %v6414_v4  ;;  %v2041_v57 = vadd.f32 %v6412_v45, %v6414_v4  ;;  %v2363_v45 = vld [vmem:[%s8073_s18 + $0x28] sm:$0xff]  ;;  %v2140_v0 = vrot.slane %v2139_v25, 2  ;;  %v2268_v13 = vrot.slane %v2267_v48, 2 }
 0x752   : > { %2436 = vmatpush.msrb.mxu1 %v2363_v45  ;;  %v2262_v45 = vmax.f32 %v2260_v5, %v2261_v29 }
 0x753   : > { %v6539_v53 = vmax.f32 %v2044_v2, 0.0  ;;  %v2361_v2 = vld [vmem:[%s8073_s18 + $0x18] sm:$0xff]  ;;  %v2269_v22 = vmax.f32 %v2267_v48, %v2268_v13  ;;  %v2147_v48 = vrot.slane %v2146_v37, 2 }
 0x754   : > { %v6490_v49 = vpop.f32.mrf.mxu2  ;;  %v6492_v14 = vpop.f32.mrf.mxu3  ;;  %2437 = vmatpush.msrb.mxu1 %v2362_v7  ;;  %v2141_v7 = vadd.f32 %v2140_v0, %v2139_v25  ;;  %v2344_v25 = vadd.f32 %v2250_v23, %v2216_v55  ;;  %v2263_v31 = vrot.slane %v2262_v45, 1  ;;  %v2218_v55 = vmul.f32 %v2136_v47, %v5584_v42  ;;  %v2385_v47 = vld [vmem:[%s8073_s18 + $0xd8] sm:$0xff] }
 0x755   : > { %8273 = vst [vmem:[#allocation20_spill] sm:$0xff] %v6539_v53  ;;  %v1985_v12 = vadd.f32 %v6490_v49, %v6408_v3  ;;  %v2359_v49 = vld [vmem:[%s8073_s18 + $0x8] sm:$0xff] }
 0x756   : > { %2438 = vmatpush.msrb.mxu1 %v2361_v2  ;;  %v2142_v8 = vrot.slane %v2141_v7, 1 }
 0x757   : > { %v6576_v1 = vmax.f32 %v1985_v12, 0.0 }
 0x758   : > { %v2899_v32 = vpop.f32.mrf.mxu0  ;;  %2439 = vmatpush.msrb.mxu1 %v2360_v40 }
 0x759   : > { %4813 = vmatmul.msk.f32.gmra.mxu2 %vm878_vm1, %v2899_v32  ;;  %v6548_v32 = vmax.f32 %v2041_v57, 0.0  ;;  %v2129_v57 = vadd.f32 %v2128_v51, %v2127_v60  ;;  %8275 = vst [vmem:[#allocation22_spill] sm:$0xff] %v6576_v1  ;;  %v2050_v60 = vadd.f32 %v6492_v14, %v6414_v4  ;;  %v6587_v51 = vmax.f32 %v1982_v41, 0.0 }
 0x75a   : > { %2440 = vmatpush.msrb.mxu1 %v2359_v49  ;;  %v2047_v14 = vadd.f32 %v6455_v17, %v6414_v4  ;;  %v2388_v17 = vld [vmem:[%s8073_s18 + $0xf0] sm:$0xff]  ;;  %v2387_v49 = vld [vmem:[%s8073_s18 + $0xe8] sm:$0xff] }
 0x75b   : > { %8274 = vst [vmem:[#allocation21_spill] sm:$0xff] %v6548_v32  ;;  %v2151_v24 = vadd.f32 %v6539_v53, %v6548_v32  ;;  %v2279_v18 = vmax.f32 %v6548_v32, %v6539_v53  ;;  %v2217_v5 = vmul.f32 %v2129_v57, %v5584_v42  ;;  %v2158_v12 = vadd.f32 %v6576_v1, %v6587_v51 }
 0x75c   : > { %v6523_v33 = vpop.f32.mrf.mxu2  ;;  %v6525_v27 = vpop.f32.mrf.mxu3  ;;  %2441 = vmatpush.msrb.mxu1 %v2358_v63  ;;  %v6599_v40 = vmax.f32 %v2050_v60, 0.0  ;;  %v2270_v57 = vrot.slane %v2269_v22, 1  ;;  %v6608_v13 = vmax.f32 %v2047_v14, 0.0  ;;  %v2286_v41 = vmax.f32 %v6587_v51, %v6576_v1 }
 0x75d   : > { %v2152_v30 = vrot.slane %v2151_v24, 4  ;;  %v2280_v16 = vrot.slane %v2279_v18, 4  ;;  %v6606_v0 = vadd.f32 %v2257_v35, %v2217_v5  ;;  %v2159_v60 = vrot.slane %v2158_v12, 4 }
 0x75e   : > { %8276 = vst [vmem:[#allocation23_spill] sm:$0xff] %v6599_v40  ;;  %2446 = vmatpush.msra.mxu1 %v2389_v36  ;;  %v2165_v35 = vadd.f32 %v6599_v40, %v6608_v13  ;;  %v6627_v63 = vadd.f32 %v2142_v8, %v2141_v7 }
 0x75f   : > { %v2153_v61 = vadd.f32 %v2152_v30, %v2151_v24  ;;  %v2274_v24 = vmax.f32 %v2272_v21, %v2273_v43  ;;  %8277 = vst [vmem:[#allocation24_spill] sm:$0xff] %v6608_v13  ;;  %v2264_v30 = vmax.f32 %v2262_v45, %v2263_v31  ;;  %v2386_v43 = vld [vmem:[%s8073_s18 + $0xe0] sm:$0xff]  ;;  %v2281_v14 = vmax.f32 %v2279_v18, %v2280_v16 }
 0x760   : > { %v2902_v62 = vpop.f32.mrf.mxu0  ;;  %2447 = vmatpush.msra.mxu1 %v2388_v17  ;;  %v2287_v45 = vrot.slane %v2286_v41, 4  ;;  %v2160_v8 = vadd.f32 %v2159_v60, %v2158_v12  ;;  %v2166_v16 = vrot.slane %v2165_v35, 4  ;;  %v2383_v12 = vld [vmem:[%s8073_s18 + $0xc8] sm:$0xff] }
 0x761   : > { %4814 = vmatmul.msk.f32.gmra.mxu2 %vm878_vm1, %v2902_v62  ;;  %v2154_v21 = vrot.slane %v2153_v61, 2  ;;  %v2275_v5 = vrot.slane %v2274_v24, 2 }
 0x762   : > { %2448 = vmatpush.msra.mxu1 %v2387_v49  ;;  %v2053_v49 = vadd.f32 %v6525_v27, %v6414_v4 }
 0x763   : > { %v2155_v7 = vadd.f32 %v2154_v21, %v2153_v61  ;;  %v2282_v61 = vrot.slane %v2281_v14, 2 }
 0x764   : > { %v1990_v52 = vpop.f32.mrf.mxu2  ;;  %v6556_v6 = vpop.f32.mrf.mxu3  ;;  %2449 = vmatpush.msra.mxu1 %v2386_v43 }
 0x765   : > { %v1991_v2 = vadd.f32 %v1990_v52, %v6408_v3  ;;  %v1988_v52 = vadd.f32 %v6523_v33, %v6408_v3  ;;  %v6619_v33 = vsel %vm1200_vm4, %v2344_v25, %v2342_v10  ;;  %v6631_v10 = vmax.f32 %v2269_v22, %v2270_v57 }
 0x766   : > { %v2056_v22 = vadd.f32 %v6556_v6, %v6414_v4  ;;  %2450 = vmatpush.msra.mxu1 %v2385_v47  ;;  %v2276_v57 = vmax.f32 %v2274_v24, %v2275_v5  ;;  %v2288_v6 = vmax.f32 %v2286_v41, %v2287_v45  ;;  %v2156_v60 = vrot.slane %v2155_v7, 1 }
 0x767   : > { %v6616_v23 = vmax.f32 %v1991_v2, 0.0  ;;  %v6629_v36 = vmax.f32 %v1988_v52, 0.0  ;;  %v6639_v2 = vadd.f32 %v2264_v30, %v2218_v55  ;;  %v2161_v41 = vrot.slane %v2160_v8, 2 }
 0x768   : > { %v2905_v62 = vpop.f32.mrf.mxu0  ;;  %v6659_v24 = vmax.f32 %v2056_v22, 0.0  ;;  %v2167_v45 = vadd.f32 %v2166_v16, %v2165_v35  ;;  %v6671_v22 = vmax.f32 %v2053_v49, 0.0  ;;  %v2289_v35 = vrot.slane %v2288_v6, 2 }
 0x769   : > { %4815 = vmatmul.msk.f32.gmra.mxu2 %vm878_vm1, %v2905_v62  ;;  %8278 = vst [vmem:[#allocation25_spill] sm:$0xff] %v6616_v23  ;;  %v2148_v62 = vadd.f32 %v2147_v48, %v2146_v37  ;;  %v2293_v37 = vmax.f32 %v6608_v13, %v6599_v40  ;;  %v2172_v18 = vadd.f32 %v6616_v23, %v6629_v36 }
 0x76a   : > { %8279 = vst [vmem:[#allocation26_spill] sm:$0xff] %v6629_v36  ;;  %v2168_v13 = vrot.slane %v2167_v45, 2 }
 0x76b   : > { %v2149_v17 = vrot.slane %v2148_v62, 1  ;;  %v2294_v21 = vrot.slane %v2293_v37, 4  ;;  %v2173_v43 = vrot.slane %v2172_v18, 4  ;;  %8282 = vst [vmem:[#allocation29_spill] sm:$0xff] %v6659_v24 }
 0x76c   : > { %v1993_v28 = vpop.f32.mrf.mxu2  ;;  %v6595_v29 = vpop.f32.mrf.mxu3  ;;  %8283 = vst [vmem:[#allocation30_spill] sm:$0xff] %v6671_v22 }
 0x76d   : > { %v1994_v25 = vadd.f32 %v1993_v28, %v6408_v3  ;;  %v2384_v28 = vld [vmem:[%s8073_s18 + $0xd0] sm:$0xff]  ;;  %v2059_v27 = vadd.f32 %v6595_v29, %v6414_v4  ;;  %v2150_v47 = vadd.f32 %v2149_v17, %v2148_v62  ;;  %v2300_v29 = vmax.f32 %v6629_v36, %v6616_v23 }
 0x76e   : > { %2451 = vmatpush.msra.mxu1 %v2384_v28  ;;  %v2277_v62 = vrot.slane %v2276_v57, 1  ;;  %v2295_v17 = vmax.f32 %v2293_v37, %v2294_v21  ;;  %v2157_v37 = vadd.f32 %v2156_v60, %v2155_v7  ;;  %v2162_v21 = vadd.f32 %v2161_v41, %v2160_v8  ;;  %v2379_v8 = vld [vmem:[%s8073_s18 + $0xa8] sm:$0xff] }
 0x76f   : > { %v6704_v60 = vsel %vm1202_vm5, %v6639_v2, %v6619_v33  ;;  %v2378_v33 = vld [vmem:[%s8073_s18 + $0xa0] sm:$0xff] }
 0x770   : > { %v2908_v58 = vpop.f32.mrf.mxu0  ;;  %2452 = vmatpush.msra.mxu1 %v2383_v12  ;;  %v2220_v12 = vmul.f32 %v2150_v47, %v5584_v42  ;;  %v2296_v7 = vrot.slane %v2295_v17, 2 }
 0x771   : > { %4816 = vmatmul.msk.f32.gmra.mxu2 %vm878_vm1, %v2908_v58  ;;  %v6652_v58 = vmax.f32 %v1994_v25, 0.0 }
 0x773   : > { %8280 = vst [vmem:[#allocation27_spill] sm:$0xff] %v6652_v58 }
 0x774   : > { %v1996_v31 = vpop.f32.mrf.mxu2  ;;  %v2061_v48 = vpop.f32.mrf.mxu3 }
 0x775   : > { %v1997_v52 = vadd.f32 %v1996_v31, %v6408_v3  ;;  %v2062_v55 = vadd.f32 %v2061_v48, %v6414_v4  ;;  %v2382_v31 = vld [vmem:[%s8073_s18 + $0xc0] sm:$0xff]  ;;  %v6669_v48 = vmax.f32 %v2281_v14, %v2282_v61  ;;  %v2179_v14 = vadd.f32 %v6659_v24, %v6671_v22 }
 0x776   : > { %v6682_v61 = vmax.f32 %v2059_v27, 0.0  ;;  %2453 = vmatpush.msra.mxu1 %v2382_v31  ;;  %v2301_v27 = vrot.slane %v2300_v29, 4  ;;  %v2278_v31 = vmax.f32 %v2276_v57, %v2277_v62  ;;  %v2163_v62 = vrot.slane %v2162_v21, 1 }
 0x777   : > { %v6654_v30 = vmax.f32 %v1997_v52, 0.0  ;;  %v6675_v28 = vmax.f32 %v2062_v55, 0.0  ;;  %v2381_v52 = vld [vmem:[%s8073_s18 + $0xb8] sm:$0xff]  ;;  %v2180_v41 = vrot.slane %v2179_v14, 4 }
 0x778   : > { %v2911_v5 = vpop.f32.mrf.mxu0  ;;  %8285 = vst [vmem:[#allocation32_spill] sm:$0xff] %v6682_v61  ;;  %2454 = vmatpush.msra.mxu1 %v2381_v52  ;;  %v6707_v57 = vadd.f32 %v2278_v31, %v2220_v12  ;;  %v2302_v2 = vmax.f32 %v2300_v29, %v2301_v27  ;;  %v2307_v52 = vmax.f32 %v6671_v22, %v6659_v24  ;;  %v2377_v31 = vld [vmem:[%s8073_s18 + $0x98] sm:$0xff] }
 0x779   : > { %8281 = vst [vmem:[#allocation28_spill] sm:$0xff] %v6654_v30  ;;  %v2186_v25 = vadd.f32 %v6654_v30, %v6652_v58  ;;  %4817 = vmatmul.msk.f32.gmra.mxu2 %vm878_vm1, %v2911_v5  ;;  %v2174_v5 = vadd.f32 %v2173_v43, %v2172_v18  ;;  %v2314_v49 = vmax.f32 %v6652_v58, %v6654_v30  ;;  %v2380_v18 = vld [vmem:[%s8073_s18 + $0xb0] sm:$0xff] }
 0x77a   : > { %8284 = vst [vmem:[#allocation31_spill] sm:$0xff] %v6675_v28  ;;  %v6692_v43 = vmul.f32 %v6627_v63, %v5584_v42  ;;  %v2193_v32 = vadd.f32 %v6675_v28, %v6682_v61  ;;  %v6696_v30 = vmax.f32 %v2288_v6, %v2289_v35  ;;  %2455 = vmatpush.msra.mxu1 %v2380_v18 }
 0x77b   : > { %v2187_v16 = vrot.slane %v2186_v25, 4  ;;  %v2175_v47 = vrot.slane %v2174_v5, 2  ;;  %v6710_v6 = vmul.f32 %v2157_v37, %v5584_v42  ;;  %v6712_v35 = vadd.f32 %v2168_v13, %v2167_v45 }
 0x77c   : > { %v1999_v55 = vpop.f32.mrf.mxu2  ;;  %v2064_v40 = vpop.f32.mrf.mxu3  ;;  %v2194_v18 = vrot.slane %v2193_v32, 4  ;;  %2456 = vmatpush.msra.mxu1 %v2379_v8  ;;  %v6721_v37 = vmax.f32 %v2295_v17, %v2296_v7  ;;  %v2181_v29 = vadd.f32 %v2180_v41, %v2179_v14  ;;  %v2321_v24 = vmax.f32 %v6682_v61, %v6675_v28  ;;  %v2376_v7 = vld [vmem:[%s8073_s18 + $0x90] sm:$0xff] }
 0x77d   : > { %v2188_v53 = vadd.f32 %v2187_v16, %v2186_v25  ;;  %v2315_v25 = vrot.slane %v2314_v49, 4  ;;  %v2000_v13 = vadd.f32 %v1999_v55, %v6408_v3  ;;  %v2065_v45 = vadd.f32 %v2064_v40, %v6414_v4 }
 0x77e   : > { %2457 = vmatpush.msra.mxu1 %v2378_v33  ;;  %v2164_v12 = vadd.f32 %v2163_v62, %v2162_v21  ;;  %v2308_v14 = vrot.slane %v2307_v52, 4 }
 0x77f   : > { %v2189_v63 = vrot.slane %v2188_v53, 2  ;;  %v2316_v27 = vmax.f32 %v2314_v49, %v2315_v25  ;;  %v6736_v41 = vmax.f32 %v2000_v13, 0.0  ;;  %v6738_v25 = vmax.f32 %v2065_v45, 0.0  ;;  %v2374_v13 = vld [vmem:[%s8073_s18 + $0x80] sm:$0xff] }
 0x780   : > { %v2914_v16 = vpop.f32.mrf.mxu0  ;;  %2458 = vmatpush.msra.mxu1 %v2377_v31  ;;  %v2309_v31 = vmax.f32 %v2307_v52, %v2308_v14 }
 0x781   : > { %4818 = vmatmul.msk.f32.gmra.mxu2 %vm878_vm1, %v2914_v16  ;;  %v2176_v16 = vadd.f32 %v2175_v47, %v2174_v5  ;;  %v2303_v5 = vrot.slane %v2302_v2, 2  ;;  %v2190_v49 = vadd.f32 %v2189_v63, %v2188_v53  ;;  %v2195_v47 = vadd.f32 %v2194_v18, %v2193_v32  ;;  %8286 = vst [vmem:[#allocation33_spill] sm:$0xff] %v6736_v41 }
 0x782   : > { %8287 = vst [vmem:[#allocation34_spill] sm:$0xff] %v6738_v25  ;;  %v2317_v17 = vrot.slane %v2316_v27, 2  ;;  %2459 = vmatpush.msra.mxu1 %v2376_v7  ;;  %v2310_v52 = vrot.slane %v2309_v31, 2 }
 0x783   : > { %v2177_v33 = vrot.slane %v2176_v16, 1  ;;  %v2304_v45 = vmax.f32 %v2302_v2, %v2303_v5  ;;  %v2222_v2 = vmul.f32 %v2164_v12, %v5584_v42 }
 0x784   : > { %v2002_v22 = vpop.f32.mrf.mxu2  ;;  %v2067_v8 = vpop.f32.mrf.mxu3  ;;  %v2318_v54 = vmax.f32 %v2316_v27, %v2317_v17  ;;  %v2311_v12 = vmax.f32 %v2309_v31, %v2310_v52  ;;  %v2298_v31 = vrot.slane %v6721_v37, 1 }
 0x785   : > { %v2003_v55 = vadd.f32 %v2002_v22, %v6408_v3  ;;  %v2068_v40 = vadd.f32 %v2067_v8, %v6414_v4  ;;  %v2375_v22 = vld [vmem:[%s8073_s18 + $0x88] sm:$0xff]  ;;  %v2182_v8 = vrot.slane %v2181_v29, 2  ;;  %v2322_v4 = vrot.slane %v2321_v24, 4 }
 0x786   : > { %2460 = vmatpush.msra.mxu1 %v2375_v22  ;;  %v2305_v22 = vrot.slane %v2304_v45, 1 }
 0x787   : > { %v6740_v21 = vmax.f32 %v2003_v55, 0.0  ;;  %v6742_v62 = vmax.f32 %v2068_v40, 0.0  ;;  %v2191_v55 = vrot.slane %v2190_v49, 1  ;;  %v2196_v40 = vrot.slane %v2195_v47, 2 }
 0x788   : > { %v2323_v58 = vmax.f32 %v2321_v24, %v2322_v4  ;;  %2461 = vmatpush.msra.mxu1 %v2374_v13 }
 0x789   : > { %8288 = vst [vmem:[#allocation35_spill] sm:$0xff] %v6740_v21  ;;  %v2200_v53 = vadd.f32 %v6740_v21, %v6736_v41  ;;  %v2328_v32 = vmax.f32 %v6736_v41, %v6740_v21  ;;  %v2207_v63 = vadd.f32 %v6742_v62, %v6738_v25  ;;  %v2335_v18 = vmax.f32 %v6738_v25, %v6742_v62 }
 0x78a   : > { %8289 = vst [vmem:[#allocation36_spill] sm:$0xff] %v6742_v62  ;;  %v2178_v21 = vadd.f32 %v2177_v33, %v2176_v16  ;;  %v2183_v41 = vadd.f32 %v2182_v8, %v2181_v29  ;;  %v2192_v5 = vadd.f32 %v2191_v55, %v2190_v49  ;;  %v2197_v14 = vadd.f32 %v2196_v40, %v2195_v47 }
 0x78b   : > { %v2201_v7 = vrot.slane %v2200_v53, 4  ;;  %v2329_v3 = vrot.slane %v2328_v32, 4  ;;  %v2208_v28 = vrot.slane %v2207_v63, 4  ;;  %v2336_v61 = vrot.slane %v2335_v18, 4 }
 0x78c   : > { %v6758_v19 = vpop.f32.mrf.mxu2  ;;  %v2184_v16 = vrot.slane %v2183_v41, 1  ;;  %v2319_v29 = vrot.slane %v2318_v54, 1  ;;  %v2324_v27 = vrot.slane %v2323_v58, 2  ;;  %v2224_v4 = vmul.f32 %v2178_v21, %v5584_v42 }
 0x78d   : > { %v2202_v62 = vadd.f32 %v2201_v7, %v2200_v53  ;;  %v2330_v25 = vmax.f32 %v2328_v32, %v2329_v3  ;;  %v2209_v23 = vadd.f32 %v2208_v28, %v2207_v63  ;;  %v2337_v50 = vmax.f32 %v2335_v18, %v2336_v61 }
 0x78e   : > { %v8290_v28 = vrot.slane %v6696_v30, 1  ;;  %v2198_v49 = vrot.slane %v2197_v14, 1  ;;  %v2226_v47 = vmul.f32 %v2192_v5, %v5584_v42  ;;  %v2306_v8 = vmax.f32 %v2304_v45, %v2305_v22 }
 0x78f   : > { %v2203_v36 = vrot.slane %v2202_v62, 2  ;;  %v2331_v1 = vrot.slane %v2330_v25, 2  ;;  %v2210_v59 = vrot.slane %v2209_v23, 2  ;;  %v2338_v3 = vrot.slane %v2337_v50, 2 }
 0x790   : > { %v2292_v61 = vmax.f32 %v6696_v30, %v8290_v28  ;;  %v8291_v18 = vrot.slane %v6712_v35, 1  ;;  %v2352_v30 = vadd.f32 %v2306_v8, %v2224_v4  ;;  %v2199_v55 = vadd.f32 %v2198_v49, %v2197_v14 }
 0x791   : > { %v2204_v24 = vadd.f32 %v2203_v36, %v2202_v62  ;;  %v2332_v17 = vmax.f32 %v2330_v25, %v2331_v1  ;;  %v2211_v33 = vadd.f32 %v2210_v59, %v2209_v23  ;;  %v2325_v36 = vmax.f32 %v2323_v58, %v2324_v27 }
 0x792   : > { %v2171_v21 = vadd.f32 %v8291_v18, %v6712_v35  ;;  %v2320_v59 = vmax.f32 %v2318_v54, %v2319_v29  ;;  %v2350_v23 = vadd.f32 %v2292_v61, %v2222_v2  ;;  %v2185_v25 = vadd.f32 %v2184_v16, %v2183_v41 }
 0x793   : > { %v2205_v53 = vrot.slane %v2204_v24, 1  ;;  %v2212_v32 = vrot.slane %v2211_v33, 1  ;;  %v2333_v63 = vrot.slane %v2332_v17, 1  ;;  %v2339_v62 = vmax.f32 %v2337_v50, %v2338_v3 }
 0x794   : > { %v2985_v1 = vpop.f32.mrf.mxu2  ;;  %v2354_v40 = vadd.f32 %v2320_v59, %v2226_v47  ;;  %v2412_v45 = vsel %vm1204_vm6, %v6707_v57, %v6704_v60  ;;  %v2312_v7 = vrot.slane %v2311_v12, 1  ;;  %v8292_v54 = vrot.slane %v6669_v48, 1 }
 0x795   : > { %v2206_v13 = vadd.f32 %v2205_v53, %v2204_v24  ;;  %v2334_v35 = vmax.f32 %v2332_v17, %v2333_v63  ;;  %v2213_v58 = vadd.f32 %v2212_v32, %v2211_v33  ;;  %v2223_v50 = vmul.f32 %v2171_v21, %v5584_v42 }
 0x796   : > { %v2285_v41 = vmax.f32 %v6669_v48, %v8292_v54  ;;  %v2326_v2 = vrot.slane %v2325_v36, 1  ;;  %v2413_v5 = vsel %vm1206_vm7, %v2350_v23, %v2412_v45  ;;  %v2225_v16 = vmul.f32 %v2185_v25, %v5584_v42  ;;  %v6801_v23 = vld [vmem:[%s8229_s4] ss:$0 sm:$0xff]  ;;  %s5078_s4 = sshra.s32 %s4684_s3, 4  ;;  %s5079_s4 = int_to_ptr.hbm [resolvable:$true] %s5078_s4 }
 0x797   : > { %v2228_v52 = vmul.f32 %v2206_v13, %v5584_v42  ;;  %v2414_v22 = vsel %vm1208_vm8, %v2352_v30, %v2413_v5  ;;  %v2340_v60 = vrot.slane %v2339_v62, 1  ;;  %v2347_v57 = vadd.f32 %v6631_v10, %v6692_v43  ;;  %s5080_s27 = scalar_lea.hbm %s5079_s4, 1  ;;  %p5085_p0 = scmp.lt.s32.totalorder %s5079_s4, %s8400_s0 }
 0x798   : > { %v2299_v29 = vmax.f32 %v6721_v37, %v2298_v31  ;;  %v2415_v27 = vsel %vm1210_vm9, %v2354_v40, %v2414_v22  ;;  %v2227_v48 = vmul.f32 %v2199_v55, %v5584_v42  ;;  %v2349_v4 = vadd.f32 %v2285_v41, %v6710_v6  ;;  %p5081_p11 = scmp.ne.s32.totalorder %s5079_s4, %s5080_s27  ;;  %p5086_p1 = scmp.lt.s32.totalorder %s5084_s23, %s5080_s27 }
 0x799   : > { %v2356_v14 = vadd.f32 %v2334_v35, %v2228_v52  ;;  %v2313_v24 = vmax.f32 %v2311_v12, %v2312_v7  ;;  %v2229_v33 = vmul.f32 %v2213_v58, %v5584_v42  ;;  %v2327_v28 = vmax.f32 %v2325_v36, %v2326_v2 }
 0x79a   : > { %v2351_v61 = vadd.f32 %v2299_v29, %v2223_v50  ;;  %v2341_v49 = vmax.f32 %v2339_v62, %v2340_v60  ;;  %v2417_v10 = vsel %vm1200_vm4, %v6606_v0, %v6568_v11  ;;  %v2983_v25 = vadd.f32 %v6801_v23, %v6758_v19  ;;  %p5082_p12 = pnand %p5081_p11, %p5293_p5  ;;  %p5087_p2 = por %p5086_p1, %p5085_p0 }
 0x79b   : > { %v2416_v17 = vsel %vm1212_vm10, %v2356_v14, %v2415_v27  ;;  %v2353_v47 = vadd.f32 %v2313_v24, %v2225_v16  ;;  %v2355_v43 = vadd.f32 %v2327_v28, %v2227_v48  ;;  %v2418_v37 = vsel %vm1202_vm5, %v2347_v57, %v2417_v10 }
 0x79c   : > { %2442 = vmatmul.f32.vlgmr.msrb.gmra.mxu1 %v2416_v17  ;;  %v2988_v3 = vpop.f32.mrf.mxu2  ;;  %v2357_v8 = vadd.f32 %v2341_v49, %v2229_v33  ;;  %v2419_v6 = vsel %vm1204_vm6, %v2349_v4, %v2418_v37  ;;  %v2986_v13 = vadd.f32 %v6801_v23, %v2985_v1  ;;  %v6806_v30 = vmax.f32 %v2983_v25, 0.0  ;;  %p5083_p13 = pneg %p5082_p12 }
 0x79d   : > { %v2420_v12 = vsel %vm1206_vm7, %v2351_v61, %v2419_v6  ;;  %v2989_v31 = vadd.f32 %v6801_v23, %v2988_v3 }
 0x79e   : > { %v2421_v53 = vsel %vm1208_vm8, %v2353_v47, %v2420_v12  ;;  %8293 = vst [vmem:[#allocation37_spill] sm:$0xff] %v6806_v30  ;;  %v6810_v40 = vmax.f32 %v2986_v13, 0.0  ;;  %v3046_v45 = vsel %vm1012_vm2, %v6806_v30, 0.0  ;;  %v3126_v7 = vsel %vm1012_vm2, %v6806_v30, -inf  ;;  %v2473_v30 = vld [vmem:[%s8075_s20 + $0x30] sm:$0xff]  ;;  %p5088_p3 = pnand %p5087_p2, %p5083_p13 }
 0x79f   : > { %v2422_v32 = vsel %vm1210_vm9, %v2355_v43, %v2421_v53  ;;  %v6816_v52 = vmax.f32 %v2989_v31, 0.0  ;;  %2497 = vmatpush.msrb.mxu1 %v2473_v30 }
 0x7a0   : > { %v2423_v63 = vsel %vm1212_vm10, %v2357_v8, %v2422_v32  ;;  %8294 = vst [vmem:[#allocation38_spill] sm:$0xff] %v6810_v40  ;;  %v3047_v1 = vsel %vm1012_vm2, %v6810_v40, 0.0  ;;  %v3127_v58 = vsel %vm1012_vm2, %v6810_v40, -inf }
 0x7a1   : > { %8295 = vst [vmem:[#allocation39_spill] sm:$0xff] %v6816_v52  ;;  %v3048_v50 = vadd.f32 %v3047_v1, %v3046_v45  ;;  %v3128_v2 = vmax.f32 %v3126_v7, %v3127_v58  ;;  %v3055_v5 = vsel %vm1012_vm2, %v6816_v52, 0.0  ;;  %v3135_v60 = vsel %vm1012_vm2, %v6816_v52, -inf }
 0x7a3   : > { %v3049_v4 = vrot.slane %v3048_v50, 4  ;;  %v3129_v24 = vrot.slane %v3128_v2, 4 }
 0x7a4   : > { %2462 = vmatmul.f32.vlgmr.msra.gmra.mxu1 %v2423_v63  ;;  %v2991_v18 = vpop.f32.mrf.mxu2 }
 0x7a5   : > { %v2992_v55 = vadd.f32 %v6801_v23, %v2991_v18  ;;  %v3050_v37 = vadd.f32 %v3049_v4, %v3048_v50  ;;  %v3130_v8 = vmax.f32 %v3128_v2, %v3129_v24 }
 0x7a7   : > { %v6818_v19 = vmax.f32 %v2992_v55, 0.0  ;;  %v3051_v31 = vrot.slane %v3050_v37, 2  ;;  %v3131_v55 = vrot.slane %v3130_v8, 2 }
 0x7a9   : > { %v3056_v14 = vsel %vm1012_vm2, %v6818_v19, 0.0  ;;  %v3136_v29 = vsel %vm1012_vm2, %v6818_v19, -inf  ;;  %v3052_v24 = vadd.f32 %v3051_v31, %v3050_v37 }
 0x7aa   : > { %v3057_v57 = vadd.f32 %v3056_v14, %v3055_v5  ;;  %v3137_v28 = vmax.f32 %v3135_v60, %v3136_v29 }
 0x7ac   : > { %v2994_v21 = vpop.f32.mrf.mxu2  ;;  %v3058_v47 = vrot.slane %v3057_v57, 4  ;;  %v3138_v18 = vrot.slane %v3137_v28, 4 }
 0x7ad   : > { %v2995_v54 = vadd.f32 %v6801_v23, %v2994_v21 }
 0x7af   : > { %v6830_v22 = vmax.f32 %v2995_v54, 0.0 }
 0x7b1   : > { %v3064_v33 = vsel %vm1012_vm2, %v6830_v22, 0.0  ;;  %v3144_v12 = vsel %vm1012_vm2, %v6830_v22, -inf }
 0x7b4   : > { %v2997_v36 = vpop.f32.mrf.mxu2 }
 0x7b5   : > { %v2998_v41 = vadd.f32 %v6801_v23, %v2997_v36 }
 0x7b7   : > { %v6832_v16 = vmax.f32 %v2998_v41, 0.0 }
 0x7b9   : > { %v3065_v3 = vsel %vm1012_vm2, %v6832_v16, 0.0  ;;  %v3145_v53 = vsel %vm1012_vm2, %v6832_v16, -inf }
 0x7ba   : > { %v3066_v6 = vadd.f32 %v3065_v3, %v3064_v33 }
 0x7bc   : > { %v3000_v59 = vpop.f32.mrf.mxu2  ;;  %v3067_v25 = vrot.slane %v3066_v6, 4 }
 0x7bd   : > { %v3001_v27 = vadd.f32 %v6801_v23, %v3000_v59  ;;  %v3059_v59 = vadd.f32 %v3058_v47, %v3057_v57 }
 0x7be   : > { %v3068_v14 = vadd.f32 %v3067_v25, %v3066_v6 }
 0x7bf   : > { %v6846_v10 = vmax.f32 %v3001_v27, 0.0  ;;  %v3060_v41 = vrot.slane %v3059_v59, 2 }
 0x7c0   : > { %v3069_v47 = vrot.slane %v3068_v14, 2 }
 0x7c1   : > { %v3153_v50 = vsel %vm1012_vm2, %v6846_v10, -inf }
 0x7c4   : > { %v3003_v11 = vpop.f32.mrf.mxu2 }
 0x7c5   : > { %v3004_v48 = vadd.f32 %v6801_v23, %v3003_v11  ;;  %v3073_v11 = vsel %vm1012_vm2, %v6846_v10, 0.0 }
 0x7c7   : > { %v6848_v43 = vmax.f32 %v3004_v48, 0.0 }
 0x7c9   : > { %v3154_v2 = vsel %vm1012_vm2, %v6848_v43, -inf }
 0x7ca   : > { %v3155_v3 = vmax.f32 %v3153_v50, %v3154_v2 }
 0x7cc   : > { %v3006_v0 = vpop.f32.mrf.mxu2 }
 0x7cd   : > { %v3007_v61 = vadd.f32 %v6801_v23, %v3006_v0  ;;  %v3074_v0 = vsel %vm1012_vm2, %v6848_v43, 0.0 }
 0x7ce   : > { %v3075_v1 = vadd.f32 %v3074_v0, %v3073_v11  ;;  %v3053_v0 = vrot.slane %v3052_v24, 1 }
 0x7cf   : > { %v6856_v21 = vmax.f32 %v3007_v61, 0.0  ;;  %v3061_v61 = vadd.f32 %v3060_v41, %v3059_v59  ;;  %v3156_v59 = vrot.slane %v3155_v3, 4 }
 0x7d0   : > { %v3076_v33 = vrot.slane %v3075_v1, 4 }
 0x7d1   : > { %v3082_v58 = vsel %vm1012_vm2, %v6856_v21, 0.0  ;;  %v3162_v57 = vsel %vm1012_vm2, %v6856_v21, -inf }
 0x7d4   : > { %v3009_v62 = vpop.f32.mrf.mxu2 }
 0x7d5   : > { %v3010_v49 = vadd.f32 %v6801_v23, %v3009_v62  ;;  %v3146_v62 = vmax.f32 %v3144_v12, %v3145_v53 }
 0x7d7   : > { %v6858_v36 = vmax.f32 %v3010_v49, 0.0  ;;  %v3147_v60 = vrot.slane %v3146_v62, 4 }
 0x7d9   : > { %v3083_v54 = vsel %vm1012_vm2, %v6858_v36, 0.0  ;;  %v3163_v27 = vsel %vm1012_vm2, %v6858_v36, -inf  ;;  %v3148_v6 = vmax.f32 %v3146_v62, %v3147_v60 }
 0x7da   : > { %v3084_v29 = vadd.f32 %v3083_v54, %v3082_v58  ;;  %v3164_v12 = vmax.f32 %v3162_v57, %v3163_v27  ;;  %v3070_v58 = vadd.f32 %v3069_v47, %v3068_v14  ;;  %v3157_v57 = vmax.f32 %v3155_v3, %v3156_v59 }
 0x7db   : > { %v3149_v54 = vrot.slane %v3148_v6, 2 }
 0x7dc   : > { %v3012_v35 = vpop.f32.mrf.mxu2  ;;  %v3071_v40 = vrot.slane %v3070_v58, 1  ;;  %v3158_v3 = vrot.slane %v3157_v57, 2 }
 0x7dd   : > { %v3013_v32 = vadd.f32 %v6801_v23, %v3012_v35  ;;  %v3139_v35 = vmax.f32 %v3137_v28, %v3138_v18  ;;  %v3132_v28 = vmax.f32 %v3130_v8, %v3131_v55  ;;  %v3077_v8 = vadd.f32 %v3076_v33, %v3075_v1 }
 0x7df   : > { %v6864_v45 = vmax.f32 %v3013_v32, 0.0  ;;  %v3078_v60 = vrot.slane %v3077_v8, 2 }
 0x7e1   : > { %v3091_v48 = vsel %vm1012_vm2, %v6864_v45, 0.0  ;;  %v3171_v18 = vsel %vm1012_vm2, %v6864_v45, -inf  ;;  %v3079_v52 = vadd.f32 %v3078_v60, %v3077_v8  ;;  %v3159_v8 = vmax.f32 %v3157_v57, %v3158_v3 }
 0x7e4   : > { %v3015_v17 = vpop.f32.mrf.mxu2 }
 0x7e5   : > { %v3016_v63 = vadd.f32 %v6801_v23, %v3015_v17  ;;  %v3140_v17 = vrot.slane %v3139_v35, 2 }
 0x7e7   : > { %v6866_v7 = vmax.f32 %v3016_v63, 0.0  ;;  %v3085_v63 = vrot.slane %v3084_v29, 4  ;;  %v3141_v25 = vmax.f32 %v3139_v35, %v3140_v17  ;;  %v3133_v17 = vrot.slane %v3132_v28, 1 }
 0x7e9   : > { %v3092_v4 = vsel %vm1012_vm2, %v6866_v7, 0.0  ;;  %v3172_v11 = vsel %vm1012_vm2, %v6866_v7, -inf  ;;  %v3086_v2 = vadd.f32 %v3085_v63, %v3084_v29  ;;  %v3142_v33 = vrot.slane %v3141_v25, 1 }
 0x7ea   : > { %v3093_v53 = vadd.f32 %v3092_v4, %v3091_v48  ;;  %v3173_v50 = vmax.f32 %v3171_v18, %v3172_v11  ;;  %v3054_v4 = vadd.f32 %v3053_v0, %v3052_v24  ;;  %v3150_v29 = vmax.f32 %v3148_v6, %v3149_v54 }
 0x7eb   : > { %v3087_v63 = vrot.slane %v3086_v2, 2  ;;  %v3134_v0 = vmax.f32 %v3132_v28, %v3133_v17  ;;  %v3143_v6 = vmax.f32 %v3141_v25, %v3142_v33  ;;  %v2471_v25 = vld [vmem:[%s8075_s20 + $0x20] sm:$0xff] }
 0x7ec   : > { %v3018_v13 = vpop.f32.mrf.mxu2  ;;  %v3094_v41 = vrot.slane %v3093_v53, 4  ;;  %v3174_v47 = vrot.slane %v3173_v50, 4  ;;  %v3118_v24 = vmul.f32 %v3054_v4, %v5584_v42  ;;  %2498 = vmatpush.msrb.mxu1 %v2471_v25 }
 0x7ed   : > { %v3019_v5 = vadd.f32 %v6801_v23, %v3018_v13  ;;  %v3062_v13 = vrot.slane %v3061_v61, 1  ;;  %v3088_v54 = vadd.f32 %v3087_v63, %v3086_v2 }
 0x7ee   : > { %v3095_v14 = vadd.f32 %v3094_v41, %v3093_v53  ;;  %v3198_v4 = vadd.f32 %v3134_v0, %v3118_v24 }
 0x7ef   : > { %v6885_v49 = vmax.f32 %v3019_v5, 0.0  ;;  %v3165_v5 = vrot.slane %v3164_v12, 4 }
 0x7f1   : > { %v3100_v62 = vsel %vm1012_vm2, %v6885_v49, 0.0  ;;  %v3180_v31 = vsel %vm1012_vm2, %v6885_v49, -inf  ;;  %v3166_v11 = vmax.f32 %v3164_v12, %v3165_v5  ;;  %v3175_v12 = vmax.f32 %v3173_v50, %v3174_v47  ;;  %v2469_v50 = vld [vmem:[%s8075_s20 + $0x10] sm:$0xff]  ;;  %v2467_v47 = vld [vmem:[%s8075_s20] sm:$0xff] }
 0x7f2   : > { %v3072_v5 = vadd.f32 %v3071_v40, %v3070_v58  ;;  %v3089_v58 = vrot.slane %v3088_v54, 1  ;;  %2499 = vmatpush.msrb.mxu1 %v2469_v50 }
 0x7f3   : > { %v3167_v41 = vrot.slane %v3166_v11, 2  ;;  %v3176_v17 = vrot.slane %v3175_v12, 2 }
 0x7f4   : > { %v3021_v32 = vpop.f32.mrf.mxu2  ;;  %2500 = vmatpush.msrb.mxu1 %v2467_v47 }
 0x7f5   : > { %v3022_v37 = vadd.f32 %v6801_v23, %v3021_v32  ;;  %v3063_v32 = vadd.f32 %v3062_v13, %v3061_v61  ;;  %v3168_v2 = vmax.f32 %v3166_v11, %v3167_v41  ;;  %v3177_v3 = vmax.f32 %v3175_v12, %v3176_v17 }
 0x7f7   : > { %v6896_v55 = vmax.f32 %v3022_v37, 0.0  ;;  %v3119_v13 = vmul.f32 %v3063_v32, %v5584_v42  ;;  %v3160_v32 = vrot.slane %v3159_v8, 1  ;;  %v3169_v24 = vrot.slane %v3168_v2, 1 }
 0x7f8   : > { %v3178_v17 = vrot.slane %v3177_v3, 1 }
 0x7f9   : > { %v3101_v35 = vsel %vm1012_vm2, %v6896_v55, 0.0  ;;  %v3181_v1 = vsel %vm1012_vm2, %v6896_v55, -inf  ;;  %v3199_v28 = vadd.f32 %v3143_v6, %v3119_v13  ;;  %v3161_v6 = vmax.f32 %v3159_v8, %v3160_v32 }
 0x7fa   : > { %v3102_v27 = vadd.f32 %v3101_v35, %v3100_v62  ;;  %v3182_v48 = vmax.f32 %v3180_v31, %v3181_v1  ;;  %v3096_v62 = vrot.slane %v3095_v14, 2  ;;  %v3151_v31 = vrot.slane %v3150_v29, 1 }
 0x7fb   : > { %v3080_v35 = vrot.slane %v3079_v52, 1  ;;  %v3214_v12 = vsel %vm1200_vm4, %v3199_v28, %v3198_v4  ;;  %v3170_v8 = vmax.f32 %v3168_v2, %v3169_v24 }
 0x7fc   : > { %v3103_v37 = vrot.slane %v3102_v27, 4  ;;  %v3024_v18 = vpop.f32.mrf.mxu2  ;;  %v3183_v59 = vrot.slane %v3182_v48, 4  ;;  %v3152_v40 = vmax.f32 %v3150_v29, %v3151_v31 }
 0x7fd   : > { %v3025_v53 = vadd.f32 %v6801_v23, %v3024_v18  ;;  %v3081_v33 = vadd.f32 %v3080_v35, %v3079_v52  ;;  %v2470_v35 = vld [vmem:[%s8075_s20 + $0x18] sm:$0xff] }
 0x7fe   : > { %v3104_v61 = vadd.f32 %v3103_v37, %v3102_v27  ;;  %v3184_v1 = vmax.f32 %v3182_v48, %v3183_v59  ;;  %v3097_v27 = vadd.f32 %v3096_v62, %v3095_v14  ;;  %v3120_v48 = vmul.f32 %v3072_v5, %v5584_v42 }
 0x7ff   : > { %v6908_v30 = vmax.f32 %v3025_v53, 0.0  ;;  %v3090_v59 = vadd.f32 %v3089_v58, %v3088_v54  ;;  %v2472_v53 = vld [vmem:[%s8075_s20 + $0x28] sm:$0xff]  ;;  %v3121_v13 = vmul.f32 %v3081_v33, %v5584_v42  ;;  %v3179_v33 = vmax.f32 %v3177_v3, %v3178_v17 }
 0x800   : > { %v3105_v60 = vrot.slane %v3104_v61, 2  ;;  %v3185_v14 = vrot.slane %v3184_v1, 2  ;;  %v3098_v52 = vrot.slane %v3097_v27, 1  ;;  %v3200_v54 = vadd.f32 %v3152_v40, %v3120_v48  ;;  %v2468_v58 = vld [vmem:[%s8075_s20 + $0x8] sm:$0xff] }
 0x801   : > { %v3109_v63 = vsel %vm1012_vm2, %v6908_v30, 0.0  ;;  %v3189_v29 = vsel %vm1012_vm2, %v6908_v30, -inf  ;;  %v3122_v50 = vmul.f32 %v3090_v59, %v5584_v42  ;;  %v3201_v4 = vadd.f32 %v3161_v6, %v3121_v13 }
 0x802   : > { %v3106_v18 = vadd.f32 %v3105_v60, %v3104_v61  ;;  %v3186_v5 = vmax.f32 %v3184_v1, %v3185_v14  ;;  %v3099_v60 = vadd.f32 %v3098_v52, %v3097_v27  ;;  %v3215_v48 = vsel %vm1202_vm5, %v3200_v54, %v3214_v12  ;;  %v4928_v54 = vld [vmem:[%s8074_s19] ss:$0 sm:$0xff] }
 0x803   : > { %v3202_v47 = vadd.f32 %v3170_v8, %v3122_v50 }
 0x804   : > { %v3027_v37 = vpop.f32.mrf.mxu2  ;;  %v3107_v41 = vrot.slane %v3106_v18, 1  ;;  %v3123_v27 = vmul.f32 %v3099_v60, %v5584_v42 }
 0x805   : > { %v3028_v57 = vadd.f32 %v6801_v23, %v3027_v37  ;;  %v2474_v23 = vld [vmem:[%s8075_s20 + $0x38] sm:$0xff] }
 0x806   : > { %2517 = vmatpush.msra.mxu1 %v2474_v23  ;;  %v3108_v1 = vadd.f32 %v3107_v41, %v3106_v18  ;;  %v3203_v59 = vadd.f32 %v3179_v33, %v3123_v27 }
 0x807   : > { %v6925_v11 = vmax.f32 %v3028_v57, 0.0  ;;  %v3187_v57 = vrot.slane %v3186_v5, 1 }
 0x808   : > { %2518 = vmatpush.msra.mxu1 %v2472_v53  ;;  %v3124_v23 = vmul.f32 %v3108_v1, %v5584_v42 }
 0x809   : > { %v3110_v0 = vsel %vm1012_vm2, %v6925_v11, 0.0  ;;  %v3190_v61 = vsel %vm1012_vm2, %v6925_v11, -inf  ;;  %v3188_v52 = vmax.f32 %v3186_v5, %v3187_v57 }
 0x80a   : > { %v3111_v62 = vadd.f32 %v3110_v0, %v3109_v63  ;;  %v3191_v31 = vmax.f32 %v3189_v29, %v3190_v61  ;;  %2519 = vmatpush.msra.mxu1 %v2470_v35  ;;  %v3216_v29 = vsel %vm1204_vm6, %v3201_v4, %v3215_v48  ;;  %v2743_v48 = vld [vmem:[%s8077_s22 + $0x68] sm:$0xff] }
 0x80b   : > { %v3217_v0 = vsel %vm1206_vm7, %v3202_v47, %v3216_v29  ;;  %v3204_v13 = vadd.f32 %v3188_v52, %v3124_v23  ;;  %v2741_v47 = vld [vmem:[%s8077_s22 + $0x58] sm:$0xff]  ;;  %v2738_v23 = vld [vmem:[%s8077_s22 + $0x40] sm:$0xff] }
 0x80c   : > { %v3112_v37 = vrot.slane %v3111_v62, 4  ;;  %v3192_v25 = vrot.slane %v3191_v31, 4  ;;  %2520 = vmatpush.msra.mxu1 %v2468_v58  ;;  %v3218_v6 = vsel %vm1208_vm8, %v3203_v59, %v3217_v0  ;;  %v2736_v0 = vld [vmem:[%s8077_s22 + $0x30] sm:$0xff] }
 0x80d   : > { %v3219_v12 = vsel %vm1210_vm9, %v3204_v13, %v3218_v6  ;;  %v2734_v13 = vld [vmem:[%s8077_s22 + $0x20] sm:$0xff] }
 0x80e   : > { %v3113_v28 = vadd.f32 %v3112_v37, %v3111_v62  ;;  %v3193_v40 = vmax.f32 %v3191_v31, %v3192_v25  ;;  %v6964_v37 = vld [vmem:[%s8076_s21] sm:$0x3] }
 0x80f   : > { %8296 = vst [vmem:[#allocation40_spill] sm:$0xff] %v6964_v37  ;;  %v8151_v25 = vperm.slane %v6964_v37, 0  ;;  %v8150_v4 = vperm.slane %v6964_v37, 1 }
 0x810   : > { %v3114_v32 = vrot.slane %v3113_v28, 2  ;;  %v3194_v14 = vrot.slane %v3193_v40, 2 }
 0x812   : > { %v3115_v2 = vadd.f32 %v3114_v32, %v3113_v28  ;;  %v3195_v63 = vmax.f32 %v3193_v40, %v3194_v14  ;;  %v2745_v28 = vld [vmem:[%s8077_s22 + $0x78] sm:$0xff]  ;;  %v2744_v40 = vld [vmem:[%s8077_s22 + $0x70] sm:$0xff]  ;;  %v2742_v32 = vld [vmem:[%s8077_s22 + $0x60] sm:$0xff] }
 0x814   : > { %v3116_v24 = vrot.slane %v3115_v2, 1  ;;  %v3196_v18 = vrot.slane %v3195_v63, 1 }
 0x816   : > { %v3117_v61 = vadd.f32 %v3116_v24, %v3115_v2  ;;  %v3197_v53 = vmax.f32 %v3195_v63, %v3196_v18  ;;  %v2740_v2 = vld [vmem:[%s8077_s22 + $0x50] sm:$0xff]  ;;  %v2739_v63 = vld [vmem:[%s8077_s22 + $0x48] sm:$0xff]  ;;  %v2737_v18 = vld [vmem:[%s8077_s22 + $0x38] sm:$0xff] }
 0x818   : > { %v3125_v3 = vmul.f32 %v3117_v61, %v5584_v42 }
 0x819   : > { %v2443_v62 = vpop.f32.mrf.mxu1 }
 0x81a   : > { %v3205_v31 = vadd.f32 %v3197_v53, %v3125_v3  ;;  %v2444_v5 = vadd.f32 %v4928_v54, %v2443_v62  ;;  %v2735_v53 = vld [vmem:[%s8077_s22 + $0x28] sm:$0xff]  ;;  %v2732_v54 = vld [vmem:[%s8077_s22 + $0x10] sm:$0xff] }
 0x81c   : > { %v3220_v41 = vsel %vm1212_vm10, %v3205_v31, %v3219_v12  ;;  %v2733_v31 = vld [vmem:[%s8077_s22 + $0x18] sm:$0xff] }
 0x81d   : > { %4819 = vmatmul.msk.f32.vlgmr.msrb.gmra.mxu3 %vm1012_vm2, %v3220_v41 }
 0x821   : > { %v2463_v35 = vpop.f32.mrf.mxu1 }
 0x822   : > { %v2464_v60 = vadd.f32 %v2463_v35, %v2444_v5 }
 0x824   : > { %v2466_v17 = vmax.f32 %v2464_v60, 0.0 }
 0x826   : > { %4782 = vmatmul.msk.f32.vlgmr.msrb.gmra.mxu1 %vm8149_vm0, %v2466_v17 }
 0x827   : > { %2762 = vmatpush.msrb.mxu1 %v2745_v28 }
 0x829   : > { %2763 = vmatpush.msrb.mxu1 %v2744_v40  ;;  %v2730_v40 = vld [vmem:[%s8077_s22] sm:$0xff] }
 0x82b   : > { %2764 = vmatpush.msrb.mxu1 %v2743_v48 }
 0x82d   : > { %2765 = vmatpush.msrb.mxu1 %v2742_v32 }
 0x82e   : > { %4783 = vmatmul.msk.f32.vlgmr.msra.gmra.mxu1 %vm8149_vm0, %v2466_v17  ;;  %v2731_v17 = vld [vmem:[%s8077_s22 + $0x8] sm:$0xff] }
 0x82f   : > { %2766 = vmatpush.msrb.mxu1 %v2741_v47 }
 0x831   : > { %2767 = vmatpush.msrb.mxu1 %v2740_v2 }
 0x833   : > { %2768 = vmatpush.msrb.mxu1 %v2739_v63  ;;  %v2759_v63 = vld [vmem:[%s8077_s22 + $0xe8] sm:$0xff] }
 0x835   : > { %2769 = vmatpush.msrb.mxu1 %v2738_v23 }
 0x837   : > { %2770 = vmatpush.msrb.mxu1 %v2737_v18  ;;  %v2757_v18 = vld [vmem:[%s8077_s22 + $0xd8] sm:$0xff] }
 0x839   : > { %2771 = vmatpush.msrb.mxu1 %v2736_v0 }
 0x83b   : > { %2772 = vmatpush.msrb.mxu1 %v2735_v53  ;;  %v2756_v53 = vld [vmem:[%s8077_s22 + $0xd0] sm:$0xff] }
 0x83d   : > { %2773 = vmatpush.msrb.mxu1 %v2734_v13 }
 0x83f   : > { %2774 = vmatpush.msrb.mxu1 %v2733_v31  ;;  %v2755_v31 = vld [vmem:[%s8077_s22 + $0xc8] sm:$0xff] }
 0x841   : > { %2775 = vmatpush.msrb.mxu1 %v2732_v54  ;;  %v2754_v54 = vld [vmem:[%s8077_s22 + $0xc0] sm:$0xff] }
 0x843   : > { %2776 = vmatpush.msrb.mxu1 %v2731_v17 }
 0x845   : > { %2777 = vmatpush.msrb.mxu1 %v2730_v40 }
 0x8a3   : > { %v2502_v50 = vpop.f32.mrf.mxu1 }
 0x8a4   : > { %v2503_v8 = vadd.f32 %v2502_v50, %v8151_v25 }
 0x8a6   : > { %v4784_v58 = vmul.f32 -1.442695, %v2503_v8  ;;  %v2752_v8 = vld [vmem:[%s8077_s22 + $0xb0] sm:$0xff] }
 0x8a8   : > { %4939 = vpow2.f32 %v4784_v58 }
 0x8ab   : > { %v2522_v1 = vpop.f32.mrf.mxu1 }
 0x8ac   : > { %v2523_v57 = vadd.f32 %v2522_v1, %v8150_v4 }
 0x8ae   : > { %v4940_v27 = vpop.eup %4939  ;;  %v4785_v33 = vmul.f32 -1.442695, %v2523_v57  ;;  %v2761_v57 = vld [vmem:[%s8077_s22 + $0xf8] sm:$0xff] }
 0x8af   : > { %v2531_v14 = vadd.f32 1.0, %v4940_v27  ;;  %2782 = vmatpush.msra.mxu1 %v2761_v57 }
 0x8b0   : > { %4941 = vpow2.f32 %v4785_v33 }
 0x8b1   : > { %4943 = vrcp.f32 %v2531_v14  ;;  %vm2538_vm13 = vweird.f32 %v2531_v14  ;;  %v2544_v50 = vand.u32 2147483648, %v2531_v14  ;;  %v2542_v58 = vand.u32 2147483647, %v2531_v14 }
 0x8b3   : > { %v2545_v33 = vor.u32 1.1754944e-38, %v2544_v50 }
 0x8b6   : > { %v4942_v29 = vpop.eup %4941 }
 0x8b7   : > { %v4944_v52 = vpop.eup %4943  ;;  %v2532_v59 = vadd.f32 1.0, %v4942_v29 }
 0x8b8   : > { %v2534_v24 = vmul.f32 %v4944_v52, %v2531_v14  ;;  %vm2539_vm1 = vweird.f32 %v4944_v52  ;;  %v2760_v14 = vld [vmem:[%s8077_s22 + $0xf0] sm:$0xff] }
 0x8b9   : > { %4945 = vrcp.f32 %v2532_v59  ;;  %v2559_v41 = vand.u32 2147483648, %v2532_v59  ;;  %v2557_v60 = vand.u32 2147483647, %v2532_v59  ;;  %vm7017_vm14 = vmor %vm2538_vm13, %vm2539_vm1  ;;  %vm2553_vm15 = vweird.f32 %v2532_v59  ;;  %2783 = vmatpush.msra.mxu1 %v2760_v14 }
 0x8ba   : > { %v2535_v61 = vsub.f32 1.0, %v2534_v24  ;;  %vm2566_vm13 = vcmask 1040384  }
 0x8bb   : > { %v2560_v1 = vor.u32 1.1754944e-38, %v2559_v41  ;;  %vm2558_vm1 = vcmp.eq.f32.partialorder %v2557_v60, 8.507059e+37  ;;  %2784 = vmatpush.msra.mxu1 %v2759_v63  ;;  %v2750_v63 = vld [vmem:[%s8077_s22 + $0xa0] sm:$0xff] }
 0x8bc   : > { %v2536_v6 = vmul.f32 %v4944_v52, %v2535_v61 }
 0x8be   : > { %v2537_v5 = vadd.f32 %v4944_v52, %v2536_v6 }
 0x8bf   : > { %v4946_v3 = vpop.eup %4945 }
 0x8c0   : > { %v2549_v62 = vmul.f32 %v4946_v3, %v2532_v59  ;;  %vm2554_vm12 = vweird.f32 %v4946_v3  ;;  %v2541_v48 = vsel %vm7017_vm14, %v4944_v52, %v2537_v5  ;;  %v2758_v52 = vld [vmem:[%s8077_s22 + $0xe0] sm:$0xff] }
 0x8c1   : > { %vm2555_vm0 = vmor %vm2553_vm15, %vm2554_vm12  ;;  %vm2543_vm12 = vcmp.eq.f32.partialorder %v2542_v58, 8.507059e+37  ;;  %2785 = vmatpush.msra.mxu1 %v2758_v52 }
 0x8c2   : > { %v2550_v12 = vsub.f32 1.0, %v2549_v62  ;;  %v7034_v2 = vsel %vm2543_vm12, %v2545_v33, %v2541_v48 }
 0x8c3   : > { %2786 = vmatpush.msra.mxu1 %v2757_v18 }
 0x8c4   : > { %v2551_v35 = vmul.f32 %v4946_v3, %v2550_v12 }
 0x8c5   : > { %2787 = vmatpush.msra.mxu1 %v2756_v53 }
 0x8c6   : > { %v2552_v28 = vadd.f32 %v4946_v3, %v2551_v35 }
 0x8c7   : > { %2788 = vmatpush.msra.mxu1 %v2755_v31 }
 0x8c8   : > { %v2556_v27 = vsel %vm2555_vm0, %v4946_v3, %v2552_v28  ;;  %vm2580_vm0 = vcmask 1046528  }
 0x8c9   : > { %v2561_v32 = vsel %vm2558_vm1, %v2560_v1, %v2556_v27  ;;  %2789 = vmatpush.msra.mxu1 %v2754_v54 }
 0x8ca   : > { %v7032_v47 = vrot.slane %v2561_v32, 7 }
 0x8cc   : > { %v2567_v29 = vsel %vm2566_vm13, %v7034_v2, %v7032_v47  ;;  %v2568_v23 = vsel %vm1200_vm4, %v7034_v2, %v7032_v47  ;;  %v7051_v24 = vsel %vm1202_vm5, %v7034_v2, %v7032_v47  ;;  %v7064_v6 = vsel %vm1204_vm6, %v7034_v2, %v7032_v47 }
 0x8cd   : > { %v2569_v59 = vrot.slane %v2568_v23, 1  ;;  %v2583_v0 = vperm.slane %v2567_v29, 0  ;;  %v2571_v13 = vrot.slane %v7051_v24, 2  ;;  %v7078_v41 = vsel %vm1206_vm7, %v7034_v2, %v7032_v47 }
 0x8ce   : > { %v2575_v50 = vrot.slane %v7078_v41, 4  ;;  %v7091_v58 = vsel %vm1208_vm8, %v7034_v2, %v7032_v47  ;;  %v2584_v33 = vperm.slane %v2567_v29, 1  ;;  %v7104_v14 = vsel %vm1210_vm9, %v7034_v2, %v7032_v47 }
 0x8cf   : > { %v2585_v61 = vperm.slane %v2569_v59, 0  ;;  %v2615_v3 = vmul.f32 %v2583_v0, %v6425_v15  ;;  %v2617_v62 = vmul.f32 %v2583_v0, %v6421_v26  ;;  %v2573_v15 = vrot.slane %v7064_v6, 3 }
 0x8d0   : > { %v2587_v5 = vperm.slane %v2571_v13, 0  ;;  %v2577_v32 = vrot.slane %v7091_v58, 5  ;;  %v2586_v52 = vperm.slane %v2569_v59, 1  ;;  %v2618_v53 = vmul.f32 %v2584_v33, %v6423_v44 }
 0x8d1   : > { %v2619_v12 = vmul.f32 %v2585_v61, %v6446_v9  ;;  %v2647_v26 = vmax.f32 %v2615_v3, 0.0  ;;  %v2649_v35 = vmax.f32 %v2617_v62, 0.0  ;;  %v2753_v9 = vld [vmem:[%s8077_s22 + $0xb8] sm:$0xff]  ;;  %v2621_v60 = vmul.f32 %v2585_v61, %v6440_v46  ;;  %v2751_v46 = vld [vmem:[%s8077_s22 + $0xa8] sm:$0xff] }
 0x8d2   : > { %v2589_v28 = vperm.slane %v2573_v15, 0  ;;  %v2623_v40 = vmul.f32 %v2587_v5, %v6480_v20  ;;  %2790 = vmatpush.msra.mxu1 %v2753_v9  ;;  %v2625_v57 = vmul.f32 %v2587_v5, %v6472_v56  ;;  %v2591_v20 = vperm.slane %v2575_v50, 0 }
 0x8d3   : > { %v2651_v17 = vmax.f32 %v2619_v12, 0.0  ;;  %v2679_v1 = vadd.f32 %v2649_v35, %v2647_v26  ;;  %v2653_v48 = vmax.f32 %v2621_v60, 0.0  ;;  %v2616_v61 = vmul.f32 %v2584_v33, %v6432_v34  ;;  %v8299_v12 = vld [vmem:[#allocation17_spill] sm:$0xff]  ;;  %v8300_v34 = vld [vmem:[#allocation22_spill] sm:$0xff] }
 0x8d4   : > { %2791 = vmatpush.msra.mxu1 %v2752_v8  ;;  %v2627_v56 = vmul.f32 %v2589_v28, %v6537_v38  ;;  %v2655_v23 = vmax.f32 %v2623_v40, 0.0  ;;  %v2629_v24 = vmul.f32 %v2589_v28, %v6530_v39  ;;  %v2657_v18 = vmax.f32 %v2625_v57, 0.0  ;;  %v2749_v40 = vld [vmem:[%s8077_s22 + $0x98] sm:$0xff] }
 0x8d5   : > { %v2680_v27 = vadd.f32 %v2679_v1, %v2651_v17  ;;  %v2579_v3 = vrot.slane %v7104_v14, 6  ;;  %v7119_v62 = vsel %vm2580_vm0, %v7032_v47, %v7034_v2  ;;  %v2593_v38 = vperm.slane %v2577_v32, 0  ;;  %v8301_v2 = vld [vmem:[#allocation26_spill] sm:$0xff]  ;;  %v2748_v1 = vld [vmem:[%s8077_s22 + $0x90] sm:$0xff] }
 0x8d6   : > { %2792 = vmatpush.msra.mxu1 %v2751_v46  ;;  %v2631_v59 = vmul.f32 %v2591_v20, %v6587_v51  ;;  %v2659_v39 = vmax.f32 %v2627_v56, 0.0  ;;  %v2620_v54 = vmul.f32 %v2586_v52, %v8299_v12  ;;  %v2633_v5 = vmul.f32 %v2591_v20, %v8300_v34  ;;  %v2747_v56 = vld [vmem:[%s8077_s22 + $0x88] sm:$0xff] }
 0x8d7   : > { %v2681_v29 = vadd.f32 %v2680_v27, %v2653_v48  ;;  %v2661_v44 = vmax.f32 %v2629_v24, 0.0  ;;  %v2588_v35 = vperm.slane %v2571_v13, 1  ;;  %v2648_v9 = vmax.f32 %v2616_v61, 0.0  ;;  %v8302_v13 = vld [vmem:[#allocation16_spill] sm:$0xff]  ;;  %v8303_v48 = vld [vmem:[#allocation25_spill] sm:$0xff] }
 0x8d8   : > { %2793 = vmatpush.msra.mxu1 %v2750_v63  ;;  %v2650_v60 = vmax.f32 %v2618_v53, 0.0  ;;  %v2582_v17 = vrot.slane %v7119_v62, 7  ;;  %v2595_v47 = vperm.slane %v2579_v3, 0  ;;  %v2635_v8 = vmul.f32 %v2593_v38, %v8301_v2 }
 0x8d9   : > { %v2682_v0 = vadd.f32 %v2681_v29, %v2655_v23  ;;  %v2663_v28 = vmax.f32 %v2631_v59, 0.0  ;;  %v2622_v46 = vmul.f32 %v2586_v52, %v8302_v13  ;;  %v2652_v57 = vmax.f32 %v2620_v54, 0.0  ;;  %v8304_v29 = vld [vmem:[#allocation19_spill] sm:$0xff]  ;;  %v2746_v59 = vld [vmem:[%s8077_s22 + $0x80] sm:$0xff] }
 0x8da   : > { %v2637_v27 = vmul.f32 %v2593_v38, %v8303_v48  ;;  %v2665_v33 = vmax.f32 %v2633_v5, 0.0  ;;  %v5129_v20 = vmov 128.0   ;;  %2794 = vmatpush.msra.mxu1 %v2749_v40  ;;  %v2590_v23 = vperm.slane %v2573_v15, 1  ;;  %v8307_v15 = vld [vmem:[#allocation28_spill] sm:$0xff] }
 0x8db   : > { %v2683_v31 = vadd.f32 %v2682_v0, %v2657_v18  ;;  %4947 = vrcp.f32 %v5129_v20  ;;  %v2624_v24 = vmul.f32 %v2588_v35, %v8304_v29  ;;  %v2700_v18 = vadd.f32 %v2650_v60, %v2648_v9  ;;  %v8305_v0 = vld [vmem:[#allocation27_spill] sm:$0xff] }
 0x8dc   : > { %v2597_v52 = vperm.slane %v2582_v17, 0  ;;  %v2639_v61 = vmul.f32 %v2595_v47, %v8305_v0  ;;  %v2667_v53 = vmax.f32 %v2635_v8, 0.0  ;;  %2795 = vmatpush.msra.mxu1 %v2748_v1  ;;  %v2654_v12 = vmax.f32 %v2622_v46, 0.0  ;;  %v8310_v1 = vld [vmem:[#allocation20_spill] sm:$0xff]  ;;  %v8313_v0 = vld [vmem:[#allocation23_spill] sm:$0xff] }
 0x8dd   : > { %v2684_v26 = vadd.f32 %v2683_v31, %v2659_v39  ;;  %v8306_v39 = vld [vmem:[#allocation18_spill] sm:$0xff]  ;;  %v2701_v6 = vadd.f32 %v2700_v18, %v2652_v57  ;;  %v2641_v54 = vmul.f32 %v2595_v47, %v8307_v15  ;;  %v2669_v34 = vmax.f32 %v2637_v27, 0.0  ;;  %v8311_v57 = vld [vmem:[#allocation35_spill] sm:$0xff]  ;;  %v8315_v15 = vld [vmem:[#allocation29_spill] sm:$0xff] }
 0x8de   : > { %v2626_v31 = vmul.f32 %v2588_v35, %v8306_v39  ;;  %2796 = vmatpush.msra.mxu1 %v2747_v56  ;;  %v2592_v5 = vperm.slane %v2575_v50, 1  ;;  %v2656_v60 = vmax.f32 %v2624_v24, 0.0  ;;  %v2671_v40 = vmax.f32 %v2639_v61, 0.0  ;;  %v8314_v39 = vld [vmem:[#allocation30_spill] sm:$0xff] }
 0x8df   : > { %v2685_v51 = vadd.f32 %v2684_v26, %v2661_v44  ;;  %v8308_v26 = vld [vmem:[#allocation21_spill] sm:$0xff]  ;;  %v2702_v2 = vadd.f32 %v2701_v6, %v2654_v12  ;;  %v2630_v13 = vmul.f32 %v2590_v23, %v8310_v1  ;;  %v2645_v48 = vmul.f32 %v2597_v52, %v8311_v57 }
 0x8e0   : > { %v2628_v9 = vmul.f32 %v2590_v23, %v8308_v26  ;;  %2797 = vmatpush.msra.mxu1 %v2746_v59  ;;  %v2658_v46 = vmax.f32 %v2626_v31, 0.0  ;;  %v2673_v27 = vmax.f32 %v2641_v54, 0.0  ;;  %v2594_v41 = vperm.slane %v2577_v32, 1 }
 0x8e1   : > { %v2686_v63 = vadd.f32 %v2685_v51, %v2663_v28  ;;  %v4948_v8 = vpop.eup %4947  ;;  %v8309_v28 = vld [vmem:[#allocation33_spill] sm:$0xff]  ;;  %v2703_v47 = vadd.f32 %v2702_v2, %v2656_v60  ;;  %v2634_v61 = vmul.f32 %v2592_v5, %v8313_v0 }
 0x8e2   : > { %v2643_v51 = vmul.f32 %v2597_v52, %v8309_v28  ;;  %v2722_v24 = vmul.f32 128.0, %v4948_v8  ;;  %v2596_v52 = vperm.slane %v2579_v3, 1  ;;  %v2636_v58 = vmul.f32 %v2594_v41, %v8314_v39 }
 0x8e3   : > { %v2687_v38 = vadd.f32 %v2686_v63, %v2665_v33  ;;  %v8312_v33 = vld [vmem:[#allocation24_spill] sm:$0xff]  ;;  %v2660_v63 = vmax.f32 %v2628_v9, 0.0  ;;  %v2704_v56 = vadd.f32 %v2703_v47, %v2658_v46  ;;  %v2638_v54 = vmul.f32 %v2594_v41, %v8315_v15  ;;  %v8318_v46 = vld [vmem:[#allocation34_spill] sm:$0xff] }
 0x8e4   : > { %v2632_v20 = vmul.f32 %v2592_v5, %v8312_v33  ;;  %v2675_v29 = vmax.f32 %v2643_v51, 0.0  ;;  %v2723_v12 = vsub.f32 1.0, %v2722_v24  ;;  %v2598_v5 = vperm.slane %v2582_v17, 1  ;;  %v8316_v9 = vld [vmem:[#allocation32_spill] sm:$0xff]  ;;  %v8317_v51 = vld [vmem:[#allocation31_spill] sm:$0xff] }
 0x8e5   : > { %v2688_v44 = vadd.f32 %v2687_v38, %v2667_v53  ;;  %v2662_v53 = vmax.f32 %v2630_v13, 0.0  ;;  %v2705_v23 = vadd.f32 %v2704_v56, %v2660_v63  ;;  %v2677_v38 = vmax.f32 %v2645_v48, 0.0  ;;  %v8319_v41 = vld [vmem:[#allocation36_spill] sm:$0xff] }
 0x8e6   : > { %v2664_v32 = vmax.f32 %v2632_v20, 0.0  ;;  %v2640_v60 = vmul.f32 %v2596_v52, %v8316_v9  ;;  %v2668_v2 = vmax.f32 %v2636_v58, 0.0  ;;  %v2724_v3 = vmul.f32 %v4948_v8, %v2723_v12  ;;  %v5002_v12 = vld [vmem:[%s8321_s24] ss:$0 sm:$0xff] }
 0x8e7   : > { %v2689_v35 = vadd.f32 %v2688_v44, %v2669_v34  ;;  %v2706_v31 = vadd.f32 %v2705_v23, %v2662_v53  ;;  %v2666_v34 = vmax.f32 %v2634_v61, 0.0  ;;  %v2644_v47 = vmul.f32 %v2598_v5, %v8318_v46 }
 0x8e8   : > { %v2672_v57 = vmax.f32 %v2640_v60, 0.0  ;;  %v2646_v62 = vmul.f32 %v2598_v5, %v8319_v41  ;;  %vm2726_vm14 = vweird.f32 %v4948_v8  ;;  %v5003_v5 = vld [vmem:[%s8324_s8] ss:$0 sm:$0xff]  ;;  %s728_s8 = sand.u32 1, %s8395_s6  }
 0x8e9   : > { %v2690_v50 = vadd.f32 %v2689_v35, %v2671_v40  ;;  %v2707_v44 = vadd.f32 %v2706_v31, %v2664_v32  ;;  %v2642_v40 = vmul.f32 %v2596_v52, %v8317_v51  ;;  %v2670_v35 = vmax.f32 %v2638_v54, 0.0  ;;  %v3240_v31 = vpop.f32.mrf.mxu3  ;;  %s729_s1 = scalar_lea.vmem [#allocation2], %s728_s8  ;;  %s4671_s6 = scalar_lea.sflag [#allocation3], %s728_s8 }
 0x8ea   : > { %v2676_v63 = vmax.f32 %v2644_v47, 0.0 }
 0x8eb   : > { %v2691_v18 = vadd.f32 %v2690_v50, %v2673_v27  ;;  %v2708_v14 = vadd.f32 %v2707_v44, %v2666_v34  ;;  %v2725_v27 = vadd.f32 %v4948_v8, %v2724_v3  ;;  %v2674_v50 = vmax.f32 %v2642_v40, 0.0 }
 0x8ed   : > { %v2692_v59 = vadd.f32 %v2691_v18, %v2675_v29  ;;  %v2709_v1 = vadd.f32 %v2708_v14, %v2668_v2  ;;  %v7172_v29 = vsel %vm2726_vm14, %v4948_v8, %v2725_v27  ;;  %v2678_v18 = vmax.f32 %v2646_v62, 0.0 }
 0x8ee   : > { %8320 = vst [vmem:[#allocation17_spill] sm:$0xff] %v7172_v29 }
 0x8ef   : > { %v2693_v6 = vadd.f32 %v2692_v59, %v2677_v38  ;;  %v2710_v48 = vadd.f32 %v2709_v1, %v2670_v35  ;;  %v5001_v38 = vld [vmem:[%s8231_s2] sm:$0xff]  ;;  %s4681_s2 = sshll.u32 %s729_s1, 4  ;;  %s4682_s2 = int_to_ptr.vmem [resolvable:$true] %s4681_s2 }
 0x8f1   : > { %v2694_v26 = vrot.slane %v2693_v6, 4  ;;  %v2711_v33 = vadd.f32 %v2710_v48, %v2672_v57 }
 0x8f3   : > { %v2695_v28 = vadd.f32 %v2694_v26, %v2693_v6  ;;  %v2712_v56 = vadd.f32 %v2711_v33, %v2674_v50  ;;  %v3241_v6 = vadd.f32 %v5002_v12, %v3240_v31 }
 0x8f5   : > { %v2696_v13 = vrot.slane %v2695_v28, 2  ;;  %v2713_v0 = vadd.f32 %v2712_v56, %v2676_v63  ;;  %v3243_v15 = vmax.f32 %v3241_v6, 0.0 }
 0x8f7   : > { %v2697_v17 = vadd.f32 %v2696_v13, %v2695_v28  ;;  %v2714_v53 = vadd.f32 %v2713_v0, %v2678_v18 }
 0x8f9   : > { %v2698_v20 = vrot.slane %v2697_v17, 1  ;;  %v2715_v23 = vrot.slane %v2714_v53, 4 }
 0x8fb   : > { %v2699_v24 = vadd.f32 %v2698_v20, %v2697_v17  ;;  %v2716_v52 = vadd.f32 %v2715_v23, %v2714_v53 }
 0x8fd   : > { %v2728_v61 = vmul.f32 %v7172_v29, %v2699_v24  ;;  %v2717_v59 = vrot.slane %v2716_v52, 2 }
 0x8ff   : > { %2778 = vmatmul.f32.vlgmr.msrb.gmra.mxu1 %v2728_v61  ;;  %v2718_v39 = vadd.f32 %v2717_v59, %v2716_v52 }
 0x900   : > { %3262 = vmatpush.msrb.mxu1 %v5001_v38 }
 0x901   : > { %v2719_v58 = vrot.slane %v2718_v39, 1 }
 0x903   : > { %v2720_v32 = vadd.f32 %v2719_v58, %v2718_v39 }
 0x905   : > { %v2729_v8 = vmul.f32 %v7172_v29, %v2720_v32 }
 0x907   : > { %2798 = vmatmul.f32.vlgmr.msra.gmra.mxu1 %v2729_v8 }
 0x90f   : > { %4820 = vmatmul.msk.f32.vlgmr.msrb.gmra.mxu1 %vm1242_vm11, %v3243_v15 }
 0x97c   : > { %v7183_v54 = vpop.f32.mrf.mxu1 }
 0x97d   : > { %8322 = vst [vmem:[#allocation22_spill] sm:$0xff] %v7183_v54 }
 0x984   : > { %v7185_v34 = vpop.f32.mrf.mxu1 }
 0x985   : > { %8323 = vst [vmem:[#allocation26_spill] sm:$0xff] %v7185_v34 }
 0x98c   : > { %v3264_v44 = vpop.f32.mrf.mxu1 }
 0x98d   : > { %v3265_v26 = vadd.f32 %v5003_v5, %v3264_v44 }
 0x98f   : > { %v4821_v9 = vmul.f32 -1.442695, %v3265_v26 }
 0x991   : > { %4949 = vpow2.f32 %v4821_v9  ;;  %v8325_v9 = vld [vmem:[#allocation39_spill] sm:$0xff] }
 0x997   : > { %v4950_v60 = vpop.eup %4949 }
 0x998   : > { %v3270_v2 = vadd.f32 1.0, %v4950_v60 }
 0x99a   : > { %4951 = vrcp.f32 %v3270_v2  ;;  %v3282_v51 = vand.u32 2147483648, %v3270_v2  ;;  %v3280_v35 = vand.u32 2147483647, %v3270_v2  ;;  %vm3276_vm15 = vweird.f32 %v3270_v2 }
 0x99c   : > { %v3283_v13 = vor.u32 1.1754944e-38, %v3282_v51  ;;  %vm3281_vm12 = vcmp.eq.f32.partialorder %v3280_v35, 8.507059e+37  ;;  %v5006_v35 = vld [vmem:[%s8073_s18 + $0x70] sm:$0xff] }
 0x9a0   : > { %v4952_v14 = vpop.eup %4951 }
 0x9a1   : > { %v3272_v3 = vmul.f32 %v4952_v14, %v3270_v2  ;;  %vm3277_vm11 = vweird.f32 %v4952_v14  ;;  %v8326_v2 = vld [vmem:[#allocation38_spill] sm:$0xff] }
 0x9a2   : > { %vm3278_vm1 = vmor %vm3276_vm15, %vm3277_vm11 }
 0x9a3   : > { %v3273_v28 = vsub.f32 1.0, %v3272_v3  ;;  %v8327_v3 = vld [vmem:[#allocation37_spill] sm:$0xff] }
 0x9a5   : > { %v3274_v40 = vmul.f32 %v4952_v14, %v3273_v28 }
 0x9a7   : > { %v3275_v1 = vadd.f32 %v4952_v14, %v3274_v40  ;;  %v5005_v40 = vld [vmem:[%s8073_s18 + $0x78] sm:$0xff] }
 0x9a9   : > { %v3279_v46 = vsel %vm3278_vm1, %v4952_v14, %v3275_v1  ;;  %v5007_v1 = vld [vmem:[%s8073_s18 + $0x68] sm:$0xff] }
 0x9aa   : > { %v3284_v47 = vsel %vm3281_vm12, %v3283_v13, %v3279_v46  ;;  %v5008_v13 = vld [vmem:[%s8073_s18 + $0x60] sm:$0xff]  ;;  %v7227_v46 = vld [vmem:[%s8216_s30 + $0x8] sm:$0xff] }
 0x9ab   : > { %v3293_v57 = vrot.slane %v3284_v47, 7  ;;  %v3292_v48 = vrot.slane %v3284_v47, 6  ;;  %v3291_v62 = vrot.slane %v3284_v47, 5  ;;  %v3290_v56 = vrot.slane %v3284_v47, 4 }
 0x9ac   : > { %v3289_v23 = vrot.slane %v3284_v47, 3  ;;  %v3288_v59 = vrot.slane %v3284_v47, 2  ;;  %v3287_v8 = vrot.slane %v3284_v47, 1 }
 0x9ad   : > { %v3301_v27 = vperm.slane %v3293_v57, 0  ;;  %v3300_v41 = vperm.slane %v3292_v48, 0  ;;  %v3299_v63 = vperm.slane %v3291_v62, 0  ;;  %v3298_v53 = vperm.slane %v3290_v56, 0  ;;  %v5011_v57 = vld [vmem:[%s8073_s18 + $0x50] sm:$0xff]  ;;  %v5012_v48 = vld [vmem:[%s8073_s18 + $0x48] sm:$0xff] }
 0x9ae   : > { %v3297_v52 = vperm.slane %v3289_v23, 0  ;;  %v3296_v32 = vperm.slane %v3288_v59, 0  ;;  %v3295_v6 = vperm.slane %v3287_v8, 0  ;;  %v5015_v62 = vld [vmem:[%s8073_s18 + $0x38] sm:$0xff]  ;;  %v5021_v56 = vld [vmem:[%s8073_s18 + $0x10] sm:$0xff]  ;;  %v5027_v23 = vld [vmem:[%s8073_s18 + $0xe8] sm:$0xff] }
 0x9af   : > { %v3325_v17 = vmul.f32 %v3301_v27, %v6925_v11  ;;  %v3324_v50 = vmul.f32 %v3301_v27, %v6908_v30  ;;  %v3323_v20 = vmul.f32 %v3300_v41, %v6896_v55  ;;  %v3322_v18 = vmul.f32 %v3300_v41, %v6885_v49  ;;  %v5013_v27 = vld [vmem:[%s8073_s18 + $0x40] sm:$0xff]  ;;  %v7245_v41 = vld [vmem:[%s8216_s30 + $0x10] sm:$0xff]  ;;  %v7335_v8 = vld [vmem:[%s8216_s30 + $0x38] sm:$0xff] }
 0x9b0   : > { %v3321_v61 = vmul.f32 %v3299_v63, %v6866_v7  ;;  %v3320_v11 = vmul.f32 %v3299_v63, %v6864_v45  ;;  %v3319_v55 = vmul.f32 %v3298_v53, %v6858_v36  ;;  %v3318_v49 = vmul.f32 %v3298_v53, %v6856_v21  ;;  %v5020_v63 = vld [vmem:[%s8073_s18 + $0x18] sm:$0xff]  ;;  %v5026_v53 = vld [vmem:[%s8073_s18 + $0xf0] sm:$0xff]  ;;  %v5033_v59 = vld [vmem:[%s8073_s18 + $0xc0] sm:$0xff]  ;;  %8330 = vst [vmem:[#allocation19_spill] sm:$0xff] %v7335_v8 }
 0x9b1   : > { %v3341_v33 = vmax.f32 %v3325_v17, 0.0  ;;  %v3340_v24 = vmax.f32 %v3324_v50, 0.0  ;;  %v3339_v0 = vmax.f32 %v3323_v20, 0.0  ;;  %v3338_v38 = vmax.f32 %v3322_v18, 0.0  ;;  %v5016_v17 = vld [vmem:[%s8073_s18 + $0x30] sm:$0xff]  ;;  %v5017_v50 = vld [vmem:[%s8073_s18 + $0x28] sm:$0xff] }
 0x9b2   : > { %v3337_v30 = vmax.f32 %v3321_v61, 0.0  ;;  %v3336_v39 = vmax.f32 %v3320_v11, 0.0  ;;  %v3335_v58 = vmax.f32 %v3319_v55, 0.0  ;;  %v3317_v7 = vmul.f32 %v3297_v52, %v6848_v43  ;;  %v7263_v20 = vld [vmem:[%s8216_s30 + $0x18] sm:$0xff]  ;;  %v5023_v18 = vld [vmem:[%s8073_s18] sm:$0xff]  ;;  %v7299_v11 = vld [vmem:[%s8216_s30 + $0x28] sm:$0xff] }
 0x9b3   : > { %3342 = vmatpush.msra.mxu1 %v3341_v33  ;;  %v3334_v31 = vmax.f32 %v3318_v49, 0.0  ;;  %v3316_v45 = vmul.f32 %v3297_v52, %v6846_v10  ;;  %v3315_v36 = vmul.f32 %v3296_v32, %v6832_v16  ;;  %v3314_v44 = vmul.f32 %v3296_v32, %v6830_v22  ;;  %v5018_v33 = vld [vmem:[%s8073_s18 + $0x20] sm:$0xff]  ;;  %v5025_v61 = vld [vmem:[%s8073_s18 + $0xf8] sm:$0xff]  ;;  %8328 = vst [vmem:[#allocation16_spill] sm:$0xff] %v7299_v11  ;;  %v5031_v55 = vld [vmem:[%s8073_s18 + $0xd0] sm:$0xff] }
 0x9b4   : > { %v3333_v12 = vmax.f32 %v3317_v7, 0.0  ;;  %v3313_v5 = vmul.f32 %v3295_v6, %v6818_v19  ;;  %v3294_v43 = vperm.slane %v3284_v47, 0  ;;  %v3312_v60 = vmul.f32 %v3295_v6, %v8325_v9  ;;  %v7209_v19 = vld [vmem:[%s8216_s30] sm:$0xff]  ;;  %v5010_v47 = vld [vmem:[%s8073_s18 + $0x58] sm:$0xff]  ;;  %v5032_v52 = vld [vmem:[%s8073_s18 + $0xc8] sm:$0xff] }
 0x9b5   : > { %3343 = vmatpush.msra.mxu1 %v3340_v24  ;;  %v3332_v15 = vmax.f32 %v3316_v45, 0.0  ;;  %v3331_v21 = vmax.f32 %v3315_v36, 0.0  ;;  %v3330_v26 = vmax.f32 %v3314_v44, 0.0  ;;  %v5022_v24 = vld [vmem:[%s8073_s18 + $0x8] sm:$0xff]  ;;  %v5035_v49 = vld [vmem:[%s8073_s18 + $0xb8] sm:$0xff]  ;;  %v5038_v32 = vld [vmem:[%s8073_s18 + $0xa0] sm:$0xff] }
 0x9b6   : > { %v3329_v10 = vmax.f32 %v3313_v5, 0.0  ;;  %v3311_v14 = vmul.f32 %v3294_v43, %v8326_v2  ;;  %v3328_v16 = vmax.f32 %v3312_v60, 0.0  ;;  %v3310_v28 = vmul.f32 %v3294_v43, %v8327_v3  ;;  %v5037_v7 = vld [vmem:[%s8073_s18 + $0xa8] sm:$0xff]  ;;  %v5041_v45 = vld [vmem:[%s8073_s18 + $0x90] sm:$0xff]  ;;  %v5043_v36 = vld [vmem:[%s8073_s18 + $0x80] sm:$0xff] }
 0x9b7   : > { %3344 = vmatpush.msra.mxu1 %v3339_v0  ;;  %v7281_v0 = vld [vmem:[%s8216_s30 + $0x20] sm:$0xff]  ;;  %v7365_v44 = vld [vmem:[%s8216_s30 + $0x50] sm:$0xff]  ;;  %v7383_v43 = vld [vmem:[%s8216_s30 + $0x68] sm:$0xff] }
 0x9b8   : > { %v3327_v51 = vmax.f32 %v3311_v14, 0.0  ;;  %v3326_v22 = vmax.f32 %v3310_v28, 0.0  ;;  %v7353_v6 = vld [vmem:[%s8216_s30 + $0x40] sm:$0xff]  ;;  %8333 = vst [vmem:[#allocation28_spill] sm:$0xff] %v7365_v44  ;;  %v7395_v9 = vld [vmem:[%s8216_s30 + $0x78] sm:$0xff] }
 0x9b9   : > { %3345 = vmatpush.msra.mxu1 %v3338_v38  ;;  %v5028_v38 = vld [vmem:[%s8073_s18 + $0xe0] sm:$0xff]  ;;  %8331 = vst [vmem:[#allocation27_spill] sm:$0xff] %v7353_v6 }
 0x9ba   : > { %v7377_v5 = vld [vmem:[%s8216_s30 + $0x60] sm:$0xff]  ;;  %8336 = vst [vmem:[#allocation20_spill] sm:$0xff] %v7383_v43 }
 0x9bb   : > { %3346 = vmatpush.msra.mxu1 %v3337_v30  ;;  %v5030_v30 = vld [vmem:[%s8073_s18 + $0xd8] sm:$0xff]  ;;  %8335 = vst [vmem:[#allocation33_spill] sm:$0xff] %v7377_v5 }
 0x9bc   : > { %8338 = vst [vmem:[#allocation24_spill] sm:$0xff] %v7395_v9 }
 0x9bd   : > { %3347 = vmatpush.msra.mxu1 %v3336_v39  ;;  %v7317_v39 = vld [vmem:[%s8216_s30 + $0x30] sm:$0xff] }
 0x9be   : > { %8329 = vst [vmem:[#allocation25_spill] sm:$0xff] %v7317_v39 }
 0x9bf   : > { %3348 = vmatpush.msra.mxu1 %v3335_v58  ;;  %v5036_v58 = vld [vmem:[%s8073_s18 + $0xb0] sm:$0xff] }
 0x9c1   : > { %3349 = vmatpush.msra.mxu1 %v3334_v31  ;;  %v5040_v31 = vld [vmem:[%s8073_s18 + $0x98] sm:$0xff] }
 0x9c3   : > { %3350 = vmatpush.msra.mxu1 %v3333_v12  ;;  %v5042_v12 = vld [vmem:[%s8073_s18 + $0x88] sm:$0xff] }
 0x9c5   : > { %3351 = vmatpush.msra.mxu1 %v3332_v15  ;;  %v7359_v15 = vld [vmem:[%s8216_s30 + $0x48] sm:$0xff] }
 0x9c6   : > { %8332 = vst [vmem:[#allocation18_spill] sm:$0xff] %v7359_v15 }
 0x9c7   : > { %3352 = vmatpush.msra.mxu1 %v3331_v21  ;;  %v7371_v21 = vld [vmem:[%s8216_s30 + $0x58] sm:$0xff] }
 0x9c8   : > { %8334 = vst [vmem:[#allocation21_spill] sm:$0xff] %v7371_v21 }
 0x9c9   : > { %3353 = vmatpush.msra.mxu1 %v3330_v26  ;;  %v7389_v26 = vld [vmem:[%s8216_s30 + $0x70] sm:$0xff] }
 0x9ca   : > { %8337 = vst [vmem:[#allocation35_spill] sm:$0xff] %v7389_v26 }
 0x9cb   : > { %3354 = vmatpush.msra.mxu1 %v3329_v10 }
 0x9cd   : > { %3355 = vmatpush.msra.mxu1 %v3328_v16 }
 0x9cf   : > { %3356 = vmatpush.msra.mxu1 %v3327_v51 }
 0x9d1   : > { %3357 = vmatpush.msra.mxu1 %v3326_v22 }
 0x9d2   : > { %3358 = vmatmul.f32.vlgmr.msra.gmra.mxu1 %v7209_v19 }
 0x9d3   : > { %4314 = vmatpush.msrb.mxu1 %v5005_v40 }
 0x9d5   : > { %4315 = vmatpush.msrb.mxu1 %v5006_v35 }
 0x9d7   : > { %4316 = vmatpush.msrb.mxu1 %v5007_v1 }
 0x9d9   : > { %4317 = vmatpush.msrb.mxu1 %v5008_v13 }
 0x9da   : > { %3361 = vmatmul.f32.gmra.mxu1 %v7227_v46 }
 0x9db   : > { %4318 = vmatpush.msrb.mxu1 %v5010_v47 }
 0x9dd   : > { %4319 = vmatpush.msrb.mxu1 %v5011_v57 }
 0x9df   : > { %4320 = vmatpush.msrb.mxu1 %v5012_v48 }
 0x9e1   : > { %4321 = vmatpush.msrb.mxu1 %v5013_v27 }
 0x9e2   : > { %3364 = vmatmul.f32.gmra.mxu1 %v7245_v41 }
 0x9e3   : > { %4322 = vmatpush.msrb.mxu1 %v5015_v62 }
 0x9e5   : > { %4323 = vmatpush.msrb.mxu1 %v5016_v17 }
 0x9e7   : > { %4324 = vmatpush.msrb.mxu1 %v5017_v50 }
 0x9e9   : > { %4325 = vmatpush.msrb.mxu1 %v5018_v33 }
 0x9ea   : > { %3367 = vmatmul.f32.gmra.mxu1 %v7263_v20 }
 0x9eb   : > { %4326 = vmatpush.msrb.mxu1 %v5020_v63 }
 0x9ed   : > { %4327 = vmatpush.msrb.mxu1 %v5021_v56 }
 0x9ef   : > { %4328 = vmatpush.msrb.mxu1 %v5022_v24 }
 0x9f1   : > { %4329 = vmatpush.msrb.mxu1 %v5023_v18 }
 0x9f2   : > { %3370 = vmatmul.f32.gmra.mxu1 %v7281_v0 }
 0x9f3   : > { %4334 = vmatpush.msra.mxu1 %v5025_v61 }
 0x9f5   : > { %4335 = vmatpush.msra.mxu1 %v5026_v53 }
 0x9f7   : > { %4336 = vmatpush.msra.mxu1 %v5027_v23  ;;  %v7417_v23 = vld [vmem:[%s8066_s11] ss:$0 sm:$0xff] }
 0x9f9   : > { %4337 = vmatpush.msra.mxu1 %v5028_v38 }
 0x9fa   : > { %3373 = vmatmul.f32.gmra.mxu1 %v7299_v11 }
 0x9fb   : > { %4338 = vmatpush.msra.mxu1 %v5030_v30 }
 0x9fd   : > { %4339 = vmatpush.msra.mxu1 %v5031_v55 }
 0x9ff   : > { %4340 = vmatpush.msra.mxu1 %v5032_v52 }
 0xa01   : > { %4341 = vmatpush.msra.mxu1 %v5033_v59 }
 0xa02   : > { %3376 = vmatmul.f32.gmra.mxu1 %v7317_v39 }
 0xa03   : > { %4342 = vmatpush.msra.mxu1 %v5035_v49 }
 0xa05   : > { %4343 = vmatpush.msra.mxu1 %v5036_v58 }
 0xa07   : > { %4344 = vmatpush.msra.mxu1 %v5037_v7 }
 0xa09   : > { %4345 = vmatpush.msra.mxu1 %v5038_v32 }
 0xa0a   : > { %3379 = vmatmul.f32.gmra.mxu1 %v7335_v8 }
 0xa0b   : > { %4346 = vmatpush.msra.mxu1 %v5040_v31 }
 0xa0d   : > { %4347 = vmatpush.msra.mxu1 %v5041_v45 }
 0xa0f   : > { %4348 = vmatpush.msra.mxu1 %v5042_v12 }
 0xa11   : > { %4349 = vmatpush.msra.mxu1 %v5043_v36 }
 0xa12   : > { %3382 = vmatmul.f32.gmra.mxu1 %v7353_v6 }
 0xa1a   : > { %3385 = vmatmul.f32.gmra.mxu1 %v7359_v15 }
 0xa22   : > { %3388 = vmatmul.f32.gmra.mxu1 %v7365_v44 }
 0xa2a   : > { %3391 = vmatmul.f32.gmra.mxu1 %v7371_v21 }
 0xa32   : > { %3394 = vmatmul.f32.gmra.mxu1 %v7377_v5 }
 0xa3a   : > { %3397 = vmatmul.f32.gmra.mxu1 %v7383_v43 }
 0xa42   : > { %3400 = vmatmul.f32.gmra.mxu1 %v7389_v26 }
 0xa4a   : > { %3403 = vmatmul.f32.gmra.mxu1 %v7395_v9 }
 0xa4f   : > { %v3359_v60 = vpop.f32.mrf.mxu1 }
 0xa50   : > { %4822 = vmatmul.msk.f32.vlgmr.msra.gmra.mxu3 %vm1012_vm2, %v3359_v60 }
 0xa57   : > { %v3362_v10 = vpop.f32.mrf.mxu1 }
 0xa58   : > { %4823 = vmatmul.msk.f32.gmra.mxu3 %vm1012_vm2, %v3362_v10 }
 0xa5f   : > { %v3365_v2 = vpop.f32.mrf.mxu1 }
 0xa60   : > { %4824 = vmatmul.msk.f32.gmra.mxu3 %vm1012_vm2, %v3365_v2 }
 0xa67   : > { %v3368_v14 = vpop.f32.mrf.mxu1 }
 0xa68   : > { %4825 = vmatmul.msk.f32.gmra.mxu3 %vm1012_vm2, %v3368_v14 }
 0xa6f   : > { %v3371_v16 = vpop.f32.mrf.mxu1 }
 0xa70   : > { %4826 = vmatmul.msk.f32.gmra.mxu3 %vm1012_vm2, %v3371_v16 }
 0xa77   : > { %v3374_v3 = vpop.f32.mrf.mxu1 }
 0xa78   : > { %4827 = vmatmul.msk.f32.gmra.mxu3 %vm1012_vm2, %v3374_v3 }
 0xa7f   : > { %v3377_v28 = vpop.f32.mrf.mxu1 }
 0xa80   : > { %4828 = vmatmul.msk.f32.gmra.mxu3 %vm1012_vm2, %v3377_v28 }
 0xa87   : > { %v3380_v51 = vpop.f32.mrf.mxu1 }
 0xa88   : > { %4829 = vmatmul.msk.f32.gmra.mxu3 %vm1012_vm2, %v3380_v51 }
 0xa8f   : > { %v3383_v22 = vpop.f32.mrf.mxu1 }
 0xa90   : > { %4830 = vmatmul.msk.f32.gmra.mxu3 %vm1012_vm2, %v3383_v22 }
 0xa97   : > { %v3386_v40 = vpop.f32.mrf.mxu1 }
 0xa98   : > { %4831 = vmatmul.msk.f32.gmra.mxu3 %vm1012_vm2, %v3386_v40 }
 0xa9f   : > { %v3389_v35 = vpop.f32.mrf.mxu1 }
 0xaa0   : > { %4832 = vmatmul.msk.f32.gmra.mxu3 %vm1012_vm2, %v3389_v35 }
 0xaa7   : > { %v3392_v1 = vpop.f32.mrf.mxu1 }
 0xaa8   : > { %4833 = vmatmul.msk.f32.gmra.mxu3 %vm1012_vm2, %v3392_v1 }
 0xaaf   : > { %v3395_v13 = vpop.f32.mrf.mxu1 }
 0xab0   : > { %4834 = vmatmul.msk.f32.gmra.mxu3 %vm1012_vm2, %v3395_v13 }
 0xab7   : > { %v3398_v47 = vpop.f32.mrf.mxu1 }
 0xab8   : > { %4835 = vmatmul.msk.f32.gmra.mxu3 %vm1012_vm2, %v3398_v47 }
 0xabf   : > { %v3401_v57 = vpop.f32.mrf.mxu1 }
 0xac0   : > { %4836 = vmatmul.msk.f32.gmra.mxu3 %vm1012_vm2, %v3401_v57 }
 0xac7   : > { %v3404_v48 = vpop.f32.mrf.mxu1 }
 0xac8   : > { %4837 = vmatmul.msk.f32.gmra.mxu3 %vm1012_vm2, %v3404_v48 }
 0xad3   : > { %v3472_v27 = vpop.f32.mrf.mxu3 }
 0xad4   : > { %v3473_v30 = vadd.f32 %v7417_v23, %v3472_v27 }
 0xad6   : > { %v7423_v59 = vmax.f32 %v3473_v30, 0.0 }
 0xadb   : > { %v3475_v62 = vpop.f32.mrf.mxu3 }
 0xadc   : > { %v3476_v38 = vadd.f32 %v7417_v23, %v3475_v62 }
 0xade   : > { %v7421_v52 = vmax.f32 %v3476_v38, 0.0 }
 0xae0   : > { %v3536_v58 = vadd.f32 %v7421_v52, %v7423_v59  ;;  %v3600_v31 = vmax.f32 %v7423_v59, %v7421_v52 }
 0xae2   : > { %v3537_v2 = vrot.slane %v3536_v58, 4  ;;  %v3601_v22 = vrot.slane %v3600_v31, 4 }
 0xae3   : > { %v3478_v17 = vpop.f32.mrf.mxu3 }
 0xae4   : > { %v3479_v7 = vadd.f32 %v7417_v23, %v3478_v17  ;;  %v3538_v57 = vadd.f32 %v3537_v2, %v3536_v58 }
 0xae6   : > { %v7439_v3 = vmax.f32 %v3479_v7, 0.0 }
 0xaeb   : > { %v3481_v50 = vpop.f32.mrf.mxu3 }
 0xaec   : > { %v3482_v49 = vadd.f32 %v7417_v23, %v3481_v50  ;;  %v3602_v50 = vmax.f32 %v3600_v31, %v3601_v22 }
 0xaee   : > { %v7433_v12 = vmax.f32 %v3482_v49, 0.0  ;;  %v3603_v58 = vrot.slane %v3602_v50, 2 }
 0xaf0   : > { %v3543_v1 = vadd.f32 %v7433_v12, %v7439_v3 }
 0xaf3   : > { %v3484_v33 = vpop.f32.mrf.mxu3 }
 0xaf4   : > { %v3485_v36 = vadd.f32 %v7417_v23, %v3484_v33 }
 0xaf6   : > { %v7449_v13 = vmax.f32 %v3485_v36, 0.0 }
 0xafb   : > { %v3487_v63 = vpop.f32.mrf.mxu3 }
 0xafc   : > { %v3488_v32 = vadd.f32 %v7417_v23, %v3487_v63 }
 0xafe   : > { %v7441_v28 = vmax.f32 %v3488_v32, 0.0 }
 0xb00   : > { %v3550_v62 = vadd.f32 %v7441_v28, %v7449_v13  ;;  %v3614_v36 = vmax.f32 %v7449_v13, %v7441_v28 }
 0xb02   : > { %v3551_v49 = vrot.slane %v3550_v62, 4 }
 0xb03   : > { %v3490_v56 = vpop.f32.mrf.mxu3 }
 0xb04   : > { %v3491_v14 = vadd.f32 %v7417_v23, %v3490_v56  ;;  %v3552_v22 = vadd.f32 %v3551_v49, %v3550_v62 }
 0xb06   : > { %v7453_v48 = vmax.f32 %v3491_v14, 0.0  ;;  %v3553_v49 = vrot.slane %v3552_v22, 2 }
 0xb08   : > { %v3554_v15 = vadd.f32 %v3553_v49, %v3552_v22 }
 0xb0b   : > { %v3493_v24 = vpop.f32.mrf.mxu3 }
 0xb0c   : > { %v3494_v45 = vadd.f32 %v7417_v23, %v3493_v24  ;;  %v3544_v24 = vrot.slane %v3543_v1, 4 }
 0xb0e   : > { %v7444_v40 = vmax.f32 %v3494_v45, 0.0  ;;  %v3545_v45 = vadd.f32 %v3544_v24, %v3543_v1 }
 0xb10   : > { %v3557_v33 = vadd.f32 %v7444_v40, %v7453_v48  ;;  %v3621_v2 = vmax.f32 %v7453_v48, %v7444_v40 }
 0xb12   : > { %v3558_v7 = vrot.slane %v3557_v33, 4  ;;  %v3622_v54 = vrot.slane %v3621_v2, 4 }
 0xb13   : > { %v3496_v18 = vpop.f32.mrf.mxu3 }
 0xb14   : > { %v3497_v51 = vadd.f32 %v7417_v23, %v3496_v18 }
 0xb16   : > { %v7459_v17 = vmax.f32 %v3497_v51, 0.0 }
 0xb1b   : > { %v3499_v61 = vpop.f32.mrf.mxu3 }
 0xb1c   : > { %v3500_v60 = vadd.f32 %v7417_v23, %v3499_v61 }
 0xb1e   : > { %v7451_v47 = vmax.f32 %v3500_v60, 0.0 }
 0xb20   : > { %v3564_v18 = vadd.f32 %v7451_v47, %v7459_v17 }
 0xb22   : > { %v3565_v60 = vrot.slane %v3564_v18, 4 }
 0xb23   : > { %v3502_v53 = vpop.f32.mrf.mxu3 }
 0xb24   : > { %v3503_v35 = vadd.f32 %v7417_v23, %v3502_v53  ;;  %v3539_v53 = vrot.slane %v3538_v57, 2 }
 0xb26   : > { %v7463_v63 = vmax.f32 %v3503_v35, 0.0  ;;  %v3628_v35 = vmax.f32 %v7459_v17, %v7451_v47 }
 0xb28   : > { %v3629_v37 = vrot.slane %v3628_v35, 4 }
 0xb2a   : > { %v3630_v6 = vmax.f32 %v3628_v35, %v3629_v37 }
 0xb2b   : > { %v3505_v55 = vpop.f32.mrf.mxu3 }
 0xb2c   : > { %v3506_v16 = vadd.f32 %v7417_v23, %v3505_v55  ;;  %v3607_v55 = vmax.f32 %v7439_v3, %v7433_v12  ;;  %v3631_v37 = vrot.slane %v3630_v6, 2 }
 0xb2e   : > { %v7455_v27 = vmax.f32 %v3506_v16, 0.0  ;;  %v3608_v51 = vrot.slane %v3607_v55, 4 }
 0xb30   : > { %v3571_v38 = vadd.f32 %v7455_v27, %v7463_v63  ;;  %v3635_v1 = vmax.f32 %v7463_v63, %v7455_v27  ;;  %v3609_v62 = vmax.f32 %v3607_v55, %v3608_v51 }
 0xb32   : > { %v3572_v14 = vrot.slane %v3571_v38, 4  ;;  %v3610_v44 = vrot.slane %v3609_v62, 2 }
 0xb33   : > { %v3508_v10 = vpop.f32.mrf.mxu3 }
 0xb34   : > { %v3509_v56 = vadd.f32 %v7417_v23, %v3508_v10  ;;  %v3540_v10 = vadd.f32 %v3539_v53, %v3538_v57  ;;  %v3615_v57 = vrot.slane %v3614_v36, 4  ;;  %v3566_v53 = vadd.f32 %v3565_v60, %v3564_v18 }
 0xb35   : > { %v3573_v29 = vadd.f32 %v3572_v14, %v3571_v38  ;;  %v3623_v18 = vmax.f32 %v3621_v2, %v3622_v54  ;;  %v3555_v2 = vrot.slane %v3554_v15, 1 }
 0xb36   : > { %v7473_v32 = vmax.f32 %v3509_v56, 0.0  ;;  %v3604_v56 = vmax.f32 %v3602_v50, %v3603_v58  ;;  %v3541_v34 = vrot.slane %v3540_v10, 1  ;;  %v3636_v58 = vrot.slane %v3635_v1, 4 }
 0xb37   : > { %v3616_v26 = vmax.f32 %v3614_v36, %v3615_v57  ;;  %v3567_v43 = vrot.slane %v3566_v53, 2  ;;  %v3574_v60 = vrot.slane %v3573_v29, 2 }
 0xb38   : > { %v3605_v50 = vrot.slane %v3604_v56, 1  ;;  %v3542_v21 = vadd.f32 %v3541_v34, %v3540_v10  ;;  %v3637_v55 = vmax.f32 %v3635_v1, %v3636_v58  ;;  %v3611_v10 = vmax.f32 %v3609_v62, %v3610_v44 }
 0xb39   : > { %v3617_v51 = vrot.slane %v3616_v26, 2  ;;  %v3575_v34 = vadd.f32 %v3574_v60, %v3573_v29 }
 0xb3a   : > { %v3606_v39 = vmax.f32 %v3604_v56, %v3605_v50  ;;  %v3592_v36 = vmul.f32 %v3542_v21, %v5584_v42  ;;  %v3638_v56 = vrot.slane %v3637_v55, 2 }
 0xb3b   : > { %v3511_v61 = vpop.f32.mrf.mxu3  ;;  %v3576_v21 = vrot.slane %v3575_v34, 1 }
 0xb3c   : > { %v3512_v30 = vadd.f32 %v7417_v23, %v3511_v61  ;;  %v3559_v61 = vadd.f32 %v3558_v7, %v3557_v33  ;;  %v3639_v49 = vmax.f32 %v3637_v55, %v3638_v56 }
 0xb3e   : > { %v7475_v31 = vmax.f32 %v3512_v30, 0.0  ;;  %v3546_v30 = vrot.slane %v3545_v45, 2  ;;  %v3560_v33 = vrot.slane %v3559_v61, 2 }
 0xb40   : > { %v3578_v16 = vadd.f32 %v7475_v31, %v7473_v32  ;;  %v3642_v4 = vmax.f32 %v7473_v32, %v7475_v31  ;;  %v3547_v7 = vadd.f32 %v3546_v30, %v3545_v45  ;;  %v3561_v38 = vadd.f32 %v3560_v33, %v3559_v61 }
 0xb41   : > { %v3624_v30 = vrot.slane %v3623_v18, 2 }
 0xb42   : > { %v3579_v24 = vrot.slane %v3578_v16, 4  ;;  %v3643_v5 = vrot.slane %v3642_v4, 4  ;;  %v3562_v35 = vrot.slane %v3561_v38, 1 }
 0xb43   : > { %v3514_v25 = vpop.f32.mrf.mxu3  ;;  %v3625_v57 = vmax.f32 %v3623_v18, %v3624_v30 }
 0xb44   : > { %v3580_v9 = vadd.f32 %v3579_v24, %v3578_v16  ;;  %v3515_v14 = vadd.f32 %v7417_v23, %v3514_v25  ;;  %v3548_v16 = vrot.slane %v3547_v7, 1  ;;  %v3568_v24 = vadd.f32 %v3567_v43, %v3566_v53 }
 0xb45   : > { %v3644_v11 = vmax.f32 %v3642_v4, %v3643_v5  ;;  %v3618_v43 = vmax.f32 %v3616_v26, %v3617_v51  ;;  %v3563_v62 = vadd.f32 %v3562_v35, %v3561_v38  ;;  %v3626_v60 = vrot.slane %v3625_v57, 1 }
 0xb46   : > { %v3581_v8 = vrot.slane %v3580_v9, 2  ;;  %v7492_v61 = vmax.f32 %v3515_v14, 0.0  ;;  %v3549_v1 = vadd.f32 %v3548_v16, %v3547_v7  ;;  %v3569_v4 = vrot.slane %v3568_v24, 1 }
 0xb47   : > { %v3645_v5 = vrot.slane %v3644_v11, 2  ;;  %v3619_v58 = vrot.slane %v3618_v43, 1  ;;  %v3577_v14 = vadd.f32 %v3576_v21, %v3575_v34  ;;  %v3640_v38 = vrot.slane %v3639_v49, 1 }
 0xb48   : > { %v3582_v22 = vadd.f32 %v3581_v8, %v3580_v9  ;;  %v3556_v8 = vadd.f32 %v3555_v2, %v3554_v15  ;;  %v3632_v9 = vmax.f32 %v3630_v6, %v3631_v37  ;;  %v3593_v26 = vmul.f32 %v3549_v1, %v5584_v42 }
 0xb49   : > { %v3570_v7 = vadd.f32 %v3569_v4, %v3568_v24  ;;  %v3646_v18 = vmax.f32 %v3644_v11, %v3645_v5  ;;  %v3595_v6 = vmul.f32 %v3563_v62, %v5584_v42  ;;  %v3620_v35 = vmax.f32 %v3618_v43, %v3619_v58 }
 0xb4a   : > { %v3583_v53 = vrot.slane %v3582_v22, 1  ;;  %v3594_v30 = vmul.f32 %v3556_v8, %v5584_v42  ;;  %v3627_v11 = vmax.f32 %v3625_v57, %v3626_v60  ;;  %v3597_v34 = vmul.f32 %v3577_v14, %v5584_v42 }
 0xb4b   : > { %v3517_v45 = vpop.f32.mrf.mxu3  ;;  %v3596_v56 = vmul.f32 %v3570_v7, %v5584_v42  ;;  %v3647_v24 = vrot.slane %v3646_v18, 1 }
 0xb4c   : > { %v3518_v54 = vadd.f32 %v7417_v23, %v3517_v45  ;;  %v3612_v23 = vrot.slane %v3611_v10, 1  ;;  %v3584_v15 = vadd.f32 %v3583_v53, %v3582_v22  ;;  %v3658_v5 = vadd.f32 %v3620_v35, %v3594_v30 }
 0xb4d   : > { %v3648_v62 = vmax.f32 %v3646_v18, %v3647_v24 }
 0xb4e   : > { %v7494_v25 = vmax.f32 %v3518_v54, 0.0  ;;  %v3613_v45 = vmax.f32 %v3611_v10, %v3612_v23  ;;  %v3633_v54 = vrot.slane %v3632_v9, 1  ;;  %v3656_v10 = vadd.f32 %v3606_v39, %v3592_v36 }
 0xb4f   : > { %v3598_v22 = vmul.f32 %v3584_v15, %v5584_v42 }
 0xb50   : > { %v3585_v29 = vadd.f32 %v7494_v25, %v7492_v61  ;;  %v3649_v44 = vmax.f32 %v7492_v61, %v7494_v25  ;;  %v3657_v37 = vadd.f32 %v3613_v45, %v3593_v26  ;;  %v3634_v21 = vmax.f32 %v3632_v9, %v3633_v54  ;;  %v5054_v54 = vld [vmem:[%s8070_s15] ss:$0 sm:$0xff] }
 0xb51   : > { %v3662_v57 = vadd.f32 %v3648_v62, %v3598_v22 }
 0xb52   : > { %v3586_v50 = vrot.slane %v3585_v29, 4  ;;  %v3650_v33 = vrot.slane %v3649_v44, 4  ;;  %v3660_v53 = vadd.f32 %v3634_v21, %v3596_v56 }
 0xb54   : > { %v3587_v16 = vadd.f32 %v3586_v50, %v3585_v29  ;;  %v3651_v51 = vmax.f32 %v3649_v44, %v3650_v33  ;;  %v3659_v29 = vadd.f32 %v3627_v11, %v3595_v6  ;;  %v3641_v44 = vmax.f32 %v3639_v49, %v3640_v38 }
 0xb55   : > { %v3672_v33 = vsel %vm1200_vm4, %v3657_v37, %v3656_v10 }
 0xb56   : > { %v3588_v55 = vrot.slane %v3587_v16, 2  ;;  %v3652_v2 = vrot.slane %v3651_v51, 2  ;;  %v3661_v43 = vadd.f32 %v3641_v44, %v3597_v34  ;;  %v3673_v26 = vsel %vm1202_vm5, %v3658_v5, %v3672_v33 }
 0xb57   : > { %v3674_v36 = vsel %vm1204_vm6, %v3659_v29, %v3673_v26 }
 0xb58   : > { %v3589_v1 = vadd.f32 %v3588_v55, %v3587_v16  ;;  %v3653_v4 = vmax.f32 %v3651_v51, %v3652_v2  ;;  %v3675_v9 = vsel %vm1206_vm7, %v3660_v53, %v3674_v36  ;;  %v5053_v16 = vld [vmem:[%s8068_s13] ss:$0 sm:$0xff] }
 0xb59   : > { %v3676_v49 = vsel %vm1208_vm8, %v3661_v43, %v3675_v9 }
 0xb5a   : > { %v3590_v23 = vrot.slane %v3589_v1, 1  ;;  %v3654_v8 = vrot.slane %v3653_v4, 1  ;;  %v3677_v60 = vsel %vm1210_vm9, %v3662_v57, %v3676_v49 }
 0xb5c   : > { %v3591_v50 = vadd.f32 %v3590_v23, %v3589_v1  ;;  %v3655_v58 = vmax.f32 %v3653_v4, %v3654_v8 }
 0xb5e   : > { %v3599_v39 = vmul.f32 %v3591_v50, %v5584_v42 }
 0xb60   : > { %v3663_v7 = vadd.f32 %v3655_v58, %v3599_v39 }
 0xb62   : > { %v3678_v18 = vsel %vm1212_vm10, %v3663_v7, %v3677_v60 }
 0xb63   : > { %3696 = vmatmul.f32.vlgmr.msrb.gmra.mxu0 %v3678_v18 }
 0xbe0   : > { %v3697_v14 = vpop.f32.mrf.mxu0 }
 0xbe1   : > { %v3698_v51 = vadd.f32 %v5053_v16, %v3697_v14 }
 0xbe3   : > { %v3700_v45 = vmax.f32 %v3698_v51, 0.0 }
 0xbe5   : > { %4838 = vmatmul.msk.f32.vlgmr.msra.gmra.mxu2 %vm1738_vm3, %v3700_v45 }
 0xc68   : > { %v3721_v30 = vpop.f32.mrf.mxu2 }
 0xc69   : > { %v3722_v15 = vadd.f32 %v5054_v54, %v3721_v30 }
 0xc6b   : > { %v4839_v6 = vmul.f32 -1.442695, %v3722_v15 }
 0xc6d   : > { %4953 = vpow2.f32 %v4839_v6 }
 0xc73   : > { %v4954_v38 = vpop.eup %4953 }
 0xc74   : > { %v3727_v55 = vadd.f32 1.0, %v4954_v38 }
 0xc76   : > { %4955 = vrcp.f32 %v3727_v55  ;;  %v3739_v56 = vand.u32 2147483648, %v3727_v55  ;;  %v3737_v11 = vand.u32 2147483647, %v3727_v55  ;;  %vm3733_vm3 = vweird.f32 %v3727_v55 }
 0xc78   : > { %v3740_v1 = vor.u32 1.1754944e-38, %v3739_v56  ;;  %vm3738_vm11 = vcmp.eq.f32.partialorder %v3737_v11, 8.507059e+37  ;;  %v8343_v56 = vld [vmem:[#allocation18_spill] sm:$0xff] }
 0xc7c   : > { %v4956_v2 = vpop.eup %4955 }
 0xc7d   : > { %v3729_v37 = vmul.f32 %v4956_v2, %v3727_v55  ;;  %vm3734_vm2 = vweird.f32 %v4956_v2 }
 0xc7e   : > { %vm3735_vm14 = vmor %vm3733_vm3, %vm3734_vm2 }
 0xc7f   : > { %v3730_v35 = vsub.f32 1.0, %v3729_v37 }
 0xc81   : > { %v3731_v24 = vmul.f32 %v4956_v2, %v3730_v35 }
 0xc83   : > { %v3732_v34 = vadd.f32 %v4956_v2, %v3731_v24  ;;  %v8344_v24 = vld [vmem:[#allocation28_spill] sm:$0xff] }
 0xc85   : > { %v3736_v4 = vsel %vm3735_vm14, %v4956_v2, %v3732_v34 }
 0xc86   : > { %v3741_v10 = vsel %vm3738_vm11, %v3740_v1, %v3736_v4 }
 0xc87   : > { %v3750_v5 = vrot.slane %v3741_v10, 7  ;;  %v3749_v21 = vrot.slane %v3741_v10, 6  ;;  %v3748_v44 = vrot.slane %v3741_v10, 5  ;;  %v3747_v50 = vrot.slane %v3741_v10, 4 }
 0xc88   : > { %v3746_v36 = vrot.slane %v3741_v10, 3  ;;  %v3745_v49 = vrot.slane %v3741_v10, 2  ;;  %v3744_v16 = vrot.slane %v3741_v10, 1 }
 0xc89   : > { %v3758_v22 = vperm.slane %v3750_v5, 0  ;;  %v3757_v29 = vperm.slane %v3749_v21, 0  ;;  %v3756_v43 = vperm.slane %v3748_v44, 0  ;;  %v3755_v39 = vperm.slane %v3747_v50, 0 }
 0xc8a   : > { %v3754_v7 = vperm.slane %v3746_v36, 0  ;;  %v3753_v14 = vperm.slane %v3745_v49, 0  ;;  %v3752_v30 = vperm.slane %v3744_v16, 0  ;;  %v8350_v49 = vld [vmem:[#allocation14_spill] sm:$0xff] }
 0xc8b   : > { %v3782_v23 = vmul.f32 %v3758_v22, %v7494_v25  ;;  %v3781_v8 = vmul.f32 %v3758_v22, %v7492_v61  ;;  %v3780_v62 = vmul.f32 %v3757_v29, %v7475_v31  ;;  %v3779_v57 = vmul.f32 %v3757_v29, %v7473_v32 }
 0xc8c   : > { %v3778_v58 = vmul.f32 %v3756_v43, %v7455_v27  ;;  %v3777_v25 = vmul.f32 %v3756_v43, %v7463_v63  ;;  %v3776_v31 = vmul.f32 %v3755_v39, %v7451_v47  ;;  %v3775_v32 = vmul.f32 %v3755_v39, %v7459_v17 }
 0xc8d   : > { %v3798_v53 = vmax.f32 %v3782_v23, 0.0  ;;  %v3797_v33 = vmax.f32 %v3781_v8, 0.0  ;;  %v3796_v26 = vmax.f32 %v3780_v62, 0.0  ;;  %v3795_v9 = vmax.f32 %v3779_v57, 0.0 }
 0xc8e   : > { %v3794_v61 = vmax.f32 %v3778_v58, 0.0  ;;  %v3793_v60 = vmax.f32 %v3777_v25, 0.0  ;;  %v3792_v18 = vmax.f32 %v3776_v31, 0.0  ;;  %v3774_v27 = vmul.f32 %v3754_v7, %v7444_v40 }
 0xc8f   : > { %3799 = vmatpush.msrb.mxu3 %v3798_v53  ;;  %v3791_v51 = vmax.f32 %v3775_v32, 0.0  ;;  %v3773_v63 = vmul.f32 %v3754_v7, %v7453_v48  ;;  %v3772_v47 = vmul.f32 %v3753_v14, %v7441_v28  ;;  %v3771_v15 = vmul.f32 %v3753_v14, %v7449_v13 }
 0xc90   : > { %v3790_v45 = vmax.f32 %v3774_v27, 0.0  ;;  %v3770_v6 = vmul.f32 %v3752_v30, %v7433_v12  ;;  %v3751_v40 = vperm.slane %v3741_v10, 0  ;;  %v3769_v55 = vmul.f32 %v3752_v30, %v7439_v3  ;;  %v8340_v12 = vld [vmem:[#allocation25_spill] sm:$0xff]  ;;  %v8342_v3 = vld [vmem:[#allocation27_spill] sm:$0xff] }
 0xc91   : > { %3800 = vmatpush.msrb.mxu3 %v3797_v33  ;;  %v3789_v54 = vmax.f32 %v3773_v63, 0.0  ;;  %v3788_v17 = vmax.f32 %v3772_v47, 0.0  ;;  %v3787_v38 = vmax.f32 %v3771_v15, 0.0 }
 0xc92   : > { %v3786_v48 = vmax.f32 %v3770_v6, 0.0  ;;  %v3768_v2 = vmul.f32 %v3751_v40, %v7421_v52  ;;  %v3785_v28 = vmax.f32 %v3769_v55, 0.0  ;;  %v3767_v37 = vmul.f32 %v3751_v40, %v7423_v59  ;;  %v8339_v52 = vld [vmem:[#allocation16_spill] sm:$0xff]  ;;  %v8341_v59 = vld [vmem:[#allocation19_spill] sm:$0xff] }
 0xc93   : > { %3801 = vmatpush.msrb.mxu3 %v3796_v26 }
 0xc94   : > { %v3784_v35 = vmax.f32 %v3768_v2, 0.0  ;;  %v3783_v13 = vmax.f32 %v3767_v37, 0.0 }
 0xc95   : > { %3802 = vmatpush.msrb.mxu3 %v3795_v9 }
 0xc97   : > { %3803 = vmatpush.msrb.mxu3 %v3794_v61 }
 0xc99   : > { %3804 = vmatpush.msrb.mxu3 %v3793_v60 }
 0xc9b   : > { %3805 = vmatpush.msrb.mxu3 %v3792_v18 }
 0xc9d   : > { %3806 = vmatpush.msrb.mxu3 %v3791_v51 }
 0xc9f   : > { %3807 = vmatpush.msrb.mxu3 %v3790_v45 }
 0xca1   : > { %3808 = vmatpush.msrb.mxu3 %v3789_v54  ;;  %v8351_v54 = vld [vmem:[#allocation15_spill] sm:$0xff] }
 0xca3   : > { %3809 = vmatpush.msrb.mxu3 %v3788_v17 }
 0xca5   : > { %3810 = vmatpush.msrb.mxu3 %v3787_v38 }
 0xca7   : > { %3811 = vmatpush.msrb.mxu3 %v3786_v48 }
 0xca9   : > { %3812 = vmatpush.msrb.mxu3 %v3785_v28 }
 0xcab   : > { %3813 = vmatpush.msrb.mxu3 %v3784_v35 }
 0xcad   : > { %3814 = vmatpush.msrb.mxu3 %v3783_v13 }
 0xcae   : > { %3815 = vmatmul.f32.vlgmr.msrb.gmra.mxu3 %v7209_v19  ;;  %v8345_v19 = vld [vmem:[#allocation21_spill] sm:$0xff] }
 0xcb6   : > { %3818 = vmatmul.f32.gmra.mxu3 %v7227_v46  ;;  %v8346_v46 = vld [vmem:[#allocation33_spill] sm:$0xff] }
 0xcbe   : > { %3821 = vmatmul.f32.gmra.mxu3 %v7245_v41  ;;  %v8347_v41 = vld [vmem:[#allocation20_spill] sm:$0xff] }
 0xcc6   : > { %3824 = vmatmul.f32.gmra.mxu3 %v7263_v20  ;;  %v8348_v20 = vld [vmem:[#allocation35_spill] sm:$0xff] }
 0xcce   : > { %3827 = vmatmul.f32.gmra.mxu3 %v7281_v0  ;;  %v8349_v0 = vld [vmem:[#allocation24_spill] sm:$0xff] }
 0xcd6   : > { %3830 = vmatmul.f32.gmra.mxu3 %v8339_v52 }
 0xcde   : > { %3833 = vmatmul.f32.gmra.mxu3 %v8340_v12 }
 0xce6   : > { %3836 = vmatmul.f32.gmra.mxu3 %v8341_v59 }
 0xcee   : > { %3839 = vmatmul.f32.gmra.mxu3 %v8342_v3 }
 0xcf6   : > { %3842 = vmatmul.f32.gmra.mxu3 %v8343_v56 }
 0xcfe   : > { %3845 = vmatmul.f32.gmra.mxu3 %v8344_v24 }
 0xd06   : > { %3848 = vmatmul.f32.gmra.mxu3 %v8345_v19 }
 0xd0e   : > { %3851 = vmatmul.f32.gmra.mxu3 %v8346_v46 }
 0xd16   : > { %3854 = vmatmul.f32.gmra.mxu3 %v8347_v41 }
 0xd1e   : > { %3857 = vmatmul.f32.gmra.mxu3 %v8348_v20 }
 0xd26   : > { %3860 = vmatmul.f32.gmra.mxu3 %v8349_v0 }
 0xd31   : > { %v3816_v11 = vpop.f32.mrf.mxu3 }
 0xd32   : > { %3880 = vmatmul.f32.vlgmr.msra.gmra.mxu0 %v3816_v11  ;;  %3945 = vmatmul.f32.vlgmr.msrb.gmra.mxu2 %v3816_v11 }
 0xd39   : > { %v3819_v34 = vpop.f32.mrf.mxu3 }
 0xd3a   : > { %3883 = vmatmul.f32.gmra.mxu0 %v3819_v34  ;;  %3948 = vmatmul.f32.gmra.mxu2 %v3819_v34 }
 0xd41   : > { %v3822_v1 = vpop.f32.mrf.mxu3 }
 0xd42   : > { %3886 = vmatmul.f32.gmra.mxu0 %v3822_v1  ;;  %3951 = vmatmul.f32.gmra.mxu2 %v3822_v1 }
 0xd49   : > { %v3825_v4 = vpop.f32.mrf.mxu3 }
 0xd4a   : > { %3889 = vmatmul.f32.gmra.mxu0 %v3825_v4  ;;  %3954 = vmatmul.f32.gmra.mxu2 %v3825_v4 }
 0xd51   : > { %v3828_v10 = vpop.f32.mrf.mxu3 }
 0xd52   : > { %3892 = vmatmul.f32.gmra.mxu0 %v3828_v10  ;;  %3957 = vmatmul.f32.gmra.mxu2 %v3828_v10 }
 0xd59   : > { %v3831_v5 = vpop.f32.mrf.mxu3 }
 0xd5a   : > { %3895 = vmatmul.f32.gmra.mxu0 %v3831_v5  ;;  %3960 = vmatmul.f32.gmra.mxu2 %v3831_v5 }
 0xd61   : > { %v3834_v21 = vpop.f32.mrf.mxu3 }
 0xd62   : > { %3898 = vmatmul.f32.gmra.mxu0 %v3834_v21  ;;  %3963 = vmatmul.f32.gmra.mxu2 %v3834_v21 }
 0xd69   : > { %v3837_v22 = vpop.f32.mrf.mxu3 }
 0xd6a   : > { %3901 = vmatmul.f32.gmra.mxu0 %v3837_v22  ;;  %3966 = vmatmul.f32.gmra.mxu2 %v3837_v22 }
 0xd71   : > { %v3840_v29 = vpop.f32.mrf.mxu3 }
 0xd72   : > { %3904 = vmatmul.f32.gmra.mxu0 %v3840_v29  ;;  %3969 = vmatmul.f32.gmra.mxu2 %v3840_v29 }
 0xd79   : > { %v3843_v44 = vpop.f32.mrf.mxu3 }
 0xd7a   : > { %3907 = vmatmul.f32.gmra.mxu0 %v3843_v44  ;;  %3972 = vmatmul.f32.gmra.mxu2 %v3843_v44 }
 0xd81   : > { %v3846_v23 = vpop.f32.mrf.mxu3 }
 0xd82   : > { %3910 = vmatmul.f32.gmra.mxu0 %v3846_v23  ;;  %3975 = vmatmul.f32.gmra.mxu2 %v3846_v23 }
 0xd89   : > { %v3849_v8 = vpop.f32.mrf.mxu3 }
 0xd8a   : > { %3913 = vmatmul.f32.gmra.mxu0 %v3849_v8  ;;  %3978 = vmatmul.f32.gmra.mxu2 %v3849_v8 }
 0xd91   : > { %v3852_v53 = vpop.f32.mrf.mxu3 }
 0xd92   : > { %3916 = vmatmul.f32.gmra.mxu0 %v3852_v53  ;;  %3981 = vmatmul.f32.gmra.mxu2 %v3852_v53 }
 0xd99   : > { %v3855_v62 = vpop.f32.mrf.mxu3 }
 0xd9a   : > { %3919 = vmatmul.f32.gmra.mxu0 %v3855_v62  ;;  %3984 = vmatmul.f32.gmra.mxu2 %v3855_v62 }
 0xda1   : > { %v3858_v43 = vpop.f32.mrf.mxu3 }
 0xda2   : > { %3922 = vmatmul.f32.gmra.mxu0 %v3858_v43  ;;  %3987 = vmatmul.f32.gmra.mxu2 %v3858_v43 }
 0xda9   : > { %v3861_v50 = vpop.f32.mrf.mxu3 }
 0xdaa   : > { %3925 = vmatmul.f32.gmra.mxu0 %v3861_v50  ;;  %3990 = vmatmul.f32.gmra.mxu2 %v3861_v50 }
 0xdaf   : > { %v3881_v33 = vpop.f32.mrf.mxu0 }
 0xdb0   : > { %v3882_v18 = vadd.f32 %v3881_v33, %v8350_v49 }
 0xdb2   : > { %v7557_v16 = vmax.f32 %v3882_v18, 0.0 }
 0xdb5   : > { %v3946_v57 = vpop.f32.mrf.mxu2 }
 0xdb6   : > { %v3947_v6 = vadd.f32 %v3946_v57, %v8351_v54 }
 0xdb7   : > { %v3884_v26 = vpop.f32.mrf.mxu0 }
 0xdb8   : > { %v3885_v60 = vadd.f32 %v3884_v26, %v8350_v49  ;;  %v7577_v37 = vmax.f32 %v3947_v6, 0.0 }
 0xdba   : > { %v7555_v14 = vmax.f32 %v3885_v60, 0.0 }
 0xdbc   : > { %v4026_v51 = vadd.f32 %v7555_v14, %v7557_v16  ;;  %v4154_v40 = vmax.f32 %v7557_v16, %v7555_v14 }
 0xdbd   : > { %v3949_v58 = vpop.f32.mrf.mxu2 }
 0xdbe   : > { %v4027_v30 = vrot.slane %v4026_v51, 4  ;;  %v3950_v15 = vadd.f32 %v3949_v58, %v8351_v54  ;;  %v4155_v35 = vrot.slane %v4154_v40, 4 }
 0xdbf   : > { %v3887_v39 = vpop.f32.mrf.mxu0 }
 0xdc0   : > { %v3888_v17 = vadd.f32 %v3887_v39, %v8350_v49  ;;  %v4028_v55 = vadd.f32 %v4027_v30, %v4026_v51  ;;  %v7571_v48 = vmax.f32 %v3950_v15, 0.0  ;;  %v4156_v19 = vmax.f32 %v4154_v40, %v4155_v35 }
 0xdc2   : > { %v7573_v2 = vmax.f32 %v3888_v17, 0.0  ;;  %v4029_v59 = vrot.slane %v4028_v55, 2  ;;  %v4033_v3 = vadd.f32 %v7571_v48, %v7577_v37  ;;  %v4161_v41 = vmax.f32 %v7577_v37, %v7571_v48 }
 0xdc3   : > { %v4157_v21 = vrot.slane %v4156_v19, 2 }
 0xdc4   : > { %v4030_v11 = vadd.f32 %v4029_v59, %v4028_v55  ;;  %v4034_v34 = vrot.slane %v4033_v3, 4  ;;  %v4162_v29 = vrot.slane %v4161_v41, 4 }
 0xdc5   : > { %v3952_v36 = vpop.f32.mrf.mxu2  ;;  %v4158_v26 = vmax.f32 %v4156_v19, %v4157_v21 }
 0xdc6   : > { %v3953_v20 = vadd.f32 %v3952_v36, %v8351_v54  ;;  %v4031_v62 = vrot.slane %v4030_v11, 1  ;;  %v4035_v43 = vadd.f32 %v4034_v34, %v4033_v3 }
 0xdc7   : > { %v3890_v9 = vpop.f32.mrf.mxu0  ;;  %v4159_v15 = vrot.slane %v4158_v26, 1 }
 0xdc8   : > { %v3891_v45 = vadd.f32 %v3890_v9, %v8350_v49  ;;  %v7603_v44 = vmax.f32 %v3953_v20, 0.0  ;;  %v4163_v9 = vmax.f32 %v4161_v41, %v4162_v29  ;;  %v4032_v60 = vadd.f32 %v4031_v62, %v4030_v11 }
 0xdc9   : > { %v4160_v41 = vmax.f32 %v4158_v26, %v4159_v15 }
 0xdca   : > { %v7569_v38 = vmax.f32 %v3891_v45, 0.0  ;;  %v4164_v55 = vrot.slane %v4163_v9, 2  ;;  %v4138_v59 = vmul.f32 %v4032_v60, %v5584_v42 }
 0xdcc   : > { %v4040_v52 = vadd.f32 %v7569_v38, %v7573_v2  ;;  %v4168_v4 = vmax.f32 %v7573_v2, %v7569_v38  ;;  %v4165_v34 = vmax.f32 %v4163_v9, %v4164_v55  ;;  %v7634_v29 = vadd.f32 %v4160_v41, %v4138_v59 }
 0xdcd   : > { %v3955_v25 = vpop.f32.mrf.mxu2 }
 0xdce   : > { %v3956_v24 = vadd.f32 %v3955_v25, %v8351_v54  ;;  %v4041_v0 = vrot.slane %v4040_v52, 4  ;;  %v4169_v50 = vrot.slane %v4168_v4, 4 }
 0xdcf   : > { %v3893_v61 = vpop.f32.mrf.mxu0 }
 0xdd0   : > { %v3894_v56 = vadd.f32 %v3893_v61, %v8350_v49  ;;  %v7597_v10 = vmax.f32 %v3956_v24, 0.0  ;;  %v4042_v23 = vadd.f32 %v4041_v0, %v4040_v52  ;;  %v4170_v18 = vmax.f32 %v4168_v4, %v4169_v50 }
 0xdd2   : > { %v7593_v1 = vmax.f32 %v3894_v56, 0.0  ;;  %v4047_v33 = vadd.f32 %v7597_v10, %v7603_v44  ;;  %v4175_v58 = vmax.f32 %v7603_v44, %v7597_v10  ;;  %v4043_v25 = vrot.slane %v4042_v23, 2 }
 0xdd3   : > { %v4171_v56 = vrot.slane %v4170_v18, 2 }
 0xdd4   : > { %v4048_v51 = vrot.slane %v4047_v33, 4  ;;  %v4176_v17 = vrot.slane %v4175_v58, 4  ;;  %v4044_v35 = vadd.f32 %v4043_v25, %v4042_v23 }
 0xdd5   : > { %v3958_v31 = vpop.f32.mrf.mxu2  ;;  %v4172_v50 = vmax.f32 %v4170_v18, %v4171_v56  ;;  %v4166_v18 = vrot.slane %v4165_v34, 1 }
 0xdd6   : > { %v3959_v57 = vadd.f32 %v3958_v31, %v8351_v54  ;;  %v4049_v24 = vadd.f32 %v4048_v51, %v4047_v33  ;;  %v4177_v20 = vmax.f32 %v4175_v58, %v4176_v17  ;;  %v4045_v4 = vrot.slane %v4044_v35, 1 }
 0xdd7   : > { %v3896_v7 = vpop.f32.mrf.mxu0  ;;  %v4173_v17 = vrot.slane %v4172_v50, 1 }
 0xdd8   : > { %v3897_v13 = vadd.f32 %v3896_v7, %v8350_v49  ;;  %v7616_v45 = vmax.f32 %v3959_v57, 0.0  ;;  %v4050_v33 = vrot.slane %v4049_v24, 2  ;;  %v4178_v58 = vrot.slane %v4177_v20, 2 }
 0xdd9   : > { %v4046_v25 = vadd.f32 %v4045_v4, %v4044_v35 }
 0xdda   : > { %v7588_v46 = vmax.f32 %v3897_v13, 0.0  ;;  %8353 = vst [vmem:[#allocation30_spill] sm:$0xff] %v7616_v45  ;;  %v4179_v55 = vmax.f32 %v4177_v20, %v4178_v58  ;;  %v4174_v20 = vmax.f32 %v4172_v50, %v4173_v17 }
 0xddc   : > { %v4054_v22 = vadd.f32 %v7588_v46, %v7593_v1  ;;  %v4182_v36 = vmax.f32 %v7593_v1, %v7588_v46 }
 0xddd   : > { %v3961_v32 = vpop.f32.mrf.mxu2 }
 0xdde   : > { %v3962_v8 = vadd.f32 %v3961_v32, %v8351_v54  ;;  %v4055_v39 = vrot.slane %v4054_v22, 4  ;;  %v4036_v32 = vrot.slane %v4035_v43, 2  ;;  %v4183_v40 = vrot.slane %v4182_v36, 4 }
 0xddf   : > { %v3899_v27 = vpop.f32.mrf.mxu0 }
 0xde0   : > { %v7613_v61 = vmax.f32 %v3962_v8, 0.0  ;;  %v3900_v31 = vadd.f32 %v3899_v27, %v8350_v49  ;;  %v4056_v6 = vadd.f32 %v4055_v39, %v4054_v22  ;;  %v4037_v3 = vadd.f32 %v4036_v32, %v4035_v43 }
 0xde1   : > { %v4184_v11 = vmax.f32 %v4182_v36, %v4183_v40  ;;  %v4051_v40 = vadd.f32 %v4050_v33, %v4049_v24 }
 0xde2   : > { %8352 = vst [vmem:[#allocation23_spill] sm:$0xff] %v7613_v61  ;;  %v4061_v13 = vadd.f32 %v7613_v61, %v7616_v45  ;;  %v4189_v27 = vmax.f32 %v7616_v45, %v7613_v61  ;;  %v7630_v19 = vmax.f32 %v3900_v31, 0.0  ;;  %v4057_v0 = vrot.slane %v4056_v6, 2 }
 0xde3   : > { %v4038_v43 = vrot.slane %v4037_v3, 1  ;;  %v4185_v36 = vrot.slane %v4184_v11, 2 }
 0xde4   : > { %v4062_v21 = vrot.slane %v4061_v13, 4  ;;  %v4190_v23 = vrot.slane %v4189_v27, 4  ;;  %v4058_v39 = vadd.f32 %v4057_v0, %v4056_v6 }
 0xde5   : > { %v7561_v63 = vpop.f32.mrf.mxu2 }
 0xde6   : > { %v3965_v60 = vadd.f32 %v7561_v63, %v8351_v54  ;;  %v4191_v51 = vmax.f32 %v4189_v27, %v4190_v23  ;;  %v4059_v59 = vrot.slane %v4058_v39, 1  ;;  %v7656_v27 = vmax.f32 %v4165_v34, %v4166_v18 }
 0xde7   : > { %v3902_v47 = vpop.f32.mrf.mxu0 }
 0xde8   : > { %v3903_v7 = vadd.f32 %v3902_v47, %v8350_v49  ;;  %v7654_v56 = vmax.f32 %v3965_v60, 0.0  ;;  %v4192_v0 = vrot.slane %v4191_v51, 2 }
 0xdea   : > { %v7623_v47 = vmax.f32 %v3903_v7, 0.0  ;;  %v4063_v7 = vadd.f32 %v4062_v21, %v4061_v13  ;;  %v4140_v13 = vmul.f32 %v4046_v25, %v5584_v42  ;;  %8355 = vst [vmem:[#allocation32_spill] sm:$0xff] %v7654_v56 }
 0xdec   : > { %v4068_v22 = vadd.f32 %v7623_v47, %v7630_v19  ;;  %v4196_v8 = vmax.f32 %v7630_v19, %v7623_v47  ;;  %v4064_v63 = vrot.slane %v4063_v7, 2 }
 0xded   : > { %v7575_v28 = vpop.f32.mrf.mxu2 }
 0xdee   : > { %v3968_v57 = vadd.f32 %v7575_v28, %v8351_v54  ;;  %v4197_v31 = vrot.slane %v4196_v8, 4  ;;  %v4039_v28 = vadd.f32 %v4038_v43, %v4037_v3  ;;  %v4060_v43 = vadd.f32 %v4059_v59, %v4058_v39 }
 0xdef   : > { %v7582_v12 = vpop.f32.mrf.mxu0 }
 0xdf0   : > { %v3906_v9 = vadd.f32 %v7582_v12, %v8350_v49  ;;  %v7649_v6 = vmax.f32 %v3968_v57, 0.0  ;;  %v4186_v12 = vmax.f32 %v4184_v11, %v4185_v36  ;;  %v4198_v4 = vmax.f32 %v4196_v8, %v4197_v31 }
 0xdf1   : > { %v7661_v24 = vmul.f32 %v4039_v28, %v5584_v42  ;;  %v4052_v11 = vrot.slane %v4051_v40, 1  ;;  %v4065_v8 = vadd.f32 %v4064_v63, %v4063_v7  ;;  %v4142_v7 = vmul.f32 %v4060_v43, %v5584_v42 }
 0xdf2   : > { %8354 = vst [vmem:[#allocation29_spill] sm:$0xff] %v7649_v6  ;;  %v7651_v35 = vmax.f32 %v3906_v9, 0.0  ;;  %v4075_v21 = vadd.f32 %v7649_v6, %v7654_v56  ;;  %v4187_v33 = vrot.slane %v4186_v12, 1  ;;  %v4203_v58 = vmax.f32 %v7654_v56, %v7649_v6 }
 0xdf3   : > { %v4193_v9 = vmax.f32 %v4191_v51, %v4192_v0  ;;  %v4199_v50 = vrot.slane %v4198_v4, 2  ;;  %v4066_v51 = vrot.slane %v4065_v8, 1 }
 0xdf4   : > { %v4076_v18 = vrot.slane %v4075_v21, 4  ;;  %v4188_v28 = vmax.f32 %v4186_v12, %v4187_v33 }
 0xdf5   : > { %v7599_v5 = vpop.f32.mrf.mxu2  ;;  %v4200_v63 = vmax.f32 %v4198_v4, %v4199_v50  ;;  %v4067_v33 = vadd.f32 %v4066_v51, %v4065_v8 }
 0xdf6   : > { %v3971_v25 = vadd.f32 %v7599_v5, %v8351_v54  ;;  %v4270_v43 = vadd.f32 %v4188_v28, %v4142_v7 }
 0xdf7   : > { %v3908_v53 = vpop.f32.mrf.mxu0 }
 0xdf8   : > { %v3909_v62 = vadd.f32 %v3908_v53, %v8350_v49  ;;  %v4069_v53 = vrot.slane %v4068_v22, 4  ;;  %v7681_v0 = vmax.f32 %v3971_v25, 0.0 }
 0xdfa   : > { %v7647_v15 = vmax.f32 %v3909_v62, 0.0  ;;  %v4070_v41 = vadd.f32 %v4069_v53, %v4068_v22  ;;  %v4180_v62 = vrot.slane %v4179_v55, 1  ;;  %v4268_v22 = vadd.f32 %v4174_v20, %v4140_v13  ;;  %8357 = vst [vmem:[#allocation34_spill] sm:$0xff] %v7681_v0 }
 0xdfb   : > { %v4053_v53 = vadd.f32 %v4052_v11, %v4051_v40  ;;  %v4204_v13 = vrot.slane %v4203_v58, 4  ;;  %v4194_v40 = vrot.slane %v4193_v9, 1 }
 0xdfc   : > { %v4082_v3 = vadd.f32 %v7647_v15, %v7651_v35  ;;  %v4071_v57 = vrot.slane %v4070_v41, 2  ;;  %v4210_v39 = vmax.f32 %v7651_v35, %v7647_v15  ;;  %v7674_v31 = vmax.f32 %v4179_v55, %v4180_v62 }
 0xdfd   : > { %v7619_v30 = vpop.f32.mrf.mxu2  ;;  %v4077_v55 = vadd.f32 %v4076_v18, %v4075_v21  ;;  %v4201_v21 = vrot.slane %v4200_v63, 1 }
 0xdfe   : > { %v3974_v34 = vadd.f32 %v7619_v30, %v8351_v54  ;;  %v4083_v60 = vrot.slane %v4082_v3, 4  ;;  %v4072_v59 = vadd.f32 %v4071_v57, %v4070_v41  ;;  %v4211_v11 = vrot.slane %v4210_v39, 4 }
 0xdff   : > { %v7625_v52 = vpop.f32.mrf.mxu0  ;;  %v4141_v41 = vmul.f32 %v4053_v53, %v5584_v42 }
 0xe00   : > { %v7677_v17 = vmax.f32 %v3974_v34, 0.0  ;;  %v3912_v5 = vadd.f32 %v7625_v52, %v8350_v49  ;;  %v4084_v20 = vadd.f32 %v4083_v60, %v4082_v3  ;;  %v4073_v34 = vrot.slane %v4072_v59, 1 }
 0xe01   : > { %v4205_v3 = vmax.f32 %v4203_v58, %v4204_v13  ;;  %v4078_v60 = vrot.slane %v4077_v55, 2  ;;  %v4212_v18 = vmax.f32 %v4210_v39, %v4211_v11  ;;  %v4202_v13 = vmax.f32 %v4200_v63, %v4201_v21 }
 0xe02   : > { %8356 = vst [vmem:[#allocation31_spill] sm:$0xff] %v7677_v17  ;;  %v4089_v52 = vadd.f32 %v7677_v17, %v7681_v0  ;;  %v7693_v57 = vmax.f32 %v3912_v5, 0.0  ;;  %v4085_v50 = vrot.slane %v4084_v20, 2  ;;  %v4217_v8 = vmax.f32 %v7681_v0, %v7677_v17 }
 0xe03   : > { %v4074_v28 = vadd.f32 %v4073_v34, %v4072_v59  ;;  %v4206_v51 = vrot.slane %v4205_v3, 2  ;;  %v4079_v11 = vadd.f32 %v4078_v60, %v4077_v55 }
 0xe04   : > { %8359 = vst [vmem:[#allocation39_spill] sm:$0xff] %v7693_v57  ;;  %v4090_v7 = vrot.slane %v4089_v52, 4  ;;  %v4086_v5 = vadd.f32 %v4085_v50, %v4084_v20 }
 0xe05   : > { %v7641_v26 = vpop.f32.mrf.mxu2  ;;  %v4207_v63 = vmax.f32 %v4205_v3, %v4206_v51 }
 0xe06   : > { %v3977_v39 = vadd.f32 %v7641_v26, %v8351_v54  ;;  %v4091_v0 = vadd.f32 %v4090_v7, %v4089_v52  ;;  %v4144_v26 = vmul.f32 %v4074_v28, %v5584_v42  ;;  %v4087_v55 = vrot.slane %v4086_v5, 1 }
 0xe07   : > { %v3914_v32 = vpop.f32.mrf.mxu0  ;;  %v4208_v56 = vrot.slane %v4207_v63, 1 }
 0xe08   : > { %v3915_v30 = vadd.f32 %v3914_v32, %v8350_v49  ;;  %v7685_v32 = vsel %vm1200_vm4, %v4268_v22, %v7634_v29  ;;  %v4195_v22 = vmax.f32 %v4193_v9, %v4194_v40  ;;  %v4143_v9 = vmul.f32 %v4067_v33, %v5584_v42 }
 0xe09   : > { %v4218_v33 = vrot.slane %v4217_v8, 4  ;;  %v7715_v20 = vmax.f32 %v3977_v39, 0.0  ;;  %v4092_v28 = vrot.slane %v4091_v0, 2 }
 0xe0a   : > { %v7687_v12 = vmax.f32 %v3915_v30, 0.0 }
 0xe0b   : > { %8363 = vst [vmem:[#allocation25_spill] sm:$0xff] %v7715_v20  ;;  %v4219_v51 = vmax.f32 %v4217_v8, %v4218_v33 }
 0xe0c   : > { %8358 = vst [vmem:[#allocation36_spill] sm:$0xff] %v7687_v12  ;;  %v4096_v53 = vadd.f32 %v7687_v12, %v7693_v57 }
 0xe0d   : > { %v3979_v23 = vpop.f32.mrf.mxu2  ;;  %v4220_v61 = vrot.slane %v4219_v51, 2 }
 0xe0e   : > { %v3980_v30 = vadd.f32 %v3979_v23, %v8351_v54 }
 0xe0f   : > { %v3917_v36 = vpop.f32.mrf.mxu0 }
 0xe10   : > { %v3918_v4 = vadd.f32 %v3917_v36, %v8350_v49  ;;  %v7711_v17 = vmax.f32 %v3980_v30, 0.0  ;;  %v4080_v30 = vrot.slane %v4079_v11, 1 }
 0xe12   : > { %v7701_v58 = vmax.f32 %v3918_v4, 0.0  ;;  %v4097_v4 = vrot.slane %v4096_v53, 4  ;;  %8362 = vst [vmem:[#allocation16_spill] sm:$0xff] %v7711_v17  ;;  %v4103_v3 = vadd.f32 %v7711_v17, %v7715_v20 }
 0xe14   : > { %8360 = vst [vmem:[#allocation38_spill] sm:$0xff] %v7701_v58  ;;  %v4104_v33 = vrot.slane %v4103_v3, 4 }
 0xe15   : > { %v3982_v62 = vpop.f32.mrf.mxu2 }
 0xe16   : > { %v3983_v40 = vadd.f32 %v3982_v62, %v8351_v54  ;;  %v4224_v62 = vmax.f32 %v7693_v57, %v7687_v12  ;;  %v7738_v57 = vmax.f32 %v4207_v63, %v4208_v56  ;;  %v4105_v56 = vadd.f32 %v4104_v33, %v4103_v3 }
 0xe17   : > { %v3920_v29 = vpop.f32.mrf.mxu0 }
 0xe18   : > { %v3921_v25 = vadd.f32 %v3920_v29, %v8350_v49  ;;  %v4213_v29 = vrot.slane %v4212_v18, 2  ;;  %v7719_v50 = vmax.f32 %v3983_v40, 0.0  ;;  %v7730_v40 = vadd.f32 %v7674_v31, %v4141_v41 }
 0xe19   : > { %v4225_v12 = vrot.slane %v4224_v62, 4  ;;  %v4106_v3 = vrot.slane %v4105_v56, 2 }
 0xe1a   : > { %v7703_v36 = vmax.f32 %v3921_v25, 0.0  ;;  %8364 = vst [vmem:[#allocation19_spill] sm:$0xff] %v7719_v50  ;;  %v4214_v7 = vmax.f32 %v4212_v18, %v4213_v29  ;;  %v4272_v18 = vadd.f32 %v4202_v13, %v4144_v26 }
 0xe1b   : > { %v4226_v45 = vmax.f32 %v4224_v62, %v4225_v12  ;;  %v7750_v62 = vmax.f32 %v4219_v51, %v4220_v61 }
 0xe1c   : > { %8361 = vst [vmem:[#allocation37_spill] sm:$0xff] %v7703_v36  ;;  %v4110_v23 = vadd.f32 %v7703_v36, %v7701_v58  ;;  %v4238_v60 = vmax.f32 %v7701_v58, %v7703_v36  ;;  %v7734_v36 = vadd.f32 %v4195_v22, %v4143_v9  ;;  %v4215_v8 = vrot.slane %v4214_v7, 1 }
 0xe1d   : > { %v3985_v25 = vpop.f32.mrf.mxu2  ;;  %v4093_v58 = vadd.f32 %v4092_v28, %v4091_v0 }
 0xe1e   : > { %v4111_v59 = vrot.slane %v4110_v23, 4  ;;  %v3986_v34 = vadd.f32 %v3985_v25, %v8351_v54  ;;  %v4098_v25 = vadd.f32 %v4097_v4, %v4096_v53  ;;  %v4088_v53 = vadd.f32 %v4087_v55, %v4086_v5 }
 0xe1f   : > { %v3923_v21 = vpop.f32.mrf.mxu0  ;;  %v4239_v29 = vrot.slane %v4238_v60, 4  ;;  %v7736_v4 = vadd.f32 %v4080_v30, %v4079_v11  ;;  %v4216_v11 = vmax.f32 %v4214_v7, %v4215_v8  ;;  %v4094_v63 = vrot.slane %v4093_v58, 1 }
 0xe20   : > { %v7723_v52 = vmax.f32 %v3986_v34, 0.0  ;;  %v4112_v39 = vadd.f32 %v4111_v59, %v4110_v23  ;;  %v4299_v34 = vsel %vm1202_vm5, %v4270_v43, %v7685_v32  ;;  %v4099_v23 = vrot.slane %v4098_v25, 2 }
 0xe21   : > { %v4231_v32 = vmax.f32 %v7715_v20, %v7711_v17  ;;  %v3924_v43 = vadd.f32 %v3923_v21, %v8350_v49  ;;  %v4146_v9 = vmul.f32 %v4088_v53, %v5584_v42  ;;  %v4240_v13 = vmax.f32 %v4238_v60, %v4239_v29 }
 0xe22   : > { %8365 = vst [vmem:[#allocation27_spill] sm:$0xff] %v7723_v52  ;;  %v4117_v6 = vadd.f32 %v7723_v52, %v7719_v50  ;;  %v4113_v31 = vrot.slane %v4112_v39, 2  ;;  %v4245_v5 = vmax.f32 %v7719_v50, %v7723_v52  ;;  %v7747_v0 = vsel %vm1204_vm6, %v4272_v18, %v4299_v34 }
 0xe23   : > { %v4100_v26 = vadd.f32 %v4099_v23, %v4098_v25  ;;  %v4227_v30 = vrot.slane %v4226_v45, 2  ;;  %v4232_v28 = vrot.slane %v4231_v32, 4  ;;  %v7752_v53 = vmax.f32 %v3924_v43, 0.0 }
 0xe24   : > { %v4118_v41 = vrot.slane %v4117_v6, 4  ;;  %v4114_v55 = vadd.f32 %v4113_v31, %v4112_v39  ;;  %v7756_v29 = vadd.f32 %v4216_v11, %v4146_v9  ;;  %v4241_v34 = vrot.slane %v4240_v13, 2 }
 0xe25   : > { %v3988_v59 = vpop.f32.mrf.mxu2  ;;  %8366 = vst [vmem:[#allocation18_spill] sm:$0xff] %v7752_v53  ;;  %v4246_v18 = vrot.slane %v4245_v5, 4  ;;  %v4101_v25 = vrot.slane %v4100_v26, 1  ;;  %v4095_v51 = vadd.f32 %v4094_v63, %v4093_v58  ;;  %v4228_v33 = vmax.f32 %v4226_v45, %v4227_v30 }
 0xe26   : > { %v4119_v21 = vadd.f32 %v4118_v41, %v4117_v6  ;;  %v3989_v7 = vadd.f32 %v3988_v59, %v8351_v54  ;;  %v4115_v39 = vrot.slane %v4114_v55, 1  ;;  %v4233_v31 = vmax.f32 %v4231_v32, %v4232_v28 }
 0xe27   : > { %v3926_v22 = vpop.f32.mrf.mxu0  ;;  %v4247_v59 = vmax.f32 %v4245_v5, %v4246_v18  ;;  %v4107_v52 = vadd.f32 %v4106_v3, %v4105_v56  ;;  %v4229_v45 = vrot.slane %v4228_v33, 1 }
 0xe28   : > { %v3927_v12 = vadd.f32 %v3926_v22, %v8350_v49  ;;  %v4120_v8 = vrot.slane %v4119_v21, 2  ;;  %v4242_v22 = vmax.f32 %v4240_v13, %v4241_v34  ;;  %v7764_v9 = vmax.f32 %v3989_v7, 0.0 }
 0xe29   : > { %v4116_v20 = vadd.f32 %v4115_v39, %v4114_v55  ;;  %v4234_v32 = vrot.slane %v4233_v31, 2  ;;  %v4248_v28 = vrot.slane %v4247_v59, 2  ;;  %v4108_v56 = vrot.slane %v4107_v52, 1 }
 0xe2a   : > { %v7754_v60 = vmax.f32 %v3927_v12, 0.0  ;;  %8368 = vst [vmem:[#allocation21_spill] sm:$0xff] %v7764_v9  ;;  %v4102_v12 = vadd.f32 %v4101_v25, %v4100_v26  ;;  %v4121_v58 = vadd.f32 %v4120_v8, %v4119_v21  ;;  %v4243_v30 = vrot.slane %v4242_v22, 1 }
 0xe2b   : > { %v4150_v21 = vmul.f32 %v4116_v20, %v5584_v42 }
 0xe2c   : > { %8367 = vst [vmem:[#allocation28_spill] sm:$0xff] %v7754_v60  ;;  %v4124_v49 = vadd.f32 %v7754_v60, %v7752_v53  ;;  %v4252_v61 = vmax.f32 %v7752_v53, %v7754_v60  ;;  %v4148_v26 = vmul.f32 %v4102_v12, %v5584_v42  ;;  %v4122_v25 = vrot.slane %v4121_v58, 1 }
 0xe2d   : > { %v3991_v6 = vpop.f32.mrf.mxu2  ;;  %v4109_v12 = vadd.f32 %v4108_v56, %v4107_v52  ;;  %v4301_v52 = vsel %vm1206_vm7, %v7756_v29, %v7747_v0 }
 0xe2e   : > { %v3992_v23 = vadd.f32 %v3991_v6, %v8351_v54  ;;  %v4125_v41 = vrot.slane %v4124_v49, 4  ;;  %v4253_v43 = vrot.slane %v4252_v61, 4  ;;  %v4235_v6 = vmax.f32 %v4233_v31, %v4234_v32 }
 0xe30   : > { %v7766_v11 = vmax.f32 %v3992_v23, 0.0  ;;  %v4126_v50 = vadd.f32 %v4125_v41, %v4124_v49  ;;  %v4254_v17 = vmax.f32 %v4252_v61, %v4253_v43  ;;  %v4230_v61 = vmax.f32 %v4228_v33, %v4229_v45 }
 0xe31   : > { %v4244_v23 = vmax.f32 %v4242_v22, %v4243_v30  ;;  %v4249_v41 = vmax.f32 %v4247_v59, %v4248_v28  ;;  %v4236_v33 = vrot.slane %v4235_v6, 1  ;;  %v4147_v22 = vmul.f32 %v4095_v51, %v5584_v42 }
 0xe32   : > { %8369 = vst [vmem:[#allocation33_spill] sm:$0xff] %v7766_v11  ;;  %v4131_v63 = vadd.f32 %v7766_v11, %v7764_v9  ;;  %v4259_v54 = vmax.f32 %v7764_v9, %v7766_v11  ;;  %v4127_v13 = vrot.slane %v4126_v50, 2  ;;  %v4255_v5 = vrot.slane %v4254_v17, 2 }
 0xe33   : > { %v4222_v9 = vrot.slane %v7750_v62, 1  ;;  %v4276_v60 = vadd.f32 %v4230_v61, %v4148_v26  ;;  %v4278_v20 = vadd.f32 %v4244_v23, %v4150_v21  ;;  %v4250_v59 = vrot.slane %v4249_v41, 1  ;;  %v5059_v61 = vld [vmem:[%s8075_s20 + $0x38] sm:$0xff] }
 0xe34   : > { %v4132_v34 = vrot.slane %v4131_v63, 4  ;;  %v4260_v18 = vrot.slane %v4259_v54, 4  ;;  %v4128_v7 = vadd.f32 %v4127_v13, %v4126_v50  ;;  %v4256_v55 = vmax.f32 %v4254_v17, %v4255_v5 }
 0xe35   : > { %v4123_v50 = vadd.f32 %v4122_v25, %v4121_v58  ;;  %v4149_v58 = vmul.f32 %v4109_v12, %v5584_v42  ;;  %v4302_v5 = vsel %vm1208_vm8, %v4276_v60, %v4301_v52  ;;  %v4267_v51 = vadd.f32 %v7656_v27, %v7661_v24  ;;  %v5057_v25 = vld [vmem:[%s8075_s20 + $0x10] sm:$0xff] }
 0xe36   : > { %v4133_v3 = vadd.f32 %v4132_v34, %v4131_v63  ;;  %v4261_v49 = vmax.f32 %v4259_v54, %v4260_v18  ;;  %v4129_v39 = vrot.slane %v4128_v7, 1  ;;  %v4257_v8 = vrot.slane %v4256_v55, 1  ;;  %v4858_v52 = vld [vmem:[%s8077_s22 + $0x170] sm:$0xff] }
 0xe37   : > { %v4145_v63 = vmul.f32 %v7736_v4, %v5584_v42  ;;  %v4223_v4 = vmax.f32 %v7750_v62, %v4222_v9  ;;  %v4151_v30 = vmul.f32 %v4123_v50, %v5584_v42  ;;  %v4237_v18 = vmax.f32 %v4235_v6, %v4236_v33  ;;  %v5060_v6 = vld [vmem:[%s8075_s20 + $0x28] sm:$0xff] }
 0xe38   : > { %v4134_v43 = vrot.slane %v4133_v3, 2  ;;  %v4262_v11 = vrot.slane %v4261_v49, 2  ;;  %v4130_v53 = vadd.f32 %v4129_v39, %v4128_v7  ;;  %v4258_v31 = vmax.f32 %v4256_v55, %v4257_v8  ;;  %v5055_v7 = vld [vmem:[%s8075_s20 + $0x30] sm:$0xff]  ;;  %v5061_v39 = vld [vmem:[%s8075_s20 + $0x18] sm:$0xff]  ;;  %v5062_v8 = vld [vmem:[%s8075_s20 + $0x8] sm:$0xff] }
 0xe39   : > { %v4273_v34 = vadd.f32 %v7738_v57, %v4145_v63  ;;  %v4275_v29 = vadd.f32 %v4223_v4, %v4147_v22  ;;  %v4251_v26 = vmax.f32 %v4249_v41, %v4250_v59  ;;  %v4305_v62 = vsel %vm1200_vm4, %v7730_v40, %v4267_v51  ;;  %v5063_v41 = vld [vmem:[%s8074_s19] ss:$0 sm:$0xff] }
 0xe3a   : > { %v4135_v17 = vadd.f32 %v4134_v43, %v4133_v3  ;;  %v4263_v13 = vmax.f32 %v4261_v49, %v4262_v11  ;;  %v4152_v54 = vmul.f32 %v4130_v53, %v5584_v42  ;;  %v4303_v53 = vsel %vm1210_vm9, %v4278_v20, %v4302_v5  ;;  %v5058_v49 = vld [vmem:[%s8075_s20] sm:$0xff]  ;;  %v8372_v20 = vld [vmem:[#allocation40_spill] sm:$0xff]  ;;  %v4857_v5 = vld [vmem:[%s8077_s22 + $0x168] sm:$0xff] }
 0xe3b   : > { %v4277_v9 = vadd.f32 %v4237_v18, %v4149_v58  ;;  %v4279_v27 = vadd.f32 %v4251_v26, %v4151_v30  ;;  %v4306_v24 = vsel %vm1202_vm5, %v7734_v36, %v4305_v62  ;;  %v8373_v63 = vperm.slane %v8372_v20, 0  ;;  %v4856_v4 = vld [vmem:[%s8077_s22 + $0x160] sm:$0xff]  ;;  %v4855_v30 = vld [vmem:[%s8077_s22 + $0x158] sm:$0xff]  ;;  %v4853_v18 = vld [vmem:[%s8077_s22 + $0x148] sm:$0xff] }
 0xe3c   : > { %v4136_v45 = vrot.slane %v4135_v17, 1  ;;  %v4264_v32 = vrot.slane %v4263_v13, 1  ;;  %v4280_v11 = vadd.f32 %v4258_v31, %v4152_v54  ;;  %v4307_v55 = vsel %vm1204_vm6, %v4273_v34, %v4306_v24  ;;  %v4851_v26 = vld [vmem:[%s8077_s22 + $0x138] sm:$0xff]  ;;  %v4850_v62 = vld [vmem:[%s8077_s22 + $0x130] sm:$0xff]  ;;  %v4848_v24 = vld [vmem:[%s8077_s22 + $0x120] sm:$0xff] }
 0xe3d   : > { %v4308_v40 = vsel %vm1206_vm7, %v4275_v29, %v4307_v55  ;;  %v8374_v22 = vperm.slane %v8372_v20, 1  ;;  %v4852_v29 = vld [vmem:[%s8077_s22 + $0x140] sm:$0xff] }
 0xe3e   : > { %v4137_v28 = vadd.f32 %v4136_v45, %v4135_v17  ;;  %v4304_v0 = vsel %vm1212_vm10, %v4280_v11, %v4303_v53  ;;  %v4265_v56 = vmax.f32 %v4263_v13, %v4264_v32  ;;  %v4309_v21 = vsel %vm1208_vm8, %v4277_v9, %v4308_v40  ;;  %v4859_v45 = vld [vmem:[%s8077_s22 + $0x178] sm:$0xff] }
 0xe3f   : > { %4330 = vmatmul.f32.vlgmr.msrb.gmra.mxu1 %v4304_v0  ;;  %v4310_v3 = vsel %vm1210_vm9, %v4279_v27, %v4309_v21 }
 0xe40   : > { %v4153_v60 = vmul.f32 %v4137_v28, %v5584_v42  ;;  %4370 = vmatpush.msrb.mxu1 %v5055_v7  ;;  %v5056_v42 = vld [vmem:[%s8075_s20 + $0x20] sm:$0xff]  ;;  %v4854_v28 = vld [vmem:[%s8077_s22 + $0x150] sm:$0xff] }
 0xe42   : > { %v4281_v57 = vadd.f32 %v4265_v56, %v4153_v60  ;;  %4371 = vmatpush.msrb.mxu1 %v5056_v42  ;;  %v4849_v56 = vld [vmem:[%s8077_s22 + $0x128] sm:$0xff]  ;;  %v4847_v42 = vld [vmem:[%s8077_s22 + $0x118] sm:$0xff] }
 0xe44   : > { %4372 = vmatpush.msrb.mxu1 %v5057_v25  ;;  %v4311_v36 = vsel %vm1212_vm10, %v4281_v57, %v4310_v3  ;;  %vm8370_vm10 = vcmask 261120  }
 0xe45   : > { %vm8371_vm15 = vmmov %vm8370_vm10 }
 0xe46   : > { %4373 = vmatpush.msrb.mxu1 %v5058_v49 }
 0xe47   : > { %4350 = vmatmul.f32.vlgmr.msra.gmra.mxu1 %v4311_v36  ;;  %v4846_v36 = vld [vmem:[%s8077_s22 + $0x110] sm:$0xff] }
 0xe48   : > { %4390 = vmatpush.msra.mxu1 %v5059_v61 }
 0xe4a   : > { %4391 = vmatpush.msra.mxu1 %v5060_v6 }
 0xe4c   : > { %4392 = vmatpush.msra.mxu1 %v5061_v39 }
 0xe4e   : > { %4393 = vmatpush.msra.mxu1 %v5062_v8  ;;  %v4845_v8 = vld [vmem:[%s8077_s22 + $0x108] sm:$0xff] }
 0xebc   : > { %v4331_v23 = vpop.f32.mrf.mxu1 }
 0xebd   : > { %v4332_v43 = vadd.f32 %v5063_v41, %v4331_v23 }
 0xec4   : > { %v4351_v12 = vpop.f32.mrf.mxu1 }
 0xec5   : > { %v4352_v50 = vadd.f32 %v4351_v12, %v4332_v43 }
 0xec7   : > { %v4354_v17 = vmax.f32 %v4352_v50, 0.0  ;;  %v4844_v50 = vld [vmem:[%s8077_s22 + $0x100] sm:$0xff] }
 0xec9   : > { %4840 = vmatmul.msk.f32.vlgmr.msrb.gmra.mxu1 %vm8370_vm10, %v4354_v17 }
 0xeca   : > { %4627 = vmatpush.msrb.mxu1 %v4859_v45 }
 0xecc   : > { %4628 = vmatpush.msrb.mxu1 %v4858_v52  ;;  %v4872_v52 = vld [vmem:[%s8077_s22 + $0x1e0] sm:$0xff] }
 0xece   : > { %4629 = vmatpush.msrb.mxu1 %v4857_v5 }
 0xed0   : > { %4630 = vmatpush.msrb.mxu1 %v4856_v4 }
 0xed1   : > { %4841 = vmatmul.msk.f32.vlgmr.msra.gmra.mxu1 %vm8371_vm15, %v4354_v17 }
 0xed2   : > { %4631 = vmatpush.msrb.mxu1 %v4855_v30 }
 0xed4   : > { %4632 = vmatpush.msrb.mxu1 %v4854_v28  ;;  %v4870_v28 = vld [vmem:[%s8077_s22 + $0x1d0] sm:$0xff] }
 0xed6   : > { %4633 = vmatpush.msrb.mxu1 %v4853_v18 }
 0xed8   : > { %4634 = vmatpush.msrb.mxu1 %v4852_v29  ;;  %v4868_v29 = vld [vmem:[%s8077_s22 + $0x1c0] sm:$0xff] }
 0xeda   : > { %4635 = vmatpush.msrb.mxu1 %v4851_v26 }
 0xedc   : > { %4636 = vmatpush.msrb.mxu1 %v4850_v62 }
 0xede   : > { %4637 = vmatpush.msrb.mxu1 %v4849_v56 }
 0xee0   : > { %4638 = vmatpush.msrb.mxu1 %v4848_v24 }
 0xee2   : > { %4639 = vmatpush.msrb.mxu1 %v4847_v42 }
 0xee4   : > { %4640 = vmatpush.msrb.mxu1 %v4846_v36  ;;  %v4865_v36 = vld [vmem:[%s8077_s22 + $0x1a8] sm:$0xff] }
 0xee6   : > { %4641 = vmatpush.msrb.mxu1 %v4845_v8  ;;  %v4864_v8 = vld [vmem:[%s8077_s22 + $0x1a0] sm:$0xff] }
 0xee8   : > { %4642 = vmatpush.msrb.mxu1 %v4844_v50 }
 0xf46   : > { %v4375_v13 = vpop.f32.mrf.mxu1 }
 0xf47   : > { %v4376_v33 = vadd.f32 %v4375_v13, %v8373_v63  ;;  %v4875_v13 = vld [vmem:[%s8077_s22 + $0x1f8] sm:$0xff] }
 0xf48   : > { %4647 = vmatpush.msra.mxu1 %v4875_v13 }
 0xf49   : > { %v4842_v31 = vmul.f32 -1.442695, %v4376_v33  ;;  %v4874_v33 = vld [vmem:[%s8077_s22 + $0x1f0] sm:$0xff] }
 0xf4a   : > { %4648 = vmatpush.msra.mxu1 %v4874_v33 }
 0xf4b   : > { %4957 = vpow2.f32 %v4842_v31 }
 0xf4e   : > { %v4395_v54 = vpop.f32.mrf.mxu1 }
 0xf4f   : > { %v4396_v59 = vadd.f32 %v4395_v54, %v8374_v22 }
 0xf51   : > { %v4958_v58 = vpop.eup %4957  ;;  %v4843_v32 = vmul.f32 -1.442695, %v4396_v59  ;;  %v4873_v59 = vld [vmem:[%s8077_s22 + $0x1e8] sm:$0xff] }
 0xf52   : > { %v4404_v11 = vadd.f32 1.0, %v4958_v58  ;;  %4649 = vmatpush.msra.mxu1 %v4873_v59 }
 0xf53   : > { %4959 = vpow2.f32 %v4843_v32  ;;  %v4871_v32 = vld [vmem:[%s8077_s22 + $0x1d8] sm:$0xff] }
 0xf54   : > { %4961 = vrcp.f32 %v4404_v11  ;;  %vm4411_vm2 = vweird.f32 %v4404_v11  ;;  %v4417_v3 = vand.u32 2147483648, %v4404_v11  ;;  %v4415_v61 = vand.u32 2147483647, %v4404_v11  ;;  %4650 = vmatpush.msra.mxu1 %v4872_v52 }
 0xf56   : > { %v4418_v43 = vor.u32 1.1754944e-38, %v4417_v3  ;;  %vm4416_vm15 = vcmp.eq.f32.partialorder %v4415_v61, 8.507059e+37  ;;  %4651 = vmatpush.msra.mxu1 %v4871_v32 }
 0xf58   : > { %4652 = vmatpush.msra.mxu1 %v4870_v28 }
 0xf59   : > { %v4960_v53 = vpop.eup %4959 }
 0xf5a   : > { %v4962_v51 = vpop.eup %4961  ;;  %v4405_v34 = vadd.f32 1.0, %v4960_v53 }
 0xf5b   : > { %v4407_v0 = vmul.f32 %v4962_v51, %v4404_v11  ;;  %vm4412_vm1 = vweird.f32 %v4962_v51 }
 0xf5c   : > { %4963 = vrcp.f32 %v4405_v34  ;;  %v4432_v55 = vand.u32 2147483648, %v4405_v34  ;;  %v4430_v25 = vand.u32 2147483647, %v4405_v34  ;;  %vm7876_vm3 = vmor %vm4411_vm2, %vm4412_vm1  ;;  %vm4426_vm14 = vweird.f32 %v4405_v34 }
 0xf5d   : > { %v4408_v60 = vsub.f32 1.0, %v4407_v0 }
 0xf5e   : > { %v4433_v39 = vor.u32 1.1754944e-38, %v4432_v55  ;;  %vm4431_vm10 = vcmp.eq.f32.partialorder %v4430_v25, 8.507059e+37 }
 0xf5f   : > { %v4409_v7 = vmul.f32 %v4962_v51, %v4408_v60 }
 0xf61   : > { %v4410_v40 = vadd.f32 %v4962_v51, %v4409_v7 }
 0xf62   : > { %v4964_v9 = vpop.eup %4963 }
 0xf63   : > { %v4422_v27 = vmul.f32 %v4964_v9, %v4405_v34  ;;  %vm4427_vm12 = vweird.f32 %v4964_v9  ;;  %v4414_v23 = vsel %vm7876_vm3, %v4962_v51, %v4410_v40  ;;  %v4869_v51 = vld [vmem:[%s8077_s22 + $0x1c8] sm:$0xff] }
 0xf64   : > { %vm4428_vm11 = vmor %vm4426_vm14, %vm4427_vm12  ;;  %v7893_v20 = vsel %vm4416_vm15, %v4418_v43, %v4414_v23  ;;  %4653 = vmatpush.msra.mxu1 %v4869_v51 }
 0xf65   : > { %v4423_v57 = vsub.f32 1.0, %v4422_v27 }
 0xf66   : > { %4654 = vmatpush.msra.mxu1 %v4868_v29 }
 0xf67   : > { %v4424_v21 = vmul.f32 %v4964_v9, %v4423_v57  ;;  %v4866_v57 = vld [vmem:[%s8077_s22 + $0x1b0] sm:$0xff] }
 0xf69   : > { %v4425_v6 = vadd.f32 %v4964_v9, %v4424_v21 }
 0xf6b   : > { %v4429_v41 = vsel %vm4428_vm11, %v4964_v9, %v4425_v6  ;;  %v4867_v9 = vld [vmem:[%s8077_s22 + $0x1b8] sm:$0xff] }
 0xf6c   : > { %v4434_v12 = vsel %vm4431_vm10, %v4433_v39, %v4429_v41  ;;  %4655 = vmatpush.msra.mxu1 %v4867_v9 }
 0xf6d   : > { %v7888_v17 = vrot.slane %v4434_v12, 7 }
 0xf6e   : > { %4656 = vmatpush.msra.mxu1 %v4866_v57 }
 0xf6f   : > { %v4439_v63 = vsel %vm2566_vm13, %v7893_v20, %v7888_v17  ;;  %v4440_v31 = vsel %vm1200_vm4, %v7893_v20, %v7888_v17  ;;  %v4442_v45 = vsel %vm1202_vm5, %v7893_v20, %v7888_v17  ;;  %v4444_v30 = vsel %vm1204_vm6, %v7893_v20, %v7888_v17 }
 0xf70   : > { %v4441_v54 = vrot.slane %v4440_v31, 1  ;;  %v4454_v22 = vperm.slane %v4439_v63, 0  ;;  %v4443_v11 = vrot.slane %v4442_v45, 2  ;;  %v4445_v34 = vrot.slane %v4444_v30, 3  ;;  %4657 = vmatpush.msra.mxu1 %v4865_v36  ;;  %v8377_v45 = vld [vmem:[#allocation30_spill] sm:$0xff]  ;;  %v8379_v30 = vld [vmem:[#allocation23_spill] sm:$0xff] }
 0xf71   : > { %v7931_v0 = vsel %vm1206_vm7, %v7893_v20, %v7888_v17  ;;  %v4455_v60 = vperm.slane %v4439_v63, 1  ;;  %v7940_v62 = vsel %vm1208_vm8, %v7893_v20, %v7888_v17  ;;  %v7955_v25 = vsel %vm1210_vm9, %v7893_v20, %v7888_v17  ;;  %v8384_v36 = vld [vmem:[#allocation37_spill] sm:$0xff] }
 0xf72   : > { %v4456_v58 = vperm.slane %v4441_v54, 0  ;;  %v4486_v5 = vmul.f32 %v4454_v22, %v7557_v16  ;;  %v4488_v4 = vmul.f32 %v4454_v22, %v7555_v14  ;;  %v4458_v16 = vperm.slane %v4443_v11, 0  ;;  %4658 = vmatpush.msra.mxu1 %v4864_v8 }
 0xf73   : > { %v4447_v56 = vrot.slane %v7931_v0, 4  ;;  %v4460_v7 = vperm.slane %v4445_v34, 0  ;;  %v4449_v21 = vrot.slane %v7940_v62, 5  ;;  %v4489_v3 = vmul.f32 %v4455_v60, %v7571_v48  ;;  %v4861_v0 = vld [vmem:[%s8077_s22 + $0x188] sm:$0xff] }
 0xf74   : > { %v4490_v53 = vmul.f32 %v4456_v58, %v7573_v2  ;;  %v4518_v18 = vmax.f32 %v4486_v5, 0.0  ;;  %v4520_v14 = vmax.f32 %v4488_v4, 0.0  ;;  %v4492_v2 = vmul.f32 %v4456_v58, %v7569_v38 }
 0xf75   : > { %v4494_v27 = vmul.f32 %v4458_v16, %v7593_v1  ;;  %v4457_v38 = vperm.slane %v4441_v54, 1  ;;  %v4496_v55 = vmul.f32 %v4458_v16, %v7588_v46  ;;  %v4487_v1 = vmul.f32 %v4455_v60, %v7577_v37 }
 0xf76   : > { %v4522_v26 = vmax.f32 %v4490_v53, 0.0  ;;  %v4550_v24 = vadd.f32 %v4520_v14, %v4518_v18  ;;  %v4524_v42 = vmax.f32 %v4492_v2, 0.0  ;;  %v4462_v49 = vperm.slane %v4447_v56, 0  ;;  %v8381_v2 = vld [vmem:[#allocation32_spill] sm:$0xff] }
 0xf77   : > { %v4498_v46 = vmul.f32 %v4460_v7, %v7630_v19  ;;  %v4526_v61 = vmax.f32 %v4494_v27, 0.0  ;;  %v4491_v39 = vmul.f32 %v4457_v38, %v7603_v44  ;;  %v4451_v37 = vrot.slane %v7955_v25, 6  ;;  %v8382_v27 = vld [vmem:[#allocation38_spill] sm:$0xff]  ;;  %v8392_v25 = vld [vmem:[#allocation27_spill] sm:$0xff] }
 0xf78   : > { %v4551_v40 = vadd.f32 %v4550_v24, %v4522_v26  ;;  %v4500_v48 = vmul.f32 %v4460_v7, %v7623_v47  ;;  %v4528_v23 = vmax.f32 %v4496_v55, 0.0  ;;  %v7972_v19 = vsel %vm2580_vm0, %v7888_v17, %v7893_v20  ;;  %v4860_v55 = vld [vmem:[%s8077_s22 + $0x180] sm:$0xff] }
 0xf79   : > { %v4459_v43 = vperm.slane %v4443_v11, 1  ;;  %v4519_v12 = vmax.f32 %v4487_v1, 0.0  ;;  %v4521_v50 = vmax.f32 %v4489_v3, 0.0  ;;  %v4464_v44 = vperm.slane %v4449_v21, 0 }
 0xf7a   : > { %v4552_v6 = vadd.f32 %v4551_v40, %v4524_v42  ;;  %v4502_v13 = vmul.f32 %v4462_v49, %v7651_v35  ;;  %v4530_v63 = vmax.f32 %v4498_v46, 0.0  ;;  %v4493_v47 = vmul.f32 %v4457_v38, %v7597_v10  ;;  %v8378_v35 = vld [vmem:[#allocation39_spill] sm:$0xff]  ;;  %v4863_v10 = vld [vmem:[%s8077_s22 + $0x198] sm:$0xff] }
 0xf7b   : > { %v4523_v31 = vmax.f32 %v4491_v39, 0.0  ;;  %v4504_v54 = vmul.f32 %v4462_v49, %v7647_v15  ;;  %v4532_v22 = vmax.f32 %v4500_v48, 0.0  ;;  %v4453_v17 = vrot.slane %v7972_v19, 7  ;;  %v4862_v15 = vld [vmem:[%s8077_s22 + $0x190] sm:$0xff]  ;;  %4659 = vmatpush.msra.mxu1 %v4863_v10  ;;  %v8383_v42 = vld [vmem:[#allocation29_spill] sm:$0xff] }
 0xf7c   : > { %v4553_v41 = vadd.f32 %v4552_v6, %v4526_v61  ;;  %v4461_v20 = vperm.slane %v4445_v34, 1  ;;  %v4495_v52 = vmul.f32 %v4459_v43, %v8377_v45  ;;  %v4571_v58 = vadd.f32 %v4521_v50, %v4519_v12  ;;  %v8380_v34 = vld [vmem:[#allocation36_spill] sm:$0xff]  ;;  %v8385_v6 = vld [vmem:[#allocation34_spill] sm:$0xff]  ;;  %v8387_v12 = vld [vmem:[#allocation31_spill] sm:$0xff] }
 0xf7d   : > { %v4466_v32 = vperm.slane %v4451_v37, 0  ;;  %v4506_v11 = vmul.f32 %v4464_v44, %v8378_v35  ;;  %v4534_v5 = vmax.f32 %v4502_v13, 0.0  ;;  %v4497_v28 = vmul.f32 %v4459_v43, %v8379_v30  ;;  %4660 = vmatpush.msra.mxu1 %v4862_v15  ;;  %v8391_v10 = vld [vmem:[#allocation19_spill] sm:$0xff] }
 0xf7e   : > { %v4554_v33 = vadd.f32 %v4553_v41, %v4528_v23  ;;  %v4525_v53 = vmax.f32 %v4493_v47, 0.0  ;;  %v4572_v51 = vadd.f32 %v4571_v58, %v4523_v31  ;;  %v4508_v16 = vmul.f32 %v4464_v44, %v8380_v34  ;;  %v8386_v23 = vld [vmem:[#allocation18_spill] sm:$0xff] }
 0xf7f   : > { %v4536_v18 = vmax.f32 %v4504_v54, 0.0  ;;  %v4463_v29 = vperm.slane %v4447_v56, 1  ;;  %v4499_v26 = vmul.f32 %v4461_v20, %v8381_v2  ;;  %v4527_v60 = vmax.f32 %v4495_v52, 0.0  ;;  %4661 = vmatpush.msra.mxu1 %v4861_v0  ;;  %v8390_v52 = vld [vmem:[#allocation16_spill] sm:$0xff] }
 0xf80   : > { %v4555_v59 = vadd.f32 %v4554_v33, %v4530_v63  ;;  %v4573_v9 = vadd.f32 %v4572_v51, %v4525_v53  ;;  %v4468_v7 = vperm.slane %v4453_v17, 0  ;;  %v4510_v24 = vmul.f32 %v4466_v32, %v8382_v27  ;;  %v8388_v63 = vld [vmem:[#allocation28_spill] sm:$0xff] }
 0xf81   : > { %v4538_v38 = vmax.f32 %v4506_v11, 0.0  ;;  %v4501_v40 = vmul.f32 %v4461_v20, %v8383_v42  ;;  %v4529_v1 = vmax.f32 %v4497_v28, 0.0  ;;  %v4512_v56 = vmul.f32 %v4466_v32, %v8384_v36  ;;  %4662 = vmatpush.msra.mxu1 %v4860_v55  ;;  %v8397_v36 = vld [vmem:[#allocation17_spill] sm:$0xff] }
 0xf82   : > { %v4556_v4 = vadd.f32 %v4555_v59, %v4532_v22  ;;  %v4574_v3 = vadd.f32 %v4573_v9, %v4527_v60  ;;  %v4540_v49 = vmax.f32 %v4508_v16, 0.0  ;;  %v4465_v61 = vperm.slane %v4449_v21, 1  ;;  %v8389_v21 = vld [vmem:[#allocation25_spill] sm:$0xff] }
 0xf83   : > { %v4503_v39 = vmul.f32 %v4463_v29, %v8385_v6  ;;  %v4531_v8 = vmax.f32 %v4499_v26, 0.0  ;;  %v4514_v41 = vmul.f32 %v4468_v7, %v8386_v23  ;;  %v4542_v19 = vmax.f32 %v4510_v24, 0.0  ;;  %v8394_v26 = vld [vmem:[#allocation33_spill] sm:$0xff]  ;;  %v8398_v23 = vld [vmem:[#allocation22_spill] sm:$0xff] }
 0xf84   : > { %v4557_v14 = vadd.f32 %v4556_v4, %v4534_v5  ;;  %v4575_v48 = vadd.f32 %v4574_v3, %v4529_v1  ;;  %v4505_v50 = vmul.f32 %v4463_v29, %v8387_v12  ;;  %v4533_v44 = vmax.f32 %v4501_v40, 0.0 }
 0xf85   : > { %v4516_v33 = vmul.f32 %v4468_v7, %v8388_v63  ;;  %v4544_v47 = vmax.f32 %v4512_v56, 0.0  ;;  %v4467_v62 = vperm.slane %v4451_v37, 1  ;;  %v4507_v54 = vmul.f32 %v4465_v61, %v8389_v21 }
 0xf86   : > { %v4558_v57 = vadd.f32 %v4557_v14, %v4536_v18  ;;  %v4576_v13 = vadd.f32 %v4575_v48, %v4531_v8  ;;  %v4535_v22 = vmax.f32 %v4503_v39, 0.0  ;;  %v4546_v20 = vmax.f32 %v4514_v41, 0.0  ;;  %v8393_v18 = vld [vmem:[#allocation21_spill] sm:$0xff]  ;;  %v8399_v41 = vld [vmem:[#allocation26_spill] sm:$0xff] }
 0xf87   : > { %v4509_v58 = vmul.f32 %v4465_v61, %v8390_v52  ;;  %v4537_v32 = vmax.f32 %v4505_v50, 0.0  ;;  %v4548_v11 = vmax.f32 %v4516_v33, 0.0  ;;  %v4469_v4 = vperm.slane %v4453_v17, 1 }
 0xf88   : > { %v4559_v46 = vadd.f32 %v4558_v57, %v4538_v38  ;;  %v4577_v59 = vadd.f32 %v4576_v13, %v4533_v44  ;;  %v4511_v15 = vmul.f32 %v4467_v62, %v8391_v10  ;;  %v4539_v30 = vmax.f32 %v4507_v54, 0.0 }
 0xf89   : > { %v4513_v37 = vmul.f32 %v4467_v62, %v8392_v25  ;;  %v4541_v51 = vmax.f32 %v4509_v58, 0.0  ;;  %v4515_v14 = vmul.f32 %v4469_v4, %v8393_v18  ;;  %v4517_v60 = vmul.f32 %v4469_v4, %v8394_v26 }
 0xf8a   : > { %v4560_v43 = vadd.f32 %v4559_v46, %v4540_v49  ;;  %v4578_v35 = vadd.f32 %v4577_v59, %v4535_v22  ;;  %v4543_v0 = vmax.f32 %v4511_v15, 0.0  ;;  %vm4668_vm4 = vcmask 73728  }
 0xf8b   : > { %v4545_v9 = vmax.f32 %v4513_v37, 0.0  ;;  %v4547_v27 = vmax.f32 %v4515_v14, 0.0  ;;  %v4549_v57 = vmax.f32 %v4517_v60, 0.0 }
 0xf8c   : > { %v4561_v31 = vadd.f32 %v4560_v43, %v4542_v19  ;;  %v4579_v28 = vadd.f32 %v4578_v35, %v4537_v32  ;;  %v2800_v19 = vadd.f32 %v8399_v41, %v8398_v23  ;;  %v751_v43 = vld [vmem:[%s8401_s5] sm:$0x1] }
 0xf8e   : > { %v4562_v45 = vadd.f32 %v4561_v31, %v4544_v47  ;;  %v4580_v34 = vadd.f32 %v4579_v28, %v4539_v30  ;;  %v2802_v50 = vadd.f32 %v2800_v19, %v751_v43 }
 0xf90   : > { %v4563_v5 = vadd.f32 %v4562_v45, %v4546_v20  ;;  %v4581_v29 = vadd.f32 %v4580_v34, %v4541_v51 }
 0xf92   : > { %v4564_v53 = vadd.f32 %v4563_v5, %v4548_v11  ;;  %v4582_v7 = vadd.f32 %v4581_v29, %v4543_v0 }
 0xf94   : > { %v4565_v16 = vrot.slane %v4564_v53, 4  ;;  %v4583_v24 = vadd.f32 %v4582_v7, %v4545_v9 }
 0xf96   : > { %v4566_v2 = vadd.f32 %v4565_v16, %v4564_v53  ;;  %v4584_v55 = vadd.f32 %v4583_v24, %v4547_v27 }
 0xf98   : > { %v4567_v17 = vrot.slane %v4566_v2, 2  ;;  %v4585_v40 = vadd.f32 %v4584_v55, %v4549_v57 }
 0xf9a   : > { %v4568_v38 = vadd.f32 %v4567_v17, %v4566_v2  ;;  %v4586_v3 = vrot.slane %v4585_v40, 4 }
 0xf9c   : > { %v4569_v42 = vrot.slane %v4568_v38, 1  ;;  %v4587_v49 = vadd.f32 %v4586_v3, %v4585_v40 }
 0xf9e   : > { %v4570_v1 = vadd.f32 %v4569_v42, %v4568_v38  ;;  %v4588_v46 = vrot.slane %v4587_v49, 2 }
 0xfa0   : > { %v4592_v56 = vmul.f32 %v4570_v1, %v8397_v36  ;;  %v4589_v61 = vadd.f32 %v4588_v46, %v4587_v49 }
 0xfa2   : > { %4643 = vmatmul.f32.vlgmr.msrb.gmra.mxu1 %v4592_v56  ;;  %v4590_v6 = vrot.slane %v4589_v61, 1 }
 0xfa4   : > { %v4591_v39 = vadd.f32 %v4590_v6, %v4589_v61 }
 0xfa6   : > { %v4593_v8 = vmul.f32 %v4591_v39, %v8397_v36 }
 0xfaa   : > { %4663 = vmatmul.f32.vlgmr.msra.gmra.mxu1 %v4593_v8 }
0x101f   : > { %v4644_v48 = vpop.f32.mrf.mxu1 }
0x1027   : > { %v4664_v12 = vpop.f32.mrf.mxu1 }
0x1028   : > { %v4665_v44 = vadd.f32 %v4664_v12, %v4644_v48 }
0x102a   : > { %v4667_v13 = vadd.f32 %v4665_v44, %v2802_v50 }
0x102c   : > { %4669 = vst.msk [vmem:[%s729_s1] sm:$0x1] %vm4668_vm4, %v4667_v13 }
0x102d   : > { %5091 = shalt.err (!%p5088_p3)
}
0x102e   : > { %4879 = dma.vmem_to_hbm [thread:$0]  (%p5293_p5), %s4682_s2, 16, %s4684_s3, %s4671_s6  }
0x102f PF: > { %s8403_s1 = sld [smem:[#allocation8_spill]] }
0x1030   : > { %s8404_s8 = sld [smem:[#allocation5_spill]] }
0x1035   : > { %p4885_p4 = scmp.ge.s32.totalorder %s8403_s1, 2 }
0x1036   : > { %s4695_s7 = sand.u32 1, %s8404_s8  }
0x1037   : > { %p4882_p7 = pnand %p4885_p4, %p5297_p6  ;;  %s4696_s26 = scalar_lea.sflag [#allocation3], %s4695_s7 }
0x1039   : > { %p4883_p8 = pneg %p4882_p7 }
0x103b   : > { %5109 = dma.done.wait (%p4883_p8), %s4696_s26, 16  }
0x103c   : > { %5111 = vsyncadd (%p4883_p8), %s4696_s26, 4294967280  ;;  %s8406_s28 = sld [smem:[#allocation10_spill]] }
0x103d   : > { %s8407_s5 = sld [smem:[#allocation6_spill]] }
0x103e   : > { %s8408_s26 = sld [smem:[#allocation7_spill]] }
0x103f   : > { %s8409_s27 = sld [smem:[#allocation11_spill]] }
0x1042   : > { %p34_p9 = scmp.ge.s32.totalorder %s8406_s28, 4  }
0x1044   :  { %36 = sbr.rel (!%p34_p9) target bundleno = 16 (0x10), region = 153 }
0x1049   :  { %4701 = vsyncpa [#allocation3], 1 }
0x104a   :  { %4703 = vsyncpa [#allocation3 + $0x1], 1 }

</bundles_post_ra>
